<compile_context>
chip_gen: v6e
topology: v6e:2x2x1
jax: 0.10.0
libtpu: 0.0.40
codegen_flags: <defaults>
</compile_context>

<pallas_src>
import functools

import jax
import jax.numpy as jnp
from jax.experimental import pallas as pl
from jax.experimental.pallas import tpu as pltpu

NEG_SLOPE = 0.01            # nn.LeakyReLU default
HT_MIN, HT_MAX = -10.0, 10.0


def _leaky(x):
    return jnp.where(x >= 0, x, NEG_SLOPE * x)


def _relu(x):
    return jnp.maximum(x, 0.0)


def _elu(x):
    return jnp.where(x > 0, x, jnp.expm1(jnp.minimum(x, 0.0)))


def _mm(a, b):
    return jnp.dot(a, b, preferred_element_type=jnp.float32)


# ---------------------------------------------------------------------------
# Pallas kernel: one (b, m) group x one tile of N points, all coupling steps.
# Activations are (channels, tile_n): channels on sublanes, points on lanes.
# ---------------------------------------------------------------------------
def nvp_kernel(n_steps,
               x_ref,          # (1, 3, tile_n)   points of this (b, m) / N-tile
               masks_ref,      # (S, 3, 1)        per-step coordinate masks
               hb_ref,         # (S, 1, 2h, 1)    hoisted Fi @ W1_feat bias columns
               isig_ref,       # (1, 3, 1)        hoisted 1 / sigma
               wp1_ref,        # (S, 2p, 3)       'simple' projection layer 1
               wp2_ref,        # (S, p, 2p)       'simple' projection layer 2
               wst1_ref,       # (S, 2h, p)       fused [map_s|map_t] layer 1 (y-part)
               wst2_ref,       # (S, 6, 2h)       fused block-diag [map_s|map_t] layer 2
               o_ref):         # (1, 3, tile_n)
    y = x_ref[0]                                   # (3, tile)  (R = I, t = 0 => y = x)

    for s in range(n_steps):                       # statically unrolled coupling steps
        m = masks_ref[s]                           # (3, 1)
        y1 = y * m                                 # (3, tile)

        # projection layer ('simple'): Linear -> ReLU -> Linear
        p = _mm(wp2_ref[s], _relu(_mm(wp1_ref[s], y1)))          # (p, tile)

        # fused map_s / map_t hidden layer: y-part matmul + hoisted feature bias
        st_h = _leaky(_mm(wst1_ref[s], p) + hb_ref[s, 0])        # (2h, tile)
        st = _mm(wst2_ref[s], st_h)                              # (6, tile)
        s_out = jnp.clip(st[0:3], HT_MIN, HT_MAX)                # Hardtanh + Shift(0)
        t_out = st[3:6]

        y = y1 + (1.0 - m) * ((y - t_out) * jnp.exp(-s_out))

    # block-normalize: sigma hoisted to the wrapper; divide becomes a broadcast mul
    o_ref[0] = y * isig_ref[0]


# ---------------------------------------------------------------------------
# Wrapper: hoists all (b, m)-only math, packs weights lane-dense, calls Pallas.
# ---------------------------------------------------------------------------
def nvp_forward(F, x, params, masks, *, tile_n=512):
    B, N, M, _ = x.shape
    feat = F.shape[-1]
    n_steps = len(masks)
    hidden = params['ws2'].shape[1]
    BM = B * M
    tile_n = min(tile_n, N)
    # TODO(synk): pad N / add masked tail handling for N not divisible by tile_n.
    assert N % tile_n == 0, "N must be divisible by the point tile"

    f32 = jnp.float32
    F2 = F.reshape(BM, feat).astype(f32)

    # ---- hoisted per-(b, m) work (tiny matmuls, done once, plain JAX) ----
    #   code projectors Fi, feature halves of map_s/map_t layer 1, 1/sigma
    hb_cols = []
    for s in range(n_steps):
        Fi = _leaky(F2 @ params['wc1'][s]) @ params['wc2'][s]      # (BM, feat)
        hs = Fi @ params['ws1'][s][:feat, :]                        # (BM, h)
        ht = Fi @ params['wt1'][s][:feat, :]                        # (BM, h)
        hb_cols.append(jnp.concatenate([hs, ht], axis=-1))          # (BM, 2h)
    head_bias = jnp.stack(hb_cols, axis=0)[..., None]               # (S, BM, 2h, 1)

    sigma = _elu(_relu(F2 @ params['wsc1']) @ params['wsc2']) + 1.0  # (BM, 3)
    inv_sigma = (1.0 / sigma)[..., None].astype(f32)                 # (BM, 3, 1)

    # ---- per-point weights: transpose to (out, in) and fuse the s/t heads ----
    wp1 = jnp.transpose(params['wp1'], (0, 2, 1)).astype(f32)        # (S, 2p, 3)
    wp2 = jnp.transpose(params['wp2'], (0, 2, 1)).astype(f32)        # (S, p, 2p)
    ws1p = jnp.transpose(params['ws1'][:, feat:, :], (0, 2, 1))      # (S, h, p)
    wt1p = jnp.transpose(params['wt1'][:, feat:, :], (0, 2, 1))      # (S, h, p)
    wst1 = jnp.concatenate([ws1p, wt1p], axis=1).astype(f32)         # (S, 2h, p)
    ws2t = jnp.transpose(params['ws2'], (0, 2, 1))                   # (S, 3, h)
    wt2t = jnp.transpose(params['wt2'], (0, 2, 1))                   # (S, 3, h)
    z = jnp.zeros_like(ws2t)
    wst2 = jnp.concatenate(
        [jnp.concatenate([ws2t, z], axis=2),
         jnp.concatenate([z, wt2t], axis=2)], axis=1).astype(f32)    # (S, 6, 2h)

    masks_arr = jnp.asarray(masks, dtype=f32)[..., None]             # (S, 3, 1)

    # ---- lane-dense point layout: (B*M, 3, N), points on the lane axis ----
    x_t = jnp.transpose(x.astype(f32), (0, 2, 3, 1)).reshape(BM, 3, N)

    def full(shape):
        return pl.BlockSpec(tuple(shape), lambda g, t, _n=len(shape): (0,) * _n)

    kernel = functools.partial(nvp_kernel, n_steps)

    out = pl.pallas_call(
        kernel,
        out_shape=jax.ShapeDtypeStruct((BM, 3, N), f32),
        grid=(BM, N // tile_n),
        in_specs=[
            pl.BlockSpec((1, 3, tile_n), lambda g, t: (g, 0, t)),        # x
            full(masks_arr.shape),                                       # masks
            pl.BlockSpec((n_steps, 1, 2 * hidden, 1),
                         lambda g, t: (0, g, 0, 0)),                     # head bias
            pl.BlockSpec((1, 3, 1), lambda g, t: (g, 0, 0)),             # 1/sigma
            full(wp1.shape), full(wp2.shape),
            full(wst1.shape), full(wst2.shape),
        ],
        out_specs=pl.BlockSpec((1, 3, tile_n), lambda g, t: (g, 0, t)),
        compiler_params=pltpu.CompilerParams(
            dimension_semantics=("parallel", "parallel"),
            vmem_limit_bytes=32 * 1024 * 1024),
    )(x_t, masks_arr, head_bias, inv_sigma, wp1, wp2, wst1, wst2)

    return jnp.transpose(out.reshape(B, M, 3, N), (0, 3, 1, 2))


# ---------------------------------------------------------------------------
# Deterministic parameter / mask construction (shapes follow NVP.__init__)
# ---------------------------------------------------------------------------
def init_params(key, n_layers, feat, hidden, proj):
    keys = iter(jax.random.split(key, 128))

    def lin(fan_in, fan_out):
        # torch.nn.Linear default weight bound 1/sqrt(fan_in); biases are zeroed
        # by NVP.reinit() so they are omitted entirely.
        b = float(fan_in) ** -0.5
        return jax.random.uniform(next(keys), (fan_in, fan_out), jnp.float32, -b, b)

    wc1, wc2 = [], []
    wp1, wp2, ws1, ws2, wt1, wt2 = [], [], [], [], [], []
    for _ in range(n_layers):
        c1, c2 = lin(feat, feat), lin(feat, feat)          # code projector (shared)
        for _ in range(2):                                  # layers1[i], layers2[i]
            wc1.append(c1)
            wc2.append(c2)
            wp1.append(lin(3, 2 * proj))
            wp2.append(lin(2 * proj, proj))
            ws1.append(lin(feat + proj, hidden))
            ws2.append(lin(hidden, 3))
            wt1.append(lin(feat + proj, hidden))
            wt2.append(lin(hidden, 3))

    return dict(
        wc1=jnp.stack(wc1), wc2=jnp.stack(wc2),
        wp1=jnp.stack(wp1), wp2=jnp.stack(wp2),
        ws1=jnp.stack(ws1), ws2=jnp.stack(ws2),
        wt1=jnp.stack(wt1), wt2=jnp.stack(wt2),
        wsc1=lin(feat, hidden), wsc2=lin(hidden, 3),
    )


def build_masks(n_layers):
    # deterministic stand-in for torch.randperm(3) in mask_selection
    mask_selection = []
    i = 0
    while i < n_layers:
        mask_selection += [0, 1, 2]
        i += 3
    masks = []
    for i in range(n_layers):
        m2 = [0.0, 0.0, 0.0]
        m2[mask_selection[i]] = 1.0
        m1 = tuple(1.0 - v for v in m2)
        masks.append(m1)          # layers1[i] uses mask1
        masks.append(tuple(m2))   # layers2[i] uses mask2
    return tuple(masks)


# ---------------------------------------------------------------------------
# Pure-JAX reference (same math, full arrays) for the correctness check
# ---------------------------------------------------------------------------
def nvp_forward_ref(F, x, params, masks):
    B, N, M, _ = x.shape
    feat = F.shape[-1]
    y = x
    for s in range(len(masks)):
        Fi = _leaky(F @ params['wc1'][s]) @ params['wc2'][s]          # (B,M,feat)
        Fi = jnp.broadcast_to(Fi[:, None], (B, N, M, feat))
        mask = jnp.asarray(masks[s], dtype=jnp.float32).reshape(1, 1, 1, 3)
        y1 = y * mask
        p = _relu(y1 @ params['wp1'][s]) @ params['wp2'][s]
        Fy = jnp.concatenate([Fi, p], axis=-1)
        s_out = jnp.clip(_leaky(Fy @ params['ws1'][s]) @ params['ws2'][s],
                         HT_MIN, HT_MAX)
        t_out = _leaky(Fy @ params['wt1'][s]) @ params['wt2'][s]
        y = y1 + (1.0 - mask) * ((y - t_out) * jnp.exp(-s_out))
    sigma = _elu(_relu(F @ params['wsc1']) @ params['wsc2']) + 1.0    # (B,M,3)
    return y / sigma[:, None]


if __name__ == "__main__":
    # B batches, M primitives, N sample points per primitive (the large axis).
    B, M, N = 2, 4, 1024
    FEAT, HIDDEN, PROJ, N_LAYERS = 32, 32, 16, 2

    key = jax.random.PRNGKey(0)
    kF, kx, kp = jax.random.split(key, 3)
    F = jax.random.normal(kF, (B, M, FEAT), jnp.float32)
    x = jax.random.normal(kx, (B, N, M, 3), jnp.float32)

    params = init_params(kp, N_LAYERS, FEAT, HIDDEN, PROJ)
    masks = build_masks(N_LAYERS)

    out = jax.block_until_ready(nvp_forward(F, x, params, masks, tile_n=512))

    ref = nvp_forward_ref(F, x, params, masks)
    assert out.shape == (B, N, M, 3)
    err = float(jnp.max(jnp.abs(out - ref)))
    assert jnp.allclose(out, ref, atol=1e-4, rtol=1e-4), err
    print("KERNEL_OK")
</pallas_src>

<mosaic_0001>
module attributes {stable_mosaic.version = 11 : i64} {
  func.func @nvp_kernel(%arg0: i32, %arg1: i32, %arg2: memref<1x3x512xf32, #tpu.memory_space<vmem>>, %arg3: memref<4x3x1xf32, #tpu.memory_space<vmem>>, %arg4: memref<4x1x64x1xf32, #tpu.memory_space<vmem>>, %arg5: memref<1x3x1xf32, #tpu.memory_space<vmem>>, %arg6: memref<4x32x3xf32, #tpu.memory_space<vmem>>, %arg7: memref<4x16x32xf32, #tpu.memory_space<vmem>>, %arg8: memref<4x64x16xf32, #tpu.memory_space<vmem>>, %arg9: memref<4x6x64xf32, #tpu.memory_space<vmem>>, %arg10: memref<1x3x512xf32, #tpu.memory_space<vmem>>) attributes {dimension_semantics = [#tpu.dimension_semantics<parallel>, #tpu.dimension_semantics<parallel>], iteration_bounds = array<i64: 8, 2>, scalar_prefetch = 0 : i64, scratch_operands = 0 : i64, tpu.core_type = #tpu.core_type<tc>, window_params = [{transform_indices = @transform_0, window_bounds = array<i64: 1, 3, 512>}, {pipeline_mode = #tpu.pipeline_mode<synchronous>, transform_indices = @transform_1, window_bounds = array<i64: 4, 3, 1>}, {transform_indices = @transform_2, window_bounds = array<i64: 4, 1, 64, 1>}, {transform_indices = @transform_3, window_bounds = array<i64: 1, 3, 1>}, {pipeline_mode = #tpu.pipeline_mode<synchronous>, transform_indices = @transform_4, window_bounds = array<i64: 4, 32, 3>}, {pipeline_mode = #tpu.pipeline_mode<synchronous>, transform_indices = @transform_5, window_bounds = array<i64: 4, 16, 32>}, {pipeline_mode = #tpu.pipeline_mode<synchronous>, transform_indices = @transform_6, window_bounds = array<i64: 4, 64, 16>}, {pipeline_mode = #tpu.pipeline_mode<synchronous>, transform_indices = @transform_7, window_bounds = array<i64: 4, 6, 64>}, {transform_indices = @transform_8, window_bounds = array<i64: 1, 3, 512>}]} {
    %c0 = arith.constant 0 : index
    %c0_0 = arith.constant 0 : index
    %c0_1 = arith.constant 0 : index
    %0 = vector.load %arg2[%c0, %c0_0, %c0_1] : memref<1x3x512xf32, #tpu.memory_space<vmem>>, vector<1x3x512xf32>
    %1 = vector.shape_cast %0 : vector<1x3x512xf32> to vector<3x512xf32>
    %c0_2 = arith.constant 0 : index
    %c0_3 = arith.constant 0 : index
    %c0_4 = arith.constant 0 : index
    %2 = vector.load %arg3[%c0_2, %c0_3, %c0_4] : memref<4x3x1xf32, #tpu.memory_space<vmem>>, vector<1x3x1xf32>
    %3 = vector.shape_cast %2 : vector<1x3x1xf32> to vector<3x1xf32>
    %4 = vector.broadcast %3 : vector<3x1xf32> to vector<3x512xf32>
    %5 = arith.mulf %1, %4 : vector<3x512xf32>
    %c0_5 = arith.constant 0 : index
    %c0_6 = arith.constant 0 : index
    %c0_7 = arith.constant 0 : index
    %6 = vector.load %arg7[%c0_5, %c0_6, %c0_7] : memref<4x16x32xf32, #tpu.memory_space<vmem>>, vector<1x16x32xf32>
    %7 = vector.shape_cast %6 : vector<1x16x32xf32> to vector<16x32xf32>
    %c0_8 = arith.constant 0 : index
    %c0_9 = arith.constant 0 : index
    %c0_10 = arith.constant 0 : index
    %8 = vector.load %arg6[%c0_8, %c0_9, %c0_10] : memref<4x32x3xf32, #tpu.memory_space<vmem>>, vector<1x32x3xf32>
    %9 = vector.shape_cast %8 : vector<1x32x3xf32> to vector<32x3xf32>
    %cst = arith.constant dense<0.000000e+00> : vector<32x512xf32>
    %10 = tpu.matmul %9, %5, %cst {dimension_numbers = #tpu.dot_dimension_numbers<[1], [0], [0], [1], [0, 0, 1, 1], [], []>} : vector<32x3xf32>, vector<3x512xf32>, vector<32x512xf32> -> vector<32x512xf32>
    %cst_11 = arith.constant 0.000000e+00 : f32
    %11 = vector.broadcast %cst_11 : f32 to vector<32x512xf32>
    %12 = arith.maximumf %10, %11 : vector<32x512xf32>
    %cst_12 = arith.constant dense<0.000000e+00> : vector<16x512xf32>
    %13 = tpu.matmul %7, %12, %cst_12 {dimension_numbers = #tpu.dot_dimension_numbers<[1], [0], [0], [1], [0, 0, 1, 1], [], []>} : vector<16x32xf32>, vector<32x512xf32>, vector<16x512xf32> -> vector<16x512xf32>
    %c0_13 = arith.constant 0 : index
    %c0_14 = arith.constant 0 : index
    %c0_15 = arith.constant 0 : index
    %14 = vector.load %arg8[%c0_13, %c0_14, %c0_15] : memref<4x64x16xf32, #tpu.memory_space<vmem>>, vector<1x64x16xf32>
    %15 = vector.shape_cast %14 : vector<1x64x16xf32> to vector<64x16xf32>
    %cst_16 = arith.constant dense<0.000000e+00> : vector<64x512xf32>
    %16 = tpu.matmul %15, %13, %cst_16 {dimension_numbers = #tpu.dot_dimension_numbers<[1], [0], [0], [1], [0, 0, 1, 1], [], []>} : vector<64x16xf32>, vector<16x512xf32>, vector<64x512xf32> -> vector<64x512xf32>
    %c0_17 = arith.constant 0 : index
    %c0_18 = arith.constant 0 : index
    %c0_19 = arith.constant 0 : index
    %c0_20 = arith.constant 0 : index
    %17 = vector.load %arg4[%c0_17, %c0_18, %c0_19, %c0_20] : memref<4x1x64x1xf32, #tpu.memory_space<vmem>>, vector<1x1x64x1xf32>
    %18 = vector.shape_cast %17 : vector<1x1x64x1xf32> to vector<64x1xf32>
    %19 = vector.broadcast %18 : vector<64x1xf32> to vector<64x512xf32>
    %20 = arith.addf %16, %19 : vector<64x512xf32>
    %cst_21 = arith.constant 0.000000e+00 : f32
    %21 = vector.broadcast %cst_21 : f32 to vector<64x512xf32>
    %22 = arith.cmpf oge, %20, %21 : vector<64x512xf32>
    %cst_22 = arith.constant 0.00999999977 : f32
    %23 = vector.broadcast %cst_22 : f32 to vector<64x512xf32>
    %24 = arith.mulf %23, %20 : vector<64x512xf32>
    %25 = arith.select %22, %20, %24 : vector<64x512xi1>, vector<64x512xf32>
    %c0_23 = arith.constant 0 : index
    %c0_24 = arith.constant 0 : index
    %c0_25 = arith.constant 0 : index
    %26 = vector.load %arg9[%c0_23, %c0_24, %c0_25] : memref<4x6x64xf32, #tpu.memory_space<vmem>>, vector<1x6x64xf32>
    %27 = vector.shape_cast %26 : vector<1x6x64xf32> to vector<6x64xf32>
    %cst_26 = arith.constant dense<0.000000e+00> : vector<6x512xf32>
    %28 = tpu.matmul %27, %25, %cst_26 {dimension_numbers = #tpu.dot_dimension_numbers<[1], [0], [0], [1], [0, 0, 1, 1], [], []>} : vector<6x64xf32>, vector<64x512xf32>, vector<6x512xf32> -> vector<6x512xf32>
    %29 = vector.extract_strided_slice %28 {offsets = [0, 0], sizes = [3, 512], strides = [1, 1]} : vector<6x512xf32> to vector<3x512xf32>
    %cst_27 = arith.constant -1.000000e+01 : f32
    %cst_28 = arith.constant 1.000000e+01 : f32
    %30 = vector.broadcast %cst_27 : f32 to vector<3x512xf32>
    %31 = arith.maximumf %30, %29 : vector<3x512xf32>
    %32 = vector.broadcast %cst_28 : f32 to vector<3x512xf32>
    %33 = arith.minimumf %32, %31 : vector<3x512xf32>
    %34 = vector.extract_strided_slice %28 {offsets = [3, 0], sizes = [3, 512], strides = [1, 1]} : vector<6x512xf32> to vector<3x512xf32>
    %cst_29 = arith.constant 1.000000e+00 : f32
    %35 = vector.broadcast %cst_29 : f32 to vector<3x1xf32>
    %36 = arith.subf %35, %3 : vector<3x1xf32>
    %37 = arith.subf %1, %34 : vector<3x512xf32>
    %cst_30 = arith.constant 0.000000e+00 : f32
    %38 = vector.broadcast %cst_30 : f32 to vector<3x512xf32>
    %39 = arith.subf %38, %33 : vector<3x512xf32>
    %40 = math.exp %39 : vector<3x512xf32>
    %41 = arith.mulf %37, %40 : vector<3x512xf32>
    %42 = vector.broadcast %36 : vector<3x1xf32> to vector<3x512xf32>
    %43 = arith.mulf %42, %41 : vector<3x512xf32>
    %44 = arith.addf %5, %43 : vector<3x512xf32>
    %c1 = arith.constant 1 : index
    %c0_31 = arith.constant 0 : index
    %c0_32 = arith.constant 0 : index
    %45 = vector.load %arg3[%c1, %c0_31, %c0_32] : memref<4x3x1xf32, #tpu.memory_space<vmem>>, vector<1x3x1xf32>
    %46 = vector.shape_cast %45 : vector<1x3x1xf32> to vector<3x1xf32>
    %47 = vector.broadcast %46 : vector<3x1xf32> to vector<3x512xf32>
    %48 = arith.mulf %44, %47 : vector<3x512xf32>
    %c1_33 = arith.constant 1 : index
    %c0_34 = arith.constant 0 : index
    %c0_35 = arith.constant 0 : index
    %49 = vector.load %arg7[%c1_33, %c0_34, %c0_35] : memref<4x16x32xf32, #tpu.memory_space<vmem>>, vector<1x16x32xf32>
    %50 = vector.shape_cast %49 : vector<1x16x32xf32> to vector<16x32xf32>
    %c1_36 = arith.constant 1 : index
    %c0_37 = arith.constant 0 : index
    %c0_38 = arith.constant 0 : index
    %51 = vector.load %arg6[%c1_36, %c0_37, %c0_38] : memref<4x32x3xf32, #tpu.memory_space<vmem>>, vector<1x32x3xf32>
    %52 = vector.shape_cast %51 : vector<1x32x3xf32> to vector<32x3xf32>
    %cst_39 = arith.constant dense<0.000000e+00> : vector<32x512xf32>
    %53 = tpu.matmul %52, %48, %cst_39 {dimension_numbers = #tpu.dot_dimension_numbers<[1], [0], [0], [1], [0, 0, 1, 1], [], []>} : vector<32x3xf32>, vector<3x512xf32>, vector<32x512xf32> -> vector<32x512xf32>
    %cst_40 = arith.constant 0.000000e+00 : f32
    %54 = vector.broadcast %cst_40 : f32 to vector<32x512xf32>
    %55 = arith.maximumf %53, %54 : vector<32x512xf32>
    %cst_41 = arith.constant dense<0.000000e+00> : vector<16x512xf32>
    %56 = tpu.matmul %50, %55, %cst_41 {dimension_numbers = #tpu.dot_dimension_numbers<[1], [0], [0], [1], [0, 0, 1, 1], [], []>} : vector<16x32xf32>, vector<32x512xf32>, vector<16x512xf32> -> vector<16x512xf32>
    %c1_42 = arith.constant 1 : index
    %c0_43 = arith.constant 0 : index
    %c0_44 = arith.constant 0 : index
    %57 = vector.load %arg8[%c1_42, %c0_43, %c0_44] : memref<4x64x16xf32, #tpu.memory_space<vmem>>, vector<1x64x16xf32>
    %58 = vector.shape_cast %57 : vector<1x64x16xf32> to vector<64x16xf32>
    %cst_45 = arith.constant dense<0.000000e+00> : vector<64x512xf32>
    %59 = tpu.matmul %58, %56, %cst_45 {dimension_numbers = #tpu.dot_dimension_numbers<[1], [0], [0], [1], [0, 0, 1, 1], [], []>} : vector<64x16xf32>, vector<16x512xf32>, vector<64x512xf32> -> vector<64x512xf32>
    %c1_46 = arith.constant 1 : index
    %c0_47 = arith.constant 0 : index
    %c0_48 = arith.constant 0 : index
    %c0_49 = arith.constant 0 : index
    %60 = vector.load %arg4[%c1_46, %c0_47, %c0_48, %c0_49] : memref<4x1x64x1xf32, #tpu.memory_space<vmem>>, vector<1x1x64x1xf32>
    %61 = vector.shape_cast %60 : vector<1x1x64x1xf32> to vector<64x1xf32>
    %62 = vector.broadcast %61 : vector<64x1xf32> to vector<64x512xf32>
    %63 = arith.addf %59, %62 : vector<64x512xf32>
    %cst_50 = arith.constant 0.000000e+00 : f32
    %64 = vector.broadcast %cst_50 : f32 to vector<64x512xf32>
    %65 = arith.cmpf oge, %63, %64 : vector<64x512xf32>
    %cst_51 = arith.constant 0.00999999977 : f32
    %66 = vector.broadcast %cst_51 : f32 to vector<64x512xf32>
    %67 = arith.mulf %66, %63 : vector<64x512xf32>
    %68 = arith.select %65, %63, %67 : vector<64x512xi1>, vector<64x512xf32>
    %c1_52 = arith.constant 1 : index
    %c0_53 = arith.constant 0 : index
    %c0_54 = arith.constant 0 : index
    %69 = vector.load %arg9[%c1_52, %c0_53, %c0_54] : memref<4x6x64xf32, #tpu.memory_space<vmem>>, vector<1x6x64xf32>
    %70 = vector.shape_cast %69 : vector<1x6x64xf32> to vector<6x64xf32>
    %cst_55 = arith.constant dense<0.000000e+00> : vector<6x512xf32>
    %71 = tpu.matmul %70, %68, %cst_55 {dimension_numbers = #tpu.dot_dimension_numbers<[1], [0], [0], [1], [0, 0, 1, 1], [], []>} : vector<6x64xf32>, vector<64x512xf32>, vector<6x512xf32> -> vector<6x512xf32>
    %72 = vector.extract_strided_slice %71 {offsets = [0, 0], sizes = [3, 512], strides = [1, 1]} : vector<6x512xf32> to vector<3x512xf32>
    %cst_56 = arith.constant -1.000000e+01 : f32
    %cst_57 = arith.constant 1.000000e+01 : f32
    %73 = vector.broadcast %cst_56 : f32 to vector<3x512xf32>
    %74 = arith.maximumf %73, %72 : vector<3x512xf32>
    %75 = vector.broadcast %cst_57 : f32 to vector<3x512xf32>
    %76 = arith.minimumf %75, %74 : vector<3x512xf32>
    %77 = vector.extract_strided_slice %71 {offsets = [3, 0], sizes = [3, 512], strides = [1, 1]} : vector<6x512xf32> to vector<3x512xf32>
    %cst_58 = arith.constant 1.000000e+00 : f32
    %78 = vector.broadcast %cst_58 : f32 to vector<3x1xf32>
    %79 = arith.subf %78, %46 : vector<3x1xf32>
    %80 = arith.subf %44, %77 : vector<3x512xf32>
    %cst_59 = arith.constant 0.000000e+00 : f32
    %81 = vector.broadcast %cst_59 : f32 to vector<3x512xf32>
    %82 = arith.subf %81, %76 : vector<3x512xf32>
    %83 = math.exp %82 : vector<3x512xf32>
    %84 = arith.mulf %80, %83 : vector<3x512xf32>
    %85 = vector.broadcast %79 : vector<3x1xf32> to vector<3x512xf32>
    %86 = arith.mulf %85, %84 : vector<3x512xf32>
    %87 = arith.addf %48, %86 : vector<3x512xf32>
    %c2 = arith.constant 2 : index
    %c0_60 = arith.constant 0 : index
    %c0_61 = arith.constant 0 : index
    %88 = vector.load %arg3[%c2, %c0_60, %c0_61] : memref<4x3x1xf32, #tpu.memory_space<vmem>>, vector<1x3x1xf32>
    %89 = vector.shape_cast %88 : vector<1x3x1xf32> to vector<3x1xf32>
    %90 = vector.broadcast %89 : vector<3x1xf32> to vector<3x512xf32>
    %91 = arith.mulf %87, %90 : vector<3x512xf32>
    %c2_62 = arith.constant 2 : index
    %c0_63 = arith.constant 0 : index
    %c0_64 = arith.constant 0 : index
    %92 = vector.load %arg7[%c2_62, %c0_63, %c0_64] : memref<4x16x32xf32, #tpu.memory_space<vmem>>, vector<1x16x32xf32>
    %93 = vector.shape_cast %92 : vector<1x16x32xf32> to vector<16x32xf32>
    %c2_65 = arith.constant 2 : index
    %c0_66 = arith.constant 0 : index
    %c0_67 = arith.constant 0 : index
    %94 = vector.load %arg6[%c2_65, %c0_66, %c0_67] : memref<4x32x3xf32, #tpu.memory_space<vmem>>, vector<1x32x3xf32>
    %95 = vector.shape_cast %94 : vector<1x32x3xf32> to vector<32x3xf32>
    %cst_68 = arith.constant dense<0.000000e+00> : vector<32x512xf32>
    %96 = tpu.matmul %95, %91, %cst_68 {dimension_numbers = #tpu.dot_dimension_numbers<[1], [0], [0], [1], [0, 0, 1, 1], [], []>} : vector<32x3xf32>, vector<3x512xf32>, vector<32x512xf32> -> vector<32x512xf32>
    %cst_69 = arith.constant 0.000000e+00 : f32
    %97 = vector.broadcast %cst_69 : f32 to vector<32x512xf32>
    %98 = arith.maximumf %96, %97 : vector<32x512xf32>
    %cst_70 = arith.constant dense<0.000000e+00> : vector<16x512xf32>
    %99 = tpu.matmul %93, %98, %cst_70 {dimension_numbers = #tpu.dot_dimension_numbers<[1], [0], [0], [1], [0, 0, 1, 1], [], []>} : vector<16x32xf32>, vector<32x512xf32>, vector<16x512xf32> -> vector<16x512xf32>
    %c2_71 = arith.constant 2 : index
    %c0_72 = arith.constant 0 : index
    %c0_73 = arith.constant 0 : index
    %100 = vector.load %arg8[%c2_71, %c0_72, %c0_73] : memref<4x64x16xf32, #tpu.memory_space<vmem>>, vector<1x64x16xf32>
    %101 = vector.shape_cast %100 : vector<1x64x16xf32> to vector<64x16xf32>
    %cst_74 = arith.constant dense<0.000000e+00> : vector<64x512xf32>
    %102 = tpu.matmul %101, %99, %cst_74 {dimension_numbers = #tpu.dot_dimension_numbers<[1], [0], [0], [1], [0, 0, 1, 1], [], []>} : vector<64x16xf32>, vector<16x512xf32>, vector<64x512xf32> -> vector<64x512xf32>
    %c2_75 = arith.constant 2 : index
    %c0_76 = arith.constant 0 : index
    %c0_77 = arith.constant 0 : index
    %c0_78 = arith.constant 0 : index
    %103 = vector.load %arg4[%c2_75, %c0_76, %c0_77, %c0_78] : memref<4x1x64x1xf32, #tpu.memory_space<vmem>>, vector<1x1x64x1xf32>
    %104 = vector.shape_cast %103 : vector<1x1x64x1xf32> to vector<64x1xf32>
    %105 = vector.broadcast %104 : vector<64x1xf32> to vector<64x512xf32>
    %106 = arith.addf %102, %105 : vector<64x512xf32>
    %cst_79 = arith.constant 0.000000e+00 : f32
    %107 = vector.broadcast %cst_79 : f32 to vector<64x512xf32>
    %108 = arith.cmpf oge, %106, %107 : vector<64x512xf32>
    %cst_80 = arith.constant 0.00999999977 : f32
    %109 = vector.broadcast %cst_80 : f32 to vector<64x512xf32>
    %110 = arith.mulf %109, %106 : vector<64x512xf32>
    %111 = arith.select %108, %106, %110 : vector<64x512xi1>, vector<64x512xf32>
    %c2_81 = arith.constant 2 : index
    %c0_82 = arith.constant 0 : index
    %c0_83 = arith.constant 0 : index
    %112 = vector.load %arg9[%c2_81, %c0_82, %c0_83] : memref<4x6x64xf32, #tpu.memory_space<vmem>>, vector<1x6x64xf32>
    %113 = vector.shape_cast %112 : vector<1x6x64xf32> to vector<6x64xf32>
    %cst_84 = arith.constant dense<0.000000e+00> : vector<6x512xf32>
    %114 = tpu.matmul %113, %111, %cst_84 {dimension_numbers = #tpu.dot_dimension_numbers<[1], [0], [0], [1], [0, 0, 1, 1], [], []>} : vector<6x64xf32>, vector<64x512xf32>, vector<6x512xf32> -> vector<6x512xf32>
    %115 = vector.extract_strided_slice %114 {offsets = [0, 0], sizes = [3, 512], strides = [1, 1]} : vector<6x512xf32> to vector<3x512xf32>
    %cst_85 = arith.constant -1.000000e+01 : f32
    %cst_86 = arith.constant 1.000000e+01 : f32
    %116 = vector.broadcast %cst_85 : f32 to vector<3x512xf32>
    %117 = arith.maximumf %116, %115 : vector<3x512xf32>
    %118 = vector.broadcast %cst_86 : f32 to vector<3x512xf32>
    %119 = arith.minimumf %118, %117 : vector<3x512xf32>
    %120 = vector.extract_strided_slice %114 {offsets = [3, 0], sizes = [3, 512], strides = [1, 1]} : vector<6x512xf32> to vector<3x512xf32>
    %cst_87 = arith.constant 1.000000e+00 : f32
    %121 = vector.broadcast %cst_87 : f32 to vector<3x1xf32>
    %122 = arith.subf %121, %89 : vector<3x1xf32>
    %123 = arith.subf %87, %120 : vector<3x512xf32>
    %cst_88 = arith.constant 0.000000e+00 : f32
    %124 = vector.broadcast %cst_88 : f32 to vector<3x512xf32>
    %125 = arith.subf %124, %119 : vector<3x512xf32>
    %126 = math.exp %125 : vector<3x512xf32>
    %127 = arith.mulf %123, %126 : vector<3x512xf32>
    %128 = vector.broadcast %122 : vector<3x1xf32> to vector<3x512xf32>
    %129 = arith.mulf %128, %127 : vector<3x512xf32>
    %130 = arith.addf %91, %129 : vector<3x512xf32>
    %c3 = arith.constant 3 : index
    %c0_89 = arith.constant 0 : index
    %c0_90 = arith.constant 0 : index
    %131 = vector.load %arg3[%c3, %c0_89, %c0_90] : memref<4x3x1xf32, #tpu.memory_space<vmem>>, vector<1x3x1xf32>
    %132 = vector.shape_cast %131 : vector<1x3x1xf32> to vector<3x1xf32>
    %133 = vector.broadcast %132 : vector<3x1xf32> to vector<3x512xf32>
    %134 = arith.mulf %130, %133 : vector<3x512xf32>
    %c3_91 = arith.constant 3 : index
    %c0_92 = arith.constant 0 : index
    %c0_93 = arith.constant 0 : index
    %135 = vector.load %arg7[%c3_91, %c0_92, %c0_93] : memref<4x16x32xf32, #tpu.memory_space<vmem>>, vector<1x16x32xf32>
    %136 = vector.shape_cast %135 : vector<1x16x32xf32> to vector<16x32xf32>
    %c3_94 = arith.constant 3 : index
    %c0_95 = arith.constant 0 : index
    %c0_96 = arith.constant 0 : index
    %137 = vector.load %arg6[%c3_94, %c0_95, %c0_96] : memref<4x32x3xf32, #tpu.memory_space<vmem>>, vector<1x32x3xf32>
    %138 = vector.shape_cast %137 : vector<1x32x3xf32> to vector<32x3xf32>
    %cst_97 = arith.constant dense<0.000000e+00> : vector<32x512xf32>
    %139 = tpu.matmul %138, %134, %cst_97 {dimension_numbers = #tpu.dot_dimension_numbers<[1], [0], [0], [1], [0, 0, 1, 1], [], []>} : vector<32x3xf32>, vector<3x512xf32>, vector<32x512xf32> -> vector<32x512xf32>
    %cst_98 = arith.constant 0.000000e+00 : f32
    %140 = vector.broadcast %cst_98 : f32 to vector<32x512xf32>
    %141 = arith.maximumf %139, %140 : vector<32x512xf32>
    %cst_99 = arith.constant dense<0.000000e+00> : vector<16x512xf32>
    %142 = tpu.matmul %136, %141, %cst_99 {dimension_numbers = #tpu.dot_dimension_numbers<[1], [0], [0], [1], [0, 0, 1, 1], [], []>} : vector<16x32xf32>, vector<32x512xf32>, vector<16x512xf32> -> vector<16x512xf32>
    %c3_100 = arith.constant 3 : index
    %c0_101 = arith.constant 0 : index
    %c0_102 = arith.constant 0 : index
    %143 = vector.load %arg8[%c3_100, %c0_101, %c0_102] : memref<4x64x16xf32, #tpu.memory_space<vmem>>, vector<1x64x16xf32>
    %144 = vector.shape_cast %143 : vector<1x64x16xf32> to vector<64x16xf32>
    %cst_103 = arith.constant dense<0.000000e+00> : vector<64x512xf32>
    %145 = tpu.matmul %144, %142, %cst_103 {dimension_numbers = #tpu.dot_dimension_numbers<[1], [0], [0], [1], [0, 0, 1, 1], [], []>} : vector<64x16xf32>, vector<16x512xf32>, vector<64x512xf32> -> vector<64x512xf32>
    %c3_104 = arith.constant 3 : index
    %c0_105 = arith.constant 0 : index
    %c0_106 = arith.constant 0 : index
    %c0_107 = arith.constant 0 : index
    %146 = vector.load %arg4[%c3_104, %c0_105, %c0_106, %c0_107] : memref<4x1x64x1xf32, #tpu.memory_space<vmem>>, vector<1x1x64x1xf32>
    %147 = vector.shape_cast %146 : vector<1x1x64x1xf32> to vector<64x1xf32>
    %148 = vector.broadcast %147 : vector<64x1xf32> to vector<64x512xf32>
    %149 = arith.addf %145, %148 : vector<64x512xf32>
    %cst_108 = arith.constant 0.000000e+00 : f32
    %150 = vector.broadcast %cst_108 : f32 to vector<64x512xf32>
    %151 = arith.cmpf oge, %149, %150 : vector<64x512xf32>
    %cst_109 = arith.constant 0.00999999977 : f32
    %152 = vector.broadcast %cst_109 : f32 to vector<64x512xf32>
    %153 = arith.mulf %152, %149 : vector<64x512xf32>
    %154 = arith.select %151, %149, %153 : vector<64x512xi1>, vector<64x512xf32>
    %c3_110 = arith.constant 3 : index
    %c0_111 = arith.constant 0 : index
    %c0_112 = arith.constant 0 : index
    %155 = vector.load %arg9[%c3_110, %c0_111, %c0_112] : memref<4x6x64xf32, #tpu.memory_space<vmem>>, vector<1x6x64xf32>
    %156 = vector.shape_cast %155 : vector<1x6x64xf32> to vector<6x64xf32>
    %cst_113 = arith.constant dense<0.000000e+00> : vector<6x512xf32>
    %157 = tpu.matmul %156, %154, %cst_113 {dimension_numbers = #tpu.dot_dimension_numbers<[1], [0], [0], [1], [0, 0, 1, 1], [], []>} : vector<6x64xf32>, vector<64x512xf32>, vector<6x512xf32> -> vector<6x512xf32>
    %158 = vector.extract_strided_slice %157 {offsets = [0, 0], sizes = [3, 512], strides = [1, 1]} : vector<6x512xf32> to vector<3x512xf32>
    %cst_114 = arith.constant -1.000000e+01 : f32
    %cst_115 = arith.constant 1.000000e+01 : f32
    %159 = vector.broadcast %cst_114 : f32 to vector<3x512xf32>
    %160 = arith.maximumf %159, %158 : vector<3x512xf32>
    %161 = vector.broadcast %cst_115 : f32 to vector<3x512xf32>
    %162 = arith.minimumf %161, %160 : vector<3x512xf32>
    %163 = vector.extract_strided_slice %157 {offsets = [3, 0], sizes = [3, 512], strides = [1, 1]} : vector<6x512xf32> to vector<3x512xf32>
    %cst_116 = arith.constant 1.000000e+00 : f32
    %164 = vector.broadcast %cst_116 : f32 to vector<3x1xf32>
    %165 = arith.subf %164, %132 : vector<3x1xf32>
    %166 = arith.subf %130, %163 : vector<3x512xf32>
    %cst_117 = arith.constant 0.000000e+00 : f32
    %167 = vector.broadcast %cst_117 : f32 to vector<3x512xf32>
    %168 = arith.subf %167, %162 : vector<3x512xf32>
    %169 = math.exp %168 : vector<3x512xf32>
    %170 = arith.mulf %166, %169 : vector<3x512xf32>
    %171 = vector.broadcast %165 : vector<3x1xf32> to vector<3x512xf32>
    %172 = arith.mulf %171, %170 : vector<3x512xf32>
    %173 = arith.addf %134, %172 : vector<3x512xf32>
    %c0_118 = arith.constant 0 : index
    %c0_119 = arith.constant 0 : index
    %c0_120 = arith.constant 0 : index
    %174 = vector.load %arg5[%c0_118, %c0_119, %c0_120] : memref<1x3x1xf32, #tpu.memory_space<vmem>>, vector<1x3x1xf32>
    %175 = vector.shape_cast %174 : vector<1x3x1xf32> to vector<3x1xf32>
    %176 = vector.broadcast %175 : vector<3x1xf32> to vector<3x512xf32>
    %177 = arith.mulf %173, %176 : vector<3x512xf32>
    %c0_121 = arith.constant 0 : index
    %c0_122 = arith.constant 0 : index
    %c0_123 = arith.constant 0 : index
    %178 = vector.load %arg10[%c0_121, %c0_122, %c0_123] : memref<1x3x512xf32, #tpu.memory_space<vmem>>, vector<1x3x512xf32>
    %179 = vector.shape_cast %178 : vector<1x3x512xf32> to vector<3x512xf32>
    %180 = vector.shape_cast %177 : vector<3x512xf32> to vector<1x3x512xf32>
    tpu.vector_store %arg10[%c0_121, %c0_122, %c0_123], %180 {strides = array<i32>} : memref<1x3x512xf32, #tpu.memory_space<vmem>>, vector<1x3x512xf32>,
    return
  }
  func.func @transform_0(%arg0: i32, %arg1: i32) -> (i32, i32, i32) {
    %c0_i32 = arith.constant 0 : i32
    %c0_i32_0 = arith.constant 0 : i32
    return %arg0, %c0_i32, %arg1 : i32, i32, i32
  }
  func.func @transform_1(%arg0: i32, %arg1: i32) -> (i32, i32, i32) {
    %c0_i32 = arith.constant 0 : i32
    %c0_i32_0 = arith.constant 0 : i32
    %c0_i32_1 = arith.constant 0 : i32
    %c0_i32_2 = arith.constant 0 : i32
    return %c0_i32, %c0_i32_0, %c0_i32_1 : i32, i32, i32
  }
  func.func @transform_2(%arg0: i32, %arg1: i32) -> (i32, i32, i32, i32) {
    %c0_i32 = arith.constant 0 : i32
    %c0_i32_0 = arith.constant 0 : i32
    %c0_i32_1 = arith.constant 0 : i32
    %c0_i32_2 = arith.constant 0 : i32
    return %c0_i32, %arg0, %c0_i32_0, %c0_i32_1 : i32, i32, i32, i32
  }
  func.func @transform_3(%arg0: i32, %arg1: i32) -> (i32, i32, i32) {
    %c0_i32 = arith.constant 0 : i32
    %c0_i32_0 = arith.constant 0 : i32
    %c0_i32_1 = arith.constant 0 : i32
    return %arg0, %c0_i32, %c0_i32_0 : i32, i32, i32
  }
  func.func @transform_4(%arg0: i32, %arg1: i32) -> (i32, i32, i32) {
    %c0_i32 = arith.constant 0 : i32
    %c0_i32_0 = arith.constant 0 : i32
    %c0_i32_1 = arith.constant 0 : i32
    %c0_i32_2 = arith.constant 0 : i32
    return %c0_i32, %c0_i32_0, %c0_i32_1 : i32, i32, i32
  }
  func.func @transform_5(%arg0: i32, %arg1: i32) -> (i32, i32, i32) {
    %c0_i32 = arith.constant 0 : i32
    %c0_i32_0 = arith.constant 0 : i32
    %c0_i32_1 = arith.constant 0 : i32
    %c0_i32_2 = arith.constant 0 : i32
    return %c0_i32, %c0_i32_0, %c0_i32_1 : i32, i32, i32
  }
  func.func @transform_6(%arg0: i32, %arg1: i32) -> (i32, i32, i32) {
    %c0_i32 = arith.constant 0 : i32
    %c0_i32_0 = arith.constant 0 : i32
    %c0_i32_1 = arith.constant 0 : i32
    %c0_i32_2 = arith.constant 0 : i32
    return %c0_i32, %c0_i32_0, %c0_i32_1 : i32, i32, i32
  }
  func.func @transform_7(%arg0: i32, %arg1: i32) -> (i32, i32, i32) {
    %c0_i32 = arith.constant 0 : i32
    %c0_i32_0 = arith.constant 0 : i32
    %c0_i32_1 = arith.constant 0 : i32
    %c0_i32_2 = arith.constant 0 : i32
    return %c0_i32, %c0_i32_0, %c0_i32_1 : i32, i32, i32
  }
  func.func @transform_8(%arg0: i32, %arg1: i32) -> (i32, i32, i32) {
    %c0_i32 = arith.constant 0 : i32
    %c0_i32_0 = arith.constant 0 : i32
    return %arg0, %c0_i32, %arg1 : i32, i32, i32
  }
}

</mosaic_0001>

<bundles_post_ra>
// kernel: tpu_custom_call.1
= control target key start
LH: loop header
LB: loop body
LE: loop exit
PB: predicated region body
PF: predicated region fallthrough
CT: control target
= control target key end

     0   :  { %s5247_s27 = smov 0   ;;  %s5249_s28 = smov 0   ;;  %s6955_s0 = inlined_call_operand.vmem [shape: f32[8,3,1024], index: 0, kind: input, shape index: {}]   ;;  %s6956_s1 = inlined_call_operand.vmem [shape: f32[4,3,1], index: 1, kind: input, shape index: {}]   ;;  %s6957_s2 = inlined_call_operand.vmem [shape: f32[4,8,64,1], index: 2, kind: input, shape index: {}]   ;;  %s6958_s3 = inlined_call_operand.vmem [shape: f32[8,3,1], index: 3, kind: input, shape index: {}]   ;;  %s6959_s4 = inlined_call_operand.vmem [shape: f32[4,32,3], index: 4, kind: input, shape index: {}]   ;;  %s6960_s5 = inlined_call_operand.vmem [shape: f32[4,16,32], index: 5, kind: input, shape index: {}]   ;;  %s6961_s6 = inlined_call_operand.vmem [shape: f32[4,64,16], index: 6, kind: input, shape index: {}]   ;;  %s6962_s7 = inlined_call_operand.vmem [shape: f32[4,6,64], index: 7, kind: input, shape index: {}]   ;;  %s6963_s8 = inlined_call_operand.vmem [shape: f32[8,3,1024], index: 8, kind: output, shape index: {}]  }
   0x1   :  { %s5251_s29 = smov 0   ;;  %s5253_s30 = smov 0  }
   0x2   :  { %s5255_s9 = smov 0   ;;  %s5257_s10 = smov 0  }
   0x3   :  { %s5259_s11 = smov 0  }
   0x4 LB: > { %s27_s12 = sadd.s32 1, %s5189_s9  ;;  %s30_s13 = sadd.s32 1, %s5193_s10  ;;  %s5197_s11 = sphi %s5259_s11, %s18_s11   ;;  %s5193_s10 = sphi %s5257_s10, %s7092_s10   ;;  %s5189_s9 = sphi %s5255_s9, %s7091_s9   ;;  %s5185_s30 = sphi %s5253_s30, %s7090_s30   ;;  %s5181_s29 = sphi %s5251_s29, %s7089_s29   ;;  %s5177_s28 = sphi %s5249_s28, %s7088_s28   ;;  %s5173_s27 = sphi %s5247_s27, %s7087_s27  }
   0x5   : > { %p28_p0 = scmp.ge.s32.totalorder %s27_s12, 2  ;;  %p93_p1 = scmp.ne.s32.totalorder %s5177_s28, %s5173_s27 }
   0x6   : > { %p94_p2 = scmp.eq.s32.totalorder %s5197_s11, 0  ;;  %s86_s15 = sadd.s32 1, %s5177_s28 }
   0x7   : > { %s7094_s12 = smov (%p28_p0, %s27_s12), 0  ;;  %s7096_s13 = smov (!%p28_p0, %s30_s13), %s5193_s10 }
   0x8   : > { %p95_p3 = por %p94_p2, %p93_p1  ;;  %p32_p4 = scmp.ge.s32.totalorder %s7096_s13, 8 }
   0x9   : > { %p4802_p6 = scmp.ge.s32.totalorder %s5197_s11, 16 }
   0xa   : > { %s7098_s13 = smov (%p32_p4, %s7096_s13), 0 }
   0xb   : > { %s83_s14 = ssub.s32 %s5193_s10, %s7098_s13  ;;  %272 = sbr.rel (%p4802_p6) target bundleno = 36 (0x24), region = 36 }
   0xc   : > { %p84_p5 = scmp.eq.s32.totalorder %s83_s14, 0 }
   0xe   : > { %s5296_s16 = scalar_select %p84_p5, %s5177_s28, %s86_s15  }
  0x10   : > { %288 = sbr.rel (!%p95_p3) target bundleno = 36 (0x24), region = 44  ;;  %s290_s17 = sand.u32 (%p95_p3), 1, %s5177_s28  }
  0x11   : > { %s5049_s18 = sshll.u32 (%p95_p3), %s5193_s10, 6  ;;  %s4803_s19 = sshll.u32 (%p95_p3), %s290_s17, 8 }
  0x12   : > { %s5304_s22 = scalar_lea.vmem (%p95_p3), %s6957_s2, %s5049_s18  ;;  %s5309_s23 = scalar_lea.vmem (%p95_p3), [#allocation2], %s4803_s19 }
  0x13   : > { %v386_v0 = vld [vmem:[%s5304_s22] sm:$0xff] (%p95_p3)  ;;  %v388_v1 = vld [vmem:[%s5304_s22 + $0x8] sm:$0xff] (%p95_p3)  ;;  %v390_v2 = vld [vmem:[%s5304_s22 + $0x10] sm:$0xff] (%p95_p3) }
  0x14   : > { %387 = vst [vmem:[%s5309_s23] sm:$0xff] (%p95_p3), %v386_v0  ;;  %389 = vst [vmem:[%s5309_s23 + $0x8] sm:$0xff] (%p95_p3), %v388_v1  ;;  %v392_v3 = vld [vmem:[%s5304_s22 + $0x18] sm:$0xff] (%p95_p3)  ;;  %v394_v4 = vld [vmem:[%s5304_s22 + $0x20] sm:$0xff] (%p95_p3) }
  0x15   : > { %391 = vst [vmem:[%s5309_s23 + $0x10] sm:$0xff] %v390_v2  ;;  %v396_v5 = vld [vmem:[%s5304_s22 + $0x28] sm:$0xff]  ;;  %393 = vst [vmem:[%s5309_s23 + $0x18] sm:$0xff] %v392_v3  ;;  %v398_v6 = vld [vmem:[%s5304_s22 + $0x30] sm:$0xff] }
  0x16   : > { %395 = vst [vmem:[%s5309_s23 + $0x20] sm:$0xff] %v394_v4  ;;  %397 = vst [vmem:[%s5309_s23 + $0x28] sm:$0xff] %v396_v5  ;;  %v400_v7 = vld [vmem:[%s5304_s22 + $0x38] sm:$0xff]  ;;  %v402_v8 = vld [vmem:[%s5304_s22 + $0x200] sm:$0xff] }
  0x17   : > { %399 = vst [vmem:[%s5309_s23 + $0x30] sm:$0xff] %v398_v6  ;;  %401 = vst [vmem:[%s5309_s23 + $0x38] sm:$0xff] %v400_v7  ;;  %v404_v9 = vld [vmem:[%s5304_s22 + $0x208] sm:$0xff]  ;;  %v406_v10 = vld [vmem:[%s5304_s22 + $0x210] sm:$0xff] }
  0x18   : > { %403 = vst [vmem:[%s5309_s23 + $0x40] sm:$0xff] %v402_v8  ;;  %v408_v11 = vld [vmem:[%s5304_s22 + $0x218] sm:$0xff]  ;;  %405 = vst [vmem:[%s5309_s23 + $0x48] sm:$0xff] %v404_v9  ;;  %v410_v12 = vld [vmem:[%s5304_s22 + $0x220] sm:$0xff] }
  0x19   : > { %407 = vst [vmem:[%s5309_s23 + $0x50] sm:$0xff] %v406_v10  ;;  %409 = vst [vmem:[%s5309_s23 + $0x58] sm:$0xff] %v408_v11  ;;  %v412_v13 = vld [vmem:[%s5304_s22 + $0x228] sm:$0xff]  ;;  %v414_v14 = vld [vmem:[%s5304_s22 + $0x230] sm:$0xff] }
  0x1a   : > { %411 = vst [vmem:[%s5309_s23 + $0x60] sm:$0xff] %v410_v12  ;;  %413 = vst [vmem:[%s5309_s23 + $0x68] sm:$0xff] %v412_v13  ;;  %v416_v15 = vld [vmem:[%s5304_s22 + $0x238] sm:$0xff]  ;;  %v418_v16 = vld [vmem:[%s5304_s22 + $0x400] sm:$0xff] }
  0x1b   : > { %415 = vst [vmem:[%s5309_s23 + $0x70] sm:$0xff] %v414_v14  ;;  %v420_v17 = vld [vmem:[%s5304_s22 + $0x408] sm:$0xff]  ;;  %417 = vst [vmem:[%s5309_s23 + $0x78] sm:$0xff] %v416_v15  ;;  %v422_v18 = vld [vmem:[%s5304_s22 + $0x410] sm:$0xff] }
  0x1c   : > { %419 = vst [vmem:[%s5309_s23 + $0x80] sm:$0xff] %v418_v16  ;;  %421 = vst [vmem:[%s5309_s23 + $0x88] sm:$0xff] %v420_v17  ;;  %v424_v19 = vld [vmem:[%s5304_s22 + $0x418] sm:$0xff]  ;;  %v426_v20 = vld [vmem:[%s5304_s22 + $0x420] sm:$0xff] }
  0x1d   : > { %423 = vst [vmem:[%s5309_s23 + $0x90] sm:$0xff] %v422_v18  ;;  %425 = vst [vmem:[%s5309_s23 + $0x98] sm:$0xff] %v424_v19  ;;  %v428_v21 = vld [vmem:[%s5304_s22 + $0x428] sm:$0xff]  ;;  %v430_v22 = vld [vmem:[%s5304_s22 + $0x430] sm:$0xff] }
  0x1e   : > { %427 = vst [vmem:[%s5309_s23 + $0xa0] sm:$0xff] %v426_v20  ;;  %v432_v23 = vld [vmem:[%s5304_s22 + $0x438] sm:$0xff]  ;;  %429 = vst [vmem:[%s5309_s23 + $0xa8] sm:$0xff] %v428_v21  ;;  %v434_v24 = vld [vmem:[%s5304_s22 + $0x600] sm:$0xff] }
  0x1f   : > { %431 = vst [vmem:[%s5309_s23 + $0xb0] sm:$0xff] %v430_v22  ;;  %433 = vst [vmem:[%s5309_s23 + $0xb8] sm:$0xff] %v432_v23  ;;  %v436_v25 = vld [vmem:[%s5304_s22 + $0x608] sm:$0xff]  ;;  %v438_v26 = vld [vmem:[%s5304_s22 + $0x610] sm:$0xff] }
  0x20   : > { %435 = vst [vmem:[%s5309_s23 + $0xc0] sm:$0xff] %v434_v24  ;;  %437 = vst [vmem:[%s5309_s23 + $0xc8] sm:$0xff] %v436_v25  ;;  %v440_v27 = vld [vmem:[%s5304_s22 + $0x618] sm:$0xff]  ;;  %v442_v28 = vld [vmem:[%s5304_s22 + $0x620] sm:$0xff] }
  0x21   : > { %439 = vst [vmem:[%s5309_s23 + $0xd0] sm:$0xff] %v438_v26  ;;  %v444_v29 = vld [vmem:[%s5304_s22 + $0x628] sm:$0xff]  ;;  %441 = vst [vmem:[%s5309_s23 + $0xd8] sm:$0xff] %v440_v27  ;;  %v446_v30 = vld [vmem:[%s5304_s22 + $0x630] sm:$0xff] }
  0x22   : > { %443 = vst [vmem:[%s5309_s23 + $0xe0] sm:$0xff] %v442_v28  ;;  %445 = vst [vmem:[%s5309_s23 + $0xe8] sm:$0xff] %v444_v29  ;;  %v448_v31 = vld [vmem:[%s5304_s22 + $0x638] sm:$0xff] }
  0x23   : > { %447 = vst [vmem:[%s5309_s23 + $0xf0] sm:$0xff] %v446_v30  ;;  %449 = vst [vmem:[%s5309_s23 + $0xf8] sm:$0xff] %v448_v31 }
  0x24 PF: > { %p4806_p7 = scmp.ge.s32.totalorder %s5197_s11, 1  ;;  %p461_p8 = scmp.lt.s32.totalorder %s5197_s11, 17 }
  0x26   : > { %p462_p9 = pnand %p4806_p7, %p461_p8 }
  0x28   : > { %465 = sbr.rel (%p462_p9) target bundleno = 3765 (0xeb5), region = 86 }
  0x2d   : > { %v5377_v32 = vld [vmem:[%s6956_s1] sm:$0x7]  ;;  %s468_s26 = sand.u32 1, %s5173_s27   ;;  %v5199_v33 = vmov 0   ;;  %v6964_v35 = vmov 0.0   ;;  %p519_p10 = scmp.lt.s32.totalorder %s5185_s30, 7  ;;  %v552_v57 = vlaneseq }
  0x2e   : > { %5109 = vset.pattern.permute.xlu0 %v5199_v33  ;;  %s4807_s14 = sshll.u32 %s468_s26, 8  ;;  %5110 = vset.pattern.permute.xlu1 %v5199_v33  ;;  %v5392_v39 = vld [vmem:[%s6956_s1 + $0x4] sm:$0x7]  ;;  %v5402_v44 = vld [vmem:[%s6956_s1 + $0x8] sm:$0x7]  ;;  %s4808_s26 = sshll.u32 %s5181_s29, 2 }
  0x2f   : > { %547 = vperm.xlu0 %5109, %v5377_v32   ;;  %s5381_s15 = scalar_lea.vmem [#allocation2], %s4807_s14  ;;  %655 = vmatprep.mubr.f32.mxu0 %v6964_v35  ;;  %v5412_v49 = vld [vmem:[%s6956_s1 + $0xc] sm:$0x7]  ;;  %s7100_s30 = smov (!%p519_p10, %s5185_s30), 7  ;;  %v5201_v55 = vmov 839922192  }
  0x30   : > { %v961_v34 = vld [vmem:[%s5381_s15 + $0x38] sm:$0xff]  ;;  %744 = vmatprep.mubr.f32.mxu1 %v6964_v35  ;;  %v958_v36 = vld [vmem:[%s5381_s15 + $0x20] sm:$0xff]  ;;  %v956_v37 = vld [vmem:[%s5381_s15 + $0x10] sm:$0xff]  ;;  %s4811_s22 = sshll.u32 %s7100_s30, 2  ;;  %p521_p11 = scmp.lt.s32.totalorder %s4808_s26, 7  ;;  %v550_v56 = vunpack.c.l.s4 %v5201_v55  ;;  %v553_v59 = vshrl.u32 %v552_v57, 7 }
  0x31   : > { %v954_v38 = vld [vmem:[%s5381_s15] sm:$0xff]  ;;  %v4892_v40 = vld [vmem:[%s5381_s15 + $0x70] sm:$0xff]  ;;  %s531_s25 = scalar_lea.vmem %s6958_s3, %s4811_s22  ;;  %s4809_s14 = sshll.u32 %s7100_s30, 3  ;;  %vm6975_vm0 = vcmask 1042432   ;;  %vm6974_vm1 = vcmask 23552   ;;  %v562_v6 = vld [vmem:[%s6959_s4 + $0x8] sm:$0xff] }
  0x32   : > { %v4890_v41 = vld [vmem:[%s5381_s15 + $0x60] sm:$0xff]  ;;  %v4888_v42 = vld [vmem:[%s5381_s15 + $0x50] sm:$0xff]  ;;  %s7102_s26 = smov (!%p521_p11, %s4808_s26), 7  ;;  %v551_v58 = vunpack.c.0.s8 %v550_v56  ;;  %v564_v8 = vld [vmem:[%s6959_s4 + $0x18] sm:$0xff]  ;;  %vm6973_vm2 = vcmask 261120   ;;  %v2536_v57 = vsub.f32 1.0, %v5392_v39 }
  0x33   : > { %999 = vperm.xlu0 %5109, %v961_v34   ;;  %v4886_v43 = vld [vmem:[%s5381_s15 + $0x40] sm:$0xff]  ;;  %v4956_v45 = vld [vmem:[%s5381_s15 + $0xb0] sm:$0xff]  ;;  %s5425_s27 = sadd.s32 %s4809_s14, %s7102_s26  ;;  %v4889_v55 = vld [vmem:[%s5381_s15 + $0x58] sm:$0xff]  ;;  %vm6972_vm3 = vcmask 130048  }
  0x34   : > { %v4954_v46 = vld [vmem:[%s5381_s15 + $0xa0] sm:$0xff]  ;;  %v4952_v47 = vld [vmem:[%s5381_s15 + $0x90] sm:$0xff]  ;;  %s4810_s17 = sshll.u32 %s5425_s27, 2  ;;  %v5428_v60 = vsub.s32 %v551_v58, %v553_v59  ;;  %v4887_v56 = vld [vmem:[%s5381_s15 + $0x48] sm:$0xff] }
  0x35   : > { %v4950_v48 = vld [vmem:[%s5381_s15 + $0x80] sm:$0xff]  ;;  %v5020_v50 = vld [vmem:[%s5381_s15 + $0xf0] sm:$0xff]  ;;  %s526_s29 = scalar_lea.vmem %s6955_s0, %s4810_s17  ;;  %v4957_v58 = vld [vmem:[%s5381_s15 + $0xb8] sm:$0xff]  ;;  %s540_s24 = scalar_lea.vmem %s6963_s8, %s4810_s17 }
  0x36   : > { %v5018_v51 = vld [vmem:[%s5381_s15 + $0xe0] sm:$0xff]  ;;  %v5016_v52 = vld [vmem:[%s5381_s15 + $0xd0] sm:$0xff]  ;;  %6979 = vst [vmem:[#allocation3_spill] sm:$0xff] %v5428_v60  ;;  %v5437_v63 = vld [vmem:[%s526_s29 + $0x8] sm:$0x77] }
  0x37   : > { %984 = vperm.xlu0 %5109, %v958_v36   ;;  %v5014_v53 = vld [vmem:[%s5381_s15 + $0xc0] sm:$0xff]  ;;  %6981 = vst [vmem:[#allocation5_spill] sm:$0xff] %v5437_v63  ;;  %v563_v7 = vld [vmem:[%s6959_s4 + $0x10] sm:$0xff]  ;;  %v4953_v59 = vld [vmem:[%s5381_s15 + $0x98] sm:$0xff] }
  0x38   : > { %v4662_v54 = vld [vmem:[%s531_s25] sm:$0x7] }
  0x39   : > { %v5435_v62 = vld [vmem:[%s526_s29] sm:$0x77] }
  0x3a   : > { %6980 = vst [vmem:[#allocation4_spill] sm:$0xff] %v5435_v62  ;;  %v561_v5 = vld [vmem:[%s6959_s4] sm:$0xff] }
  0x3b   : > { %974 = vperm.xlu0 %5109, %v956_v37  }
  0x3f   : > { %964 = vperm.xlu0 %5109, %v954_v38  }
  0x43   : > { %1579 = vperm.xlu0 %5109, %v5392_v39   ;;  %v5017_v39 = vld [vmem:[%s5381_s15 + $0xd8] sm:$0xff] }
  0x47   : > { %2027 = vperm.xlu0 %5109, %v4892_v40  }
  0x4b   : > { %2017 = vperm.xlu0 %5109, %v4890_v41  }
  0x4f   : > { %2007 = vperm.xlu0 %5109, %v4888_v42  }
  0x53   : > { %1997 = vperm.xlu0 %5109, %v4886_v43  }
  0x57   : > { %2608 = vperm.xlu0 %5109, %v5402_v44  }
  0x5b   : > { %3056 = vperm.xlu0 %5109, %v4956_v45   ;;  %v559_v45 = vld [vmem:[%s6960_s5] sm:$0xff] }
  0x5f   : > { %3046 = vperm.xlu0 %5109, %v4954_v46   ;;  %v560_v46 = vld [vmem:[%s6960_s5 + $0x8] sm:$0xff] }
  0x63   : > { %3036 = vperm.xlu0 %5109, %v4952_v47   ;;  %v960_v47 = vld [vmem:[%s5381_s15 + $0x30] sm:$0xff] }
  0x64   : > { %994 = vperm.xlu1 %5110, %v960_v47  }
  0x67   : > { %3026 = vperm.xlu0 %5109, %v4950_v48   ;;  %v959_v48 = vld [vmem:[%s5381_s15 + $0x28] sm:$0xff] }
  0x68   : > { %989 = vperm.xlu1 %5110, %v959_v48  }
  0x6b   : > { %3637 = vperm.xlu0 %5109, %v5412_v49  }
  0x6f   : > { %4085 = vperm.xlu0 %5109, %v5020_v50   ;;  %v957_v50 = vld [vmem:[%s5381_s15 + $0x18] sm:$0xff] }
  0x70   : > { %979 = vperm.xlu1 %5110, %v957_v50  }
  0x73   : > { %4075 = vperm.xlu0 %5109, %v5018_v51   ;;  %v955_v51 = vld [vmem:[%s5381_s15 + $0x8] sm:$0xff] }
  0x74   : > { %969 = vperm.xlu1 %5110, %v955_v51  }
  0x77   : > { %4065 = vperm.xlu0 %5109, %v5016_v52   ;;  %v1504_v52 = vsub.f32 1.0, %v5377_v32  ;;  %v4955_v32 = vld [vmem:[%s5381_s15 + $0xa8] sm:$0xff] }
  0x79   : > { %1552 = vperm.xlu1 %5110, %v1504_v52  }
  0x7b   : > { %4055 = vperm.xlu0 %5109, %v5014_v53   ;;  %v4893_v53 = vld [vmem:[%s5381_s15 + $0x78] sm:$0xff] }
  0x7d   : > { %2032 = vperm.xlu1 %5110, %v4893_v53  }
  0x7f   : > { %4665 = vperm.xlu0 %5109, %v4662_v54   ;;  %v4891_v54 = vld [vmem:[%s5381_s15 + $0x68] sm:$0xff] }
  0x81   : > { %2022 = vperm.xlu1 %5110, %v4891_v54  }
  0x85   : > { %2012 = vperm.xlu1 %5110, %v4889_v55  }
  0x89   : > { %2002 = vperm.xlu1 %5110, %v4887_v56  }
  0x8d   : > { %2581 = vperm.xlu1 %5110, %v2536_v57  }
  0x91   : > { %3061 = vperm.xlu1 %5110, %v4957_v58  }
  0x95   : > { %3051 = vperm.xlu1 %5110, %v4955_v32  }
  0x99   : > { %3041 = vperm.xlu1 %5110, %v4953_v59  }
  0xaa   : > { %v548_v61 = vpop.permute.xlu0 %547 }
  0xab   : > { %v555_v0 = vrot.slane %v548_v61, %v5428_v60  ;;  %v4951_v61 = vld [vmem:[%s5381_s15 + $0x88] sm:$0xff] }
  0xac   : > { %3031 = vperm.xlu1 %5110, %v4951_v61  }
  0xad   : > { %v5441_v1 = vmul.f32 %v555_v0, %v5435_v62  ;;  %v5444_v2 = vmul.f32 %v555_v0, %v5437_v63  ;;  %v3565_v0 = vsub.f32 1.0, %v5402_v44 }
  0xaf   : > { %6982 = vst [vmem:[#allocation6_spill] sm:$0xff] %v5441_v1  ;;  %6983 = vst [vmem:[#allocation7_spill] sm:$0xff] %v5444_v2  ;;  %v567_v3 = vcombine.high %v5441_v1, %v5441_v1  ;;  %v568_v4 = vcombine.high %v5444_v2, %v5444_v2 }
  0xb0   : > { %3610 = vperm.xlu1 %5110, %v3565_v0  }
  0xb1   : > { %4815 = vmatprep.subr.msk.mxu0 %vm6975_vm0, %v567_v3  ;;  %4821 = vmatprep.subr.msk.mxu1 %vm6975_vm0, %v568_v4  ;;  %v5021_v3 = vld [vmem:[%s5381_s15 + $0xf8] sm:$0xff]  ;;  %v5019_v4 = vld [vmem:[%s5381_s15 + $0xe8] sm:$0xff] }
  0xb2   : > { %4816 = vmatpush1.msk.msra.mxu0 %vm6975_vm0, %v5441_v1  ;;  %4822 = vmatpush1.msk.msra.mxu1 %vm6975_vm0, %v5444_v2 }
  0xb3   : > { %4817 = vmatmul.mubr.msk.f32.vlgmr.msra.gmra.mxu0 %vm6974_vm1, %v561_v5  ;;  %4823 = vmatmul.mubr.msk.f32.vlgmr.msra.gmra.mxu1 %vm6974_vm1, %v561_v5  ;;  %v5015_v5 = vld [vmem:[%s5381_s15 + $0xc8] sm:$0xff] }
  0xb4   : > { %661 = vmatprep.mubr.f32.mxu0 %v6964_v35  ;;  %750 = vmatprep.mubr.f32.mxu1 %v6964_v35 }
  0xb5   : > { %4090 = vperm.xlu1 %5110, %v5021_v3  }
  0xb7   : > { %4818 = vmatmul.mubr.msk.f32.gmra.mxu0 %vm6974_vm1, %v562_v6  ;;  %4824 = vmatmul.mubr.msk.f32.gmra.mxu1 %vm6974_vm1, %v562_v6  ;;  %v4594_v6 = vsub.f32 1.0, %v5412_v49  ;;  %v947_v49 = vld [vmem:[%s6961_s6 + $0x8] sm:$0xff] }
  0xb8   : > { %667 = vmatprep.mubr.f32.mxu0 %v6964_v35  ;;  %756 = vmatprep.mubr.f32.mxu1 %v6964_v35 }
  0xb9   : > { %4080 = vperm.xlu1 %5110, %v5019_v4  }
  0xbb   : > { %4819 = vmatmul.mubr.msk.f32.gmra.mxu0 %vm6974_vm1, %v563_v7  ;;  %4825 = vmatmul.mubr.msk.f32.gmra.mxu1 %vm6974_vm1, %v563_v7 }
  0xbc   : > { %673 = vmatprep.mubr.f32.mxu0 %v6964_v35  ;;  %762 = vmatprep.mubr.f32.mxu1 %v6964_v35 }
  0xbd   : > { %4070 = vperm.xlu1 %5110, %v5017_v39  }
  0xbf   : > { %4820 = vmatmul.mubr.msk.f32.gmra.mxu0 %vm6974_vm1, %v564_v8  ;;  %4826 = vmatmul.mubr.msk.f32.gmra.mxu1 %vm6974_vm1, %v564_v8 }
  0xc0   : > { %856 = vmatprep.mubr.f32.mxu0 %v6964_v35  ;;  %933 = vmatprep.mubr.f32.mxu1 %v6964_v35 }
  0xc1   : > { %4060 = vperm.xlu1 %5110, %v5015_v5  }
  0xc5   : > { %4639 = vperm.xlu1 %5110, %v4594_v6  }
 0x173   : > { %v657_v9 = vpop.f32.mrf.mxu0  ;;  %v746_v10 = vpop.f32.mrf.mxu1 }
 0x174   : > { %v769_v42 = vmax.f32 %v657_v9, 0.0  ;;  %v771_v43 = vmax.f32 %v746_v10, 0.0 }
 0x175   : > { %v659_v11 = vpop.f32.mrf.mxu0  ;;  %v748_v12 = vpop.f32.mrf.mxu1 }
 0x176   : > { %v770_v40 = vmax.f32 %v659_v11, 0.0  ;;  %v772_v41 = vmax.f32 %v748_v12, 0.0 }
 0x177   : > { %v663_v13 = vpop.f32.mrf.mxu0  ;;  %v752_v14 = vpop.f32.mrf.mxu1 }
 0x178   : > { %v773_v37 = vmax.f32 %v663_v13, 0.0  ;;  %v775_v38 = vmax.f32 %v752_v14, 0.0  ;;  %v946_v14 = vld [vmem:[%s6961_s6] sm:$0xff] }
 0x179   : > { %v665_v15 = vpop.f32.mrf.mxu0  ;;  %v754_v16 = vpop.f32.mrf.mxu1 }
 0x17a   : > { %v774_v34 = vmax.f32 %v665_v15, 0.0  ;;  %v776_v36 = vmax.f32 %v754_v16, 0.0  ;;  %v948_v15 = vld [vmem:[%s6961_s6 + $0x10] sm:$0xff]  ;;  %v949_v16 = vld [vmem:[%s6961_s6 + $0x18] sm:$0xff] }
 0x17b   : > { %v669_v17 = vpop.f32.mrf.mxu0  ;;  %v758_v18 = vpop.f32.mrf.mxu1 }
 0x17c   : > { %v777_v31 = vmax.f32 %v669_v17, 0.0  ;;  %v779_v33 = vmax.f32 %v758_v18, 0.0  ;;  %v950_v17 = vld [vmem:[%s6961_s6 + $0x20] sm:$0xff]  ;;  %v951_v18 = vld [vmem:[%s6961_s6 + $0x28] sm:$0xff] }
 0x17d   : > { %v671_v19 = vpop.f32.mrf.mxu0  ;;  %v760_v20 = vpop.f32.mrf.mxu1 }
 0x17e   : > { %v778_v29 = vmax.f32 %v671_v19, 0.0  ;;  %v780_v30 = vmax.f32 %v760_v20, 0.0  ;;  %v952_v19 = vld [vmem:[%s6961_s6 + $0x30] sm:$0xff]  ;;  %v953_v20 = vld [vmem:[%s6961_s6 + $0x38] sm:$0xff] }
 0x17f   : > { %v675_v21 = vpop.f32.mrf.mxu0  ;;  %v764_v22 = vpop.f32.mrf.mxu1 }
 0x180   : > { %v781_v27 = vmax.f32 %v675_v21, 0.0  ;;  %v783_v28 = vmax.f32 %v764_v22, 0.0  ;;  %v5574_v21 = vpop.permute.xlu0 %999  ;;  %v5576_v22 = vpop.permute.xlu1 %994 }
 0x181   : > { %v677_v23 = vpop.f32.mrf.mxu0  ;;  %v766_v24 = vpop.f32.mrf.mxu1 }
 0x182   : > { %v782_v25 = vmax.f32 %v677_v23, 0.0  ;;  %v784_v26 = vmax.f32 %v766_v24, 0.0 }
 0x184   : > { %816 = vmatprep.subr.mxu0 %v782_v25  ;;  %893 = vmatprep.subr.mxu1 %v784_v26 }
 0x185   : > { %817 = vmatpush1.msra.mxu0 %v781_v27  ;;  %894 = vmatpush1.msra.mxu1 %v783_v28  ;;  %v985_v27 = vpop.permute.xlu0 %984 }
 0x186   : > { %818 = vmatprep.subr.mxu0 %v778_v29  ;;  %895 = vmatprep.subr.mxu1 %v780_v30  ;;  %v5578_v30 = vpop.permute.xlu1 %989 }
 0x187   : > { %819 = vmatpush1.msra.mxu0 %v777_v31  ;;  %896 = vmatpush1.msra.mxu1 %v779_v33 }
 0x188   : > { %820 = vmatprep.subr.mxu0 %v774_v34  ;;  %897 = vmatprep.subr.mxu1 %v776_v36 }
 0x189   : > { %821 = vmatpush1.msra.mxu0 %v773_v37  ;;  %898 = vmatpush1.msra.mxu1 %v775_v38  ;;  %v975_v37 = vpop.permute.xlu0 %974 }
 0x18a   : > { %822 = vmatprep.subr.mxu0 %v770_v40  ;;  %899 = vmatprep.subr.mxu1 %v772_v41  ;;  %v980_v41 = vpop.permute.xlu1 %979 }
 0x18b   : > { %823 = vmatpush1.msra.mxu0 %v769_v42  ;;  %900 = vmatpush1.msra.mxu1 %v771_v43 }
 0x18c   : > { %4827 = vmatmul.mubr.msk.f32.vlgmr.msra.gmra.mxu0 %vm6973_vm2, %v559_v45  ;;  %4829 = vmatmul.mubr.msk.f32.vlgmr.msra.gmra.mxu1 %vm6973_vm2, %v559_v45 }
 0x18d   : > { %862 = vmatprep.mubr.f32.mxu0 %v6964_v35  ;;  %939 = vmatprep.mubr.f32.mxu1 %v6964_v35  ;;  %v965_v47 = vpop.permute.xlu0 %964 }
 0x18e   : > { %v970_v52 = vpop.permute.xlu1 %969 }
 0x190   : > { %4828 = vmatmul.mubr.msk.f32.gmra.mxu0 %vm6973_vm2, %v560_v46  ;;  %4830 = vmatmul.mubr.msk.f32.gmra.mxu1 %vm6973_vm2, %v560_v46 }
 0x191   : > { %1091 = vmatprep.mubr.f32.mxu0 %v6964_v35  ;;  %1204 = vmatprep.mubr.f32.mxu1 %v6964_v35 }
 0x24c   : > { %v858_v7 = vpop.f32.mrf.mxu0  ;;  %v935_v8 = vpop.f32.mrf.mxu1 }
 0x24e   : > { %v860_v9 = vpop.f32.mrf.mxu0  ;;  %v937_v10 = vpop.f32.mrf.mxu1 }
 0x250   : > { %v864_v11 = vpop.f32.mrf.mxu0  ;;  %v941_v12 = vpop.f32.mrf.mxu1 }
 0x252   : > { %v866_v44 = vpop.f32.mrf.mxu0  ;;  %v943_v13 = vpop.f32.mrf.mxu1 }
 0x253   : > { %1055 = vmatprep.subr.mxu0 %v866_v44  ;;  %1168 = vmatprep.subr.mxu1 %v943_v13 }
 0x254   : > { %1056 = vmatpush1.msra.mxu0 %v864_v11  ;;  %1169 = vmatpush1.msra.mxu1 %v941_v12 }
 0x255   : > { %1057 = vmatprep.subr.mxu0 %v860_v9  ;;  %1170 = vmatprep.subr.mxu1 %v937_v10 }
 0x256   : > { %1058 = vmatpush1.msra.mxu0 %v858_v7  ;;  %1171 = vmatpush1.msra.mxu1 %v935_v8 }
 0x257   : > { %4831 = vmatmul.mubr.msk.f32.vlgmr.msra.gmra.mxu0 %vm6972_vm3, %v946_v14  ;;  %4839 = vmatmul.mubr.msk.f32.vlgmr.msra.gmra.mxu1 %vm6972_vm3, %v946_v14 }
 0x258   : > { %1097 = vmatprep.mubr.f32.mxu0 %v6964_v35  ;;  %1210 = vmatprep.mubr.f32.mxu1 %v6964_v35 }
 0x25b   : > { %4832 = vmatmul.mubr.msk.f32.gmra.mxu0 %vm6972_vm3, %v947_v49  ;;  %4840 = vmatmul.mubr.msk.f32.gmra.mxu1 %vm6972_vm3, %v947_v49 }
 0x25c   : > { %1103 = vmatprep.mubr.f32.mxu0 %v6964_v35  ;;  %1216 = vmatprep.mubr.f32.mxu1 %v6964_v35 }
 0x25f   : > { %4833 = vmatmul.mubr.msk.f32.gmra.mxu0 %vm6972_vm3, %v948_v15  ;;  %4841 = vmatmul.mubr.msk.f32.gmra.mxu1 %vm6972_vm3, %v948_v15 }
 0x260   : > { %1109 = vmatprep.mubr.f32.mxu0 %v6964_v35  ;;  %1222 = vmatprep.mubr.f32.mxu1 %v6964_v35 }
 0x263   : > { %4834 = vmatmul.mubr.msk.f32.gmra.mxu0 %vm6972_vm3, %v949_v16  ;;  %4842 = vmatmul.mubr.msk.f32.gmra.mxu1 %vm6972_vm3, %v949_v16 }
 0x264   : > { %1115 = vmatprep.mubr.f32.mxu0 %v6964_v35  ;;  %1228 = vmatprep.mubr.f32.mxu1 %v6964_v35 }
 0x267   : > { %4835 = vmatmul.mubr.msk.f32.gmra.mxu0 %vm6972_vm3, %v950_v17  ;;  %4843 = vmatmul.mubr.msk.f32.gmra.mxu1 %vm6972_vm3, %v950_v17 }
 0x268   : > { %1121 = vmatprep.mubr.f32.mxu0 %v6964_v35  ;;  %1234 = vmatprep.mubr.f32.mxu1 %v6964_v35 }
 0x26b   : > { %4836 = vmatmul.mubr.msk.f32.gmra.mxu0 %vm6972_vm3, %v951_v18  ;;  %4844 = vmatmul.mubr.msk.f32.gmra.mxu1 %vm6972_vm3, %v951_v18 }
 0x26c   : > { %1127 = vmatprep.mubr.f32.mxu0 %v6964_v35  ;;  %1240 = vmatprep.mubr.f32.mxu1 %v6964_v35 }
 0x26f   : > { %4837 = vmatmul.mubr.msk.f32.gmra.mxu0 %vm6972_vm3, %v952_v19  ;;  %4845 = vmatmul.mubr.msk.f32.gmra.mxu1 %vm6972_vm3, %v952_v19 }
 0x270   : > { %1133 = vmatprep.mubr.f32.mxu0 %v6964_v35  ;;  %1246 = vmatprep.mubr.f32.mxu1 %v6964_v35 }
 0x273   : > { %4838 = vmatmul.mubr.msk.f32.gmra.mxu0 %vm6972_vm3, %v953_v20  ;;  %4846 = vmatmul.mubr.msk.f32.gmra.mxu1 %vm6972_vm3, %v953_v20 }
 0x274   : > { %1418 = vmatprep.mubr.f32.mxu0 %v6964_v35  ;;  %1489 = vmatprep.mubr.f32.mxu1 %v6964_v35 }
 0x317   : > { %v1093_v23 = vpop.f32.mrf.mxu0  ;;  %v1206_v24 = vpop.f32.mrf.mxu1 }
 0x318   : > { %v5580_v48 = vadd.f32 %v1093_v23, %v965_v47  ;;  %v5582_v53 = vadd.f32 %v1206_v24, %v965_v47 }
 0x319   : > { %v1095_v25 = vpop.f32.mrf.mxu0  ;;  %v1208_v26 = vpop.f32.mrf.mxu1 }
 0x31a   : > { %v5584_v54 = vadd.f32 %v1095_v25, %v965_v47  ;;  %v5586_v55 = vadd.f32 %v1208_v26, %v965_v47  ;;  %v5597_v0 = vmul.f32 0.01, %v5580_v48  ;;  %v5604_v6 = vmul.f32 0.01, %v5582_v53 }
 0x31b   : > { %v1099_v28 = vpop.f32.mrf.mxu0  ;;  %v1212_v29 = vpop.f32.mrf.mxu1 }
 0x31c   : > { %v5588_v56 = vadd.f32 %v1099_v28, %v970_v52  ;;  %v5590_v57 = vadd.f32 %v1212_v29, %v970_v52  ;;  %6984 = vst [vmem:[#allocation8_spill] sm:$0xff] %v5597_v0  ;;  %6985 = vst [vmem:[#allocation9_spill] sm:$0xff] %v5604_v6  ;;  %v5607_v7 = vmul.f32 0.01, %v5584_v54  ;;  %v5614_v10 = vmul.f32 0.01, %v5586_v55 }
 0x31d   : > { %v1101_v31 = vpop.f32.mrf.mxu0  ;;  %v1214_v33 = vpop.f32.mrf.mxu1 }
 0x31e   : > { %v5592_v59 = vadd.f32 %v1101_v31, %v970_v52  ;;  %v5594_v61 = vadd.f32 %v1214_v33, %v970_v52  ;;  %6986 = vst [vmem:[#allocation10_spill] sm:$0xff] %v5607_v7  ;;  %6987 = vst [vmem:[#allocation11_spill] sm:$0xff] %v5614_v10  ;;  %v5617_v11 = vmul.f32 0.01, %v5588_v56  ;;  %v5620_v12 = vmul.f32 0.01, %v5590_v57 }
 0x31f   : > { %v1105_v34 = vpop.f32.mrf.mxu0  ;;  %v1218_v36 = vpop.f32.mrf.mxu1 }
 0x320   : > { %v5599_v3 = vadd.f32 %v1105_v34, %v975_v37  ;;  %v5601_v4 = vadd.f32 %v1218_v36, %v975_v37  ;;  %6988 = vst [vmem:[#allocation12_spill] sm:$0xff] %v5617_v11  ;;  %6989 = vst [vmem:[#allocation13_spill] sm:$0xff] %v5620_v12  ;;  %v5625_v49 = vmul.f32 0.01, %v5592_v59  ;;  %v5628_v15 = vmul.f32 0.01, %v5594_v61 }
 0x321   : > { %v1107_v38 = vpop.f32.mrf.mxu0  ;;  %v1220_v40 = vpop.f32.mrf.mxu1 }
 0x322   : > { %v5609_v8 = vadd.f32 %v1107_v38, %v975_v37  ;;  %v5611_v9 = vadd.f32 %v1220_v40, %v975_v37  ;;  %v5635_v18 = vmul.f32 0.01, %v5599_v3  ;;  %v5638_v19 = vmul.f32 0.01, %v5601_v4 }
 0x323   : > { %v1111_v42 = vpop.f32.mrf.mxu0  ;;  %v1224_v43 = vpop.f32.mrf.mxu1 }
 0x324   : > { %v5622_v44 = vadd.f32 %v1111_v42, %v980_v41  ;;  %v5630_v16 = vadd.f32 %v1224_v43, %v980_v41  ;;  %v5645_v26 = vmul.f32 0.01, %v5609_v8  ;;  %v5648_v28 = vmul.f32 0.01, %v5611_v9 }
 0x325   : > { %v1113_v45 = vpop.f32.mrf.mxu0  ;;  %v1226_v46 = vpop.f32.mrf.mxu1 }
 0x326   : > { %v5632_v17 = vadd.f32 %v1113_v45, %v980_v41  ;;  %v5640_v20 = vadd.f32 %v1226_v46, %v980_v41  ;;  %v5655_v33 = vmul.f32 0.01, %v5622_v44  ;;  %v5666_v41 = vmul.f32 0.01, %v5630_v16 }
 0x327   : > { %v1117_v50 = vpop.f32.mrf.mxu0  ;;  %v1230_v51 = vpop.f32.mrf.mxu1 }
 0x328   : > { %v5642_v23 = vadd.f32 %v1117_v50, %v985_v27  ;;  %v5650_v29 = vadd.f32 %v1230_v51, %v985_v27  ;;  %v5669_v42 = vmul.f32 0.01, %v5632_v17  ;;  %v5678_v45 = vmul.f32 0.01, %v5640_v20 }
 0x329   : > { %v1119_v58 = vpop.f32.mrf.mxu0  ;;  %v1232_v32 = vpop.f32.mrf.mxu1 }
 0x32a   : > { %v5652_v31 = vadd.f32 %v1119_v58, %v985_v27  ;;  %v5657_v34 = vadd.f32 %v1232_v32, %v985_v27  ;;  %v5681_v46 = vmul.f32 0.01, %v5642_v23  ;;  %v5686_v58 = vmul.f32 0.01, %v5650_v29 }
 0x32b   : > { %v1123_v39 = vpop.f32.mrf.mxu0  ;;  %v1236_v5 = vpop.f32.mrf.mxu1 }
 0x32c   : > { %v5660_v36 = vadd.f32 %v1123_v39, %v5578_v30  ;;  %v5663_v37 = vadd.f32 %v1236_v5, %v5578_v30  ;;  %v5689_v32 = vmul.f32 0.01, %v5652_v31  ;;  %v5694_v5 = vmul.f32 0.01, %v5657_v34 }
 0x32d   : > { %v1125_v13 = vpop.f32.mrf.mxu0  ;;  %v1238_v14 = vpop.f32.mrf.mxu1 }
 0x32e   : > { %v5672_v43 = vadd.f32 %v1125_v13, %v5578_v30  ;;  %v5675_v27 = vadd.f32 %v1238_v14, %v5578_v30  ;;  %v1305_v13 = vmul.f32 0.01, %v5660_v36  ;;  %v1307_v14 = vmul.f32 0.01, %v5663_v37 }
 0x32f   : > { %v1129_v24 = vpop.f32.mrf.mxu0  ;;  %v1242_v25 = vpop.f32.mrf.mxu1  ;;  %vm1273_vm14 = vcmp.ge.f32.partialorder %v5660_v36, 0.0  ;;  %vm1275_vm15 = vcmp.ge.f32.partialorder %v5663_v37, 0.0 }
 0x330   : > { %v1306_v35 = vmul.f32 0.01, %v5672_v43  ;;  %v1308_v2 = vmul.f32 0.01, %v5675_v27  ;;  %v1130_v1 = vadd.f32 %v1129_v24, %v5576_v22  ;;  %v1243_v60 = vadd.f32 %v1242_v25, %v5576_v22 }
 0x331   : > { %v1131_v38 = vpop.f32.mrf.mxu0  ;;  %v1244_v40 = vpop.f32.mrf.mxu1  ;;  %vm1274_vm12 = vcmp.ge.f32.partialorder %v5672_v43, 0.0  ;;  %vm1276_vm13 = vcmp.ge.f32.partialorder %v5675_v27, 0.0 }
 0x332   : > { %v1132_v47 = vadd.f32 %v1131_v38, %v5576_v22  ;;  %v1245_v50 = vadd.f32 %v1244_v40, %v5576_v22  ;;  %v1309_v12 = vmul.f32 0.01, %v1130_v1  ;;  %v1311_v11 = vmul.f32 0.01, %v1243_v60 }
 0x333   : > { %v1135_v51 = vpop.f32.mrf.mxu0  ;;  %v1248_v52 = vpop.f32.mrf.mxu1  ;;  %vm1277_vm10 = vcmp.ge.f32.partialorder %v1130_v1, 0.0  ;;  %vm1279_vm11 = vcmp.ge.f32.partialorder %v1243_v60, 0.0 }
 0x334   : > { %v1136_v30 = vadd.f32 %v1135_v51, %v5574_v21  ;;  %v1249_v39 = vadd.f32 %v1248_v52, %v5574_v21  ;;  %v1310_v51 = vmul.f32 0.01, %v1132_v47  ;;  %v1312_v63 = vmul.f32 0.01, %v1245_v50 }
 0x335   : > { %v1137_v38 = vpop.f32.mrf.mxu0  ;;  %v1250_v40 = vpop.f32.mrf.mxu1  ;;  %vm1278_vm8 = vcmp.ge.f32.partialorder %v1132_v47, 0.0  ;;  %vm1280_vm9 = vcmp.ge.f32.partialorder %v1245_v50, 0.0 }
 0x336   : > { %v1138_v52 = vadd.f32 %v1137_v38, %v5574_v21  ;;  %v1251_v62 = vadd.f32 %v1250_v40, %v5574_v21  ;;  %vm1281_vm4 = vcmp.ge.f32.partialorder %v1136_v30, 0.0  ;;  %v1313_v6 = vmul.f32 0.01, %v1136_v30 }
 0x337   : > { %vm1283_vm5 = vcmp.ge.f32.partialorder %v1249_v39, 0.0  ;;  %v1315_v0 = vmul.f32 0.01, %v1249_v39  ;;  %v1342_v38 = vsel %vm1278_vm8, %v1132_v47, %v1310_v51  ;;  %vm1266_vm8 = vcmp.ge.f32.partialorder %v5632_v17, 0.0 }
 0x338   : > { %v1314_v10 = vmul.f32 0.01, %v1138_v52  ;;  %v1316_v7 = vmul.f32 0.01, %v1251_v62  ;;  %vm1282_vm6 = vcmp.ge.f32.partialorder %v1138_v52, 0.0  ;;  %vm1284_vm7 = vcmp.ge.f32.partialorder %v1251_v62, 0.0 }
 0x339   : > { %v1345_v21 = vsel %vm1281_vm4, %v1136_v30, %v1313_v6  ;;  %v1347_v25 = vsel %vm1283_vm5, %v1249_v39, %v1315_v0  ;;  %v1341_v6 = vsel %vm1277_vm10, %v1130_v1, %v1309_v12  ;;  %v1343_v0 = vsel %vm1279_vm11, %v1243_v60, %v1311_v11 }
 0x33a   : > { %v1346_v22 = vsel %vm1282_vm6, %v1138_v52, %v1314_v10  ;;  %v1348_v24 = vsel %vm1284_vm7, %v1251_v62, %v1316_v7  ;;  %v1344_v62 = vsel %vm1280_vm9, %v1245_v50, %v1312_v63  ;;  %vm1270_vm4 = vcmp.ge.f32.partialorder %v5652_v31, 0.0 }
 0x33b   : > { %1370 = vmatprep.subr.mxu0 %v1346_v22  ;;  %1441 = vmatprep.subr.mxu1 %v1348_v24  ;;  %vm1272_vm5 = vcmp.ge.f32.partialorder %v5657_v34, 0.0  ;;  %vm1269_vm6 = vcmp.ge.f32.partialorder %v5642_v23, 0.0  ;;  %vm1271_vm7 = vcmp.ge.f32.partialorder %v5650_v29, 0.0  ;;  %v1338_v63 = vsel %vm1274_vm12, %v5672_v43, %v1306_v35 }
 0x33c   : > { %1371 = vmatpush1.msra.mxu0 %v1345_v21  ;;  %1442 = vmatpush1.msra.mxu1 %v1347_v25  ;;  %v1340_v1 = vsel %vm1276_vm13, %v5675_v27, %v1308_v2  ;;  %v1337_v60 = vsel %vm1273_vm14, %v5660_v36, %v1305_v13  ;;  %v1339_v7 = vsel %vm1275_vm15, %v5663_v37, %v1307_v14  ;;  %vm1268_vm9 = vcmp.ge.f32.partialorder %v5640_v20, 0.0 }
 0x33d   : > { %1372 = vmatprep.subr.mxu0 %v1342_v38  ;;  %1443 = vmatprep.subr.mxu1 %v1344_v62  ;;  %vm1265_vm10 = vcmp.ge.f32.partialorder %v5622_v44, 0.0  ;;  %vm1267_vm11 = vcmp.ge.f32.partialorder %v5630_v16, 0.0  ;;  %v1334_v35 = vsel %vm1270_vm4, %v5652_v31, %v5689_v32  ;;  %v1336_v2 = vsel %vm1272_vm5, %v5657_v34, %v5694_v5 }
 0x33e   : > { %1373 = vmatpush1.msra.mxu0 %v1341_v6  ;;  %1444 = vmatpush1.msra.mxu1 %v1343_v0  ;;  %v1333_v10 = vsel %vm1269_vm6, %v5642_v23, %v5681_v46  ;;  %v1335_v11 = vsel %vm1271_vm7, %v5650_v29, %v5686_v58  ;;  %vm1262_vm12 = vcmp.ge.f32.partialorder %v5609_v8, 0.0  ;;  %vm1264_vm13 = vcmp.ge.f32.partialorder %v5611_v9, 0.0  ;;  %v6999_v0 = vld [vmem:[#allocation4_spill] sm:$0xff] }
 0x33f   : > { %1374 = vmatprep.subr.mxu0 %v1338_v63  ;;  %1445 = vmatprep.subr.mxu1 %v1340_v1  ;;  %vm1261_vm14 = vcmp.ge.f32.partialorder %v5599_v3, 0.0  ;;  %vm1263_vm15 = vcmp.ge.f32.partialorder %v5601_v4, 0.0  ;;  %v1330_v12 = vsel %vm1266_vm8, %v5632_v17, %v5669_v42  ;;  %v1332_v23 = vsel %vm1268_vm9, %v5640_v20, %v5678_v45 }
 0x340   : > { %1375 = vmatpush1.msra.mxu0 %v1337_v60  ;;  %1446 = vmatpush1.msra.mxu1 %v1339_v7  ;;  %v1329_v29 = vsel %vm1265_vm10, %v5622_v44, %v5655_v33  ;;  %v1331_v31 = vsel %vm1267_vm11, %v5630_v16, %v5666_v41  ;;  %vm1258_vm4 = vcmp.ge.f32.partialorder %v5592_v59, 0.0  ;;  %vm1260_vm5 = vcmp.ge.f32.partialorder %v5594_v61, 0.0  ;;  %v7000_v60 = vld [vmem:[#allocation5_spill] sm:$0xff] }
 0x341   : > { %1376 = vmatprep.subr.mxu0 %v1334_v35  ;;  %1447 = vmatprep.subr.mxu1 %v1336_v2  ;;  %vm1257_vm6 = vcmp.ge.f32.partialorder %v5588_v56, 0.0  ;;  %vm1259_vm7 = vcmp.ge.f32.partialorder %v5590_v57, 0.0  ;;  %v1326_v44 = vsel %vm1262_vm12, %v5609_v8, %v5645_v26  ;;  %v1328_v16 = vsel %vm1264_vm13, %v5611_v9, %v5648_v28  ;;  %v6990_v8 = vld [vmem:[#allocation12_spill] sm:$0xff]  ;;  %v6993_v26 = vld [vmem:[#allocation11_spill] sm:$0xff]  ;;  %v6995_v28 = vld [vmem:[#allocation9_spill] sm:$0xff] }
 0x342   : > { %1377 = vmatpush1.msra.mxu0 %v1333_v10  ;;  %1448 = vmatpush1.msra.mxu1 %v1335_v11  ;;  %v1325_v17 = vsel %vm1261_vm14, %v5599_v3, %v5635_v18  ;;  %v1327_v20 = vsel %vm1263_vm15, %v5601_v4, %v5638_v19  ;;  %vm1254_vm8 = vcmp.ge.f32.partialorder %v5584_v54, 0.0  ;;  %vm1256_vm9 = vcmp.ge.f32.partialorder %v5586_v55, 0.0  ;;  %v6991_v18 = vld [vmem:[#allocation13_spill] sm:$0xff] }
 0x343   : > { %1378 = vmatprep.subr.mxu0 %v1330_v12  ;;  %1449 = vmatprep.subr.mxu1 %v1332_v23  ;;  %vm1253_vm10 = vcmp.ge.f32.partialorder %v5580_v48, 0.0  ;;  %vm1255_vm11 = vcmp.ge.f32.partialorder %v5582_v53, 0.0  ;;  %v1322_v3 = vsel %vm1258_vm4, %v5592_v59, %v5625_v49  ;;  %v1324_v4 = vsel %vm1260_vm5, %v5594_v61, %v5628_v15  ;;  %v6992_v59 = vld [vmem:[#allocation10_spill] sm:$0xff]  ;;  %v1349_v15 = vld [vmem:[%s6962_s7] sm:$0x3f]  ;;  %v1553_v12 = vpop.permute.xlu1 %1552 }
 0x344   : > { %1379 = vmatpush1.msra.mxu0 %v1329_v29  ;;  %1450 = vmatpush1.msra.mxu1 %v1331_v31  ;;  %v1321_v9 = vsel %vm1257_vm6, %v5588_v56, %v6990_v8  ;;  %v1323_v19 = vsel %vm1259_vm7, %v5590_v57, %v6991_v18  ;;  %v1318_v49 = vsel %vm1254_vm8, %v5584_v54, %v6992_v59  ;;  %vm6976_vm12 = vcmask 523264   ;;  %v6994_v56 = vld [vmem:[#allocation8_spill] sm:$0xff] }
 0x345   : > { %1380 = vmatprep.subr.mxu0 %v1326_v44  ;;  %1451 = vmatprep.subr.mxu1 %v1328_v16  ;;  %v1320_v61 = vsel %vm1256_vm9, %v5586_v55, %v6993_v26  ;;  %v1317_v57 = vsel %vm1253_vm10, %v5580_v48, %v6994_v56  ;;  %v1319_v54 = vsel %vm1255_vm11, %v5582_v53, %v6995_v28  ;;  %v6996_v55 = vmov 0.0   ;;  %v1580_v44 = vpop.permute.xlu0 %1579  ;;  %v4858_v56 = vld [vmem:[%s6959_s4 + $0x20] sm:$0xff]  ;;  %v4860_v28 = vld [vmem:[%s6959_s4 + $0x30] sm:$0xff] }
 0x346   : > { %1381 = vmatpush1.msra.mxu0 %v1325_v17  ;;  %1452 = vmatpush1.msra.mxu1 %v1327_v20  ;;  %vm1513_vm13 = vcmask 1040384   ;;  %vm1514_vm14 = vcmask 1044484  }
 0x347   : > { %1382 = vmatprep.subr.mxu0 %v1322_v3  ;;  %1453 = vmatprep.subr.mxu1 %v1324_v4  ;;  %vm5829_vm15 = vmor %vm1513_vm13, %vm1514_vm14  ;;  %v7001_v4 = vld [vmem:[#allocation3_spill] sm:$0xff] }
 0x348   : > { %1383 = vmatpush1.msra.mxu0 %v1321_v9  ;;  %1454 = vmatpush1.msra.mxu1 %v1323_v19  ;;  %v1587_v8 = vrot.slane %v1580_v44, %v7001_v4  ;;  %v7002_v9 = vld [vmem:[#allocation6_spill] sm:$0xff]  ;;  %v7003_v19 = vld [vmem:[#allocation7_spill] sm:$0xff]  ;;  %v4879_v44 = vld [vmem:[%s6961_s6 + $0x48] sm:$0xff] }
 0x349   : > { %1384 = vmatprep.subr.mxu0 %v1318_v49  ;;  %1455 = vmatprep.subr.mxu1 %v1320_v61 }
 0x34a   : > { %1385 = vmatpush1.msra.mxu0 %v1317_v57  ;;  %1456 = vmatpush1.msra.mxu1 %v1319_v54  ;;  %v4859_v57 = vld [vmem:[%s6959_s4 + $0x28] sm:$0xff]  ;;  %v4861_v54 = vld [vmem:[%s6959_s4 + $0x38] sm:$0xff] }
 0x34b   : > { %4847 = vmatmul.mubr.msk.f32.vlgmr.msra.gmra.mxu0 %vm6976_vm12, %v1349_v15  ;;  %4848 = vmatmul.mubr.msk.f32.vlgmr.msra.gmra.mxu1 %vm6976_vm12, %v1349_v15 }
 0x34c   : > { %1687 = vmatprep.mubr.f32.mxu0 %v6996_v55  ;;  %1776 = vmatprep.mubr.f32.mxu1 %v6996_v55 }
 0x40b   : > { %v1420_v33 = vpop.f32.mrf.mxu0  ;;  %v1491_v34 = vpop.f32.mrf.mxu1 }
 0x40c   : > { %v4849_v36 = vclamps-f32 %v1420_v33, 10.0  ;;  %v4851_v37 = vclamps-f32 %v1491_v34, 10.0 }
 0x40d   : > { %v1422_v48 = vpop.f32.mrf.mxu0  ;;  %v1493_v41 = vpop.f32.mrf.mxu1 }
 0x40e   : > { %v1528_v42 = vsub.f32 0.0, %v4849_v36  ;;  %v1530_v43 = vsub.f32 0.0, %v4851_v37  ;;  %v4850_v27 = vclamps-f32 %v1422_v48, 10.0  ;;  %v4852_v53 = vclamps-f32 %v1493_v41, 10.0 }
 0x40f   : > { %v1509_v30 = vcombine.low %v1420_v33, %v1422_v48  ;;  %v1510_v39 = vcombine.high %v1420_v33, %v1422_v48  ;;  %v1511_v5 = vcombine.low %v1491_v34, %v1493_v41  ;;  %v1512_v13 = vcombine.high %v1491_v34, %v1493_v41 }
 0x410   : > { %v1532_v45 = vmul.f32 1.442695, %v1528_v42  ;;  %v1536_v46 = vmul.f32 1.442695, %v1530_v43  ;;  %v1529_v47 = vsub.f32 0.0, %v4850_v27  ;;  %v1531_v50 = vsub.f32 0.0, %v4852_v53 }
 0x411   : > { %v4853_v14 = vrot.slane %v1509_v30, 11  ;;  %v1518_v40 = vrot.slane %v1510_v39, 7  ;;  %v4854_v52 = vrot.slane %v1511_v5, 11  ;;  %v1522_v22 = vrot.slane %v1512_v13, 7 }
 0x412   : > { %5111 = vpow2.f32 %v1532_v45  ;;  %v1534_v58 = vmul.f32 1.442695, %v1529_v47  ;;  %v1538_v32 = vmul.f32 1.442695, %v1531_v50 }
 0x413   : > { %5113 = vpow2.f32 %v1536_v46  ;;  %v1519_v21 = vsel %vm5829_vm15, %v4853_v14, %v1518_v40  ;;  %v1523_v38 = vsel %vm5829_vm15, %v4854_v52, %v1522_v22 }
 0x414   : > { %5115 = vpow2.f32 %v1534_v58  ;;  %v1526_v63 = vsub.f32 %v6999_v0, %v1519_v21  ;;  %v1527_v7 = vsub.f32 %v7000_v60, %v1523_v38  ;;  %v4857_v60 = vld [vmem:[%s6960_s5 + $0x18] sm:$0xff] }
 0x415   : > { %5117 = vpow2.f32 %v1538_v32 }
 0x41f   : > { %v5112_v24 = vpop.eup %5111 }
 0x420   : > { %v5114_v25 = vpop.eup %5113 }
 0x421   : > { %v5116_v62 = vpop.eup %5115 }
 0x422   : > { %v5118_v6 = vpop.eup %5117  ;;  %v1544_v1 = vcombine.low %v5112_v24, %v5116_v62 }
 0x423   : > { %v1545_v35 = vcombine.low %v5114_v25, %v5118_v6 }
 0x424   : > { %v1548_v2 = vmul.f32 %v1544_v1, %v1526_v63  ;;  %v4856_v63 = vld [vmem:[%s6960_s5 + $0x10] sm:$0xff] }
 0x425   : > { %v1549_v10 = vmul.f32 %v1545_v35, %v1527_v7 }
 0x426   : > { %v1557_v11 = vcombine.high %v1548_v2, %v1548_v2  ;;  %v1561_v29 = vmul.f32 %v1553_v12, %v1548_v2 }
 0x427   : > { %v1558_v23 = vcombine.high %v1549_v10, %v1549_v10  ;;  %v1563_v16 = vmul.f32 %v1553_v12, %v1549_v10 }
 0x428   : > { %v1562_v31 = vmul.f32 %v1557_v11, %v1553_v12 }
 0x429   : > { %v1564_v17 = vmul.f32 %v1558_v23, %v1553_v12 }
 0x42a   : > { %v1569_v20 = vcombine.low %v1561_v29, %v1562_v31  ;;  %v4878_v31 = vld [vmem:[%s6961_s6 + $0x40] sm:$0xff] }
 0x42b   : > { %v1570_v3 = vcombine.low %v1563_v16, %v1564_v17  ;;  %v4880_v16 = vld [vmem:[%s6961_s6 + $0x50] sm:$0xff]  ;;  %v4881_v17 = vld [vmem:[%s6961_s6 + $0x58] sm:$0xff] }
 0x42c   : > { %v5841_v18 = vadd.f32 %v1569_v20, %v7002_v9  ;;  %v4882_v20 = vld [vmem:[%s6961_s6 + $0x60] sm:$0xff]  ;;  %v4885_v9 = vld [vmem:[%s6961_s6 + $0x78] sm:$0xff] }
 0x42d   : > { %v5844_v59 = vadd.f32 %v1570_v3, %v7003_v19  ;;  %v4883_v3 = vld [vmem:[%s6961_s6 + $0x68] sm:$0xff]  ;;  %v5960_v19 = vpop.permute.xlu0 %2027 }
 0x42e   : > { %v5847_v49 = vmul.f32 %v1587_v8, %v5841_v18 }
 0x42f   : > { %v5850_v26 = vmul.f32 %v1587_v8, %v5844_v59  ;;  %v4884_v8 = vld [vmem:[%s6961_s6 + $0x70] sm:$0xff] }
 0x430   : > { %v1601_v61 = vcombine.high %v5847_v49, %v5847_v49 }
 0x431   : > { %7004 = vst [vmem:[#allocation12_spill] sm:$0xff] %v5850_v26  ;;  %v1602_v15 = vcombine.high %v5850_v26, %v5850_v26 }
 0x432   : > { %4862 = vmatprep.subr.msk.mxu0 %vm6975_vm0, %v1601_v61  ;;  %v5962_v61 = vpop.permute.xlu1 %2032 }
 0x433   : > { %4868 = vmatprep.subr.msk.mxu1 %vm6975_vm0, %v1602_v15  ;;  %4863 = vmatpush1.msk.msra.mxu0 %vm6975_vm0, %v5847_v49 }
 0x434   : > { %4869 = vmatpush1.msk.msra.mxu1 %vm6975_vm0, %v5850_v26  ;;  %4864 = vmatmul.mubr.msk.f32.vlgmr.msra.gmra.mxu0 %vm6974_vm1, %v4858_v56 }
 0x435   : > { %4870 = vmatmul.mubr.msk.f32.vlgmr.msra.gmra.mxu1 %vm6974_vm1, %v4858_v56  ;;  %1693 = vmatprep.mubr.f32.mxu0 %v6996_v55 }
 0x436   : > { %1782 = vmatprep.mubr.f32.mxu1 %v6996_v55 }
 0x438   : > { %4865 = vmatmul.mubr.msk.f32.gmra.mxu0 %vm6974_vm1, %v4859_v57 }
 0x439   : > { %4871 = vmatmul.mubr.msk.f32.gmra.mxu1 %vm6974_vm1, %v4859_v57  ;;  %1699 = vmatprep.mubr.f32.mxu0 %v6996_v55 }
 0x43a   : > { %1788 = vmatprep.mubr.f32.mxu1 %v6996_v55 }
 0x43c   : > { %4866 = vmatmul.mubr.msk.f32.gmra.mxu0 %vm6974_vm1, %v4860_v28 }
 0x43d   : > { %4872 = vmatmul.mubr.msk.f32.gmra.mxu1 %vm6974_vm1, %v4860_v28  ;;  %1705 = vmatprep.mubr.f32.mxu0 %v6996_v55 }
 0x43e   : > { %1794 = vmatprep.mubr.f32.mxu1 %v6996_v55 }
 0x440   : > { %4867 = vmatmul.mubr.msk.f32.gmra.mxu0 %vm6974_vm1, %v4861_v54 }
 0x441   : > { %4873 = vmatmul.mubr.msk.f32.gmra.mxu1 %vm6974_vm1, %v4861_v54  ;;  %1887 = vmatprep.mubr.f32.mxu0 %v6996_v55 }
 0x442   : > { %1964 = vmatprep.mubr.f32.mxu1 %v6996_v55 }
 0x4f4   : > { %v1689_v33 = vpop.f32.mrf.mxu0 }
 0x4f5   : > { %v1778_v34 = vpop.f32.mrf.mxu1  ;;  %v1801_v6 = vmax.f32 %v1689_v33, 0.0  ;;  %v2018_v33 = vpop.permute.xlu0 %2017 }
 0x4f6   : > { %v1691_v36 = vpop.f32.mrf.mxu0  ;;  %v1803_v1 = vmax.f32 %v1778_v34, 0.0 }
 0x4f7   : > { %v1780_v37 = vpop.f32.mrf.mxu1  ;;  %v1802_v38 = vmax.f32 %v1691_v36, 0.0  ;;  %v5964_v36 = vpop.permute.xlu1 %2022 }
 0x4f8   : > { %v1695_v48 = vpop.f32.mrf.mxu0  ;;  %v1804_v0 = vmax.f32 %v1780_v37, 0.0 }
 0x4f9   : > { %v1784_v41 = vpop.f32.mrf.mxu1  ;;  %v1805_v21 = vmax.f32 %v1695_v48, 0.0 }
 0x4fa   : > { %v1697_v42 = vpop.f32.mrf.mxu0  ;;  %v1807_v62 = vmax.f32 %v1784_v41, 0.0 }
 0x4fb   : > { %v1786_v43 = vpop.f32.mrf.mxu1  ;;  %v1806_v22 = vmax.f32 %v1697_v42, 0.0 }
 0x4fc   : > { %v1701_v27 = vpop.f32.mrf.mxu0  ;;  %v1808_v25 = vmax.f32 %v1786_v43, 0.0 }
 0x4fd   : > { %v1790_v53 = vpop.f32.mrf.mxu1  ;;  %v1809_v40 = vmax.f32 %v1701_v27, 0.0  ;;  %v2008_v27 = vpop.permute.xlu0 %2007 }
 0x4fe   : > { %v1703_v45 = vpop.f32.mrf.mxu0  ;;  %v1811_v24 = vmax.f32 %v1790_v53, 0.0 }
 0x4ff   : > { %v1792_v46 = vpop.f32.mrf.mxu1  ;;  %v1810_v13 = vmax.f32 %v1703_v45, 0.0  ;;  %v2013_v45 = vpop.permute.xlu1 %2012 }
 0x500   : > { %v1707_v47 = vpop.f32.mrf.mxu0  ;;  %v1812_v52 = vmax.f32 %v1792_v46, 0.0 }
 0x501   : > { %v1796_v50 = vpop.f32.mrf.mxu1  ;;  %v1813_v39 = vmax.f32 %v1707_v47, 0.0 }
 0x502   : > { %v1709_v58 = vpop.f32.mrf.mxu0  ;;  %v1815_v14 = vmax.f32 %v1796_v50, 0.0 }
 0x503   : > { %v1814_v32 = vmax.f32 %v1709_v58, 0.0  ;;  %v1798_v30 = vpop.f32.mrf.mxu1 }
 0x504   : > { %v1816_v5 = vmax.f32 %v1798_v30, 0.0  ;;  %v1998_v30 = vpop.permute.xlu0 %1997 }
 0x505   : > { %1847 = vmatprep.subr.mxu0 %v1814_v32 }
 0x506   : > { %1924 = vmatprep.subr.mxu1 %v1816_v5  ;;  %1848 = vmatpush1.msra.mxu0 %v1813_v39  ;;  %v2003_v5 = vpop.permute.xlu1 %2002 }
 0x507   : > { %1925 = vmatpush1.msra.mxu1 %v1815_v14  ;;  %1849 = vmatprep.subr.mxu0 %v1810_v13 }
 0x508   : > { %1926 = vmatprep.subr.mxu1 %v1812_v52  ;;  %1850 = vmatpush1.msra.mxu0 %v1809_v40 }
 0x509   : > { %1927 = vmatpush1.msra.mxu1 %v1811_v24  ;;  %1851 = vmatprep.subr.mxu0 %v1806_v22 }
 0x50a   : > { %1928 = vmatprep.subr.mxu1 %v1808_v25  ;;  %1852 = vmatpush1.msra.mxu0 %v1805_v21 }
 0x50b   : > { %1929 = vmatpush1.msra.mxu1 %v1807_v62  ;;  %1853 = vmatprep.subr.mxu0 %v1802_v38 }
 0x50c   : > { %1930 = vmatprep.subr.mxu1 %v1804_v0  ;;  %1854 = vmatpush1.msra.mxu0 %v1801_v6 }
 0x50d   : > { %1931 = vmatpush1.msra.mxu1 %v1803_v1  ;;  %4874 = vmatmul.mubr.msk.f32.vlgmr.msra.gmra.mxu0 %vm6973_vm2, %v4856_v63 }
 0x50e   : > { %4876 = vmatmul.mubr.msk.f32.vlgmr.msra.gmra.mxu1 %vm6973_vm2, %v4856_v63  ;;  %1893 = vmatprep.mubr.f32.mxu0 %v6996_v55 }
 0x50f   : > { %1970 = vmatprep.mubr.f32.mxu1 %v6996_v55 }
 0x511   : > { %4875 = vmatmul.mubr.msk.f32.gmra.mxu0 %vm6973_vm2, %v4857_v60 }
 0x512   : > { %4877 = vmatmul.mubr.msk.f32.gmra.mxu1 %vm6973_vm2, %v4857_v60  ;;  %2123 = vmatprep.mubr.f32.mxu0 %v6996_v55 }
 0x513   : > { %2236 = vmatprep.mubr.f32.mxu1 %v6996_v55 }
 0x5cd   : > { %v1889_v7 = vpop.f32.mrf.mxu0 }
 0x5ce   : > { %v1966_v35 = vpop.f32.mrf.mxu1 }
 0x5cf   : > { %v1891_v2 = vpop.f32.mrf.mxu0 }
 0x5d0   : > { %v1968_v10 = vpop.f32.mrf.mxu1 }
 0x5d1   : > { %v1895_v11 = vpop.f32.mrf.mxu0 }
 0x5d2   : > { %v1972_v12 = vpop.f32.mrf.mxu1 }
 0x5d3   : > { %v1897_v23 = vpop.f32.mrf.mxu0 }
 0x5d4   : > { %v1974_v29 = vpop.f32.mrf.mxu1  ;;  %2087 = vmatprep.subr.mxu0 %v1897_v23 }
 0x5d5   : > { %2200 = vmatprep.subr.mxu1 %v1974_v29  ;;  %2088 = vmatpush1.msra.mxu0 %v1895_v11 }
 0x5d6   : > { %2201 = vmatpush1.msra.mxu1 %v1972_v12  ;;  %2089 = vmatprep.subr.mxu0 %v1891_v2 }
 0x5d7   : > { %2202 = vmatprep.subr.mxu1 %v1968_v10  ;;  %2090 = vmatpush1.msra.mxu0 %v1889_v7 }
 0x5d8   : > { %2203 = vmatpush1.msra.mxu1 %v1966_v35  ;;  %4894 = vmatmul.mubr.msk.f32.vlgmr.msra.gmra.mxu0 %vm6972_vm3, %v4878_v31 }
 0x5d9   : > { %4902 = vmatmul.mubr.msk.f32.vlgmr.msra.gmra.mxu1 %vm6972_vm3, %v4878_v31  ;;  %2129 = vmatprep.mubr.f32.mxu0 %v6996_v55 }
 0x5da   : > { %2242 = vmatprep.mubr.f32.mxu1 %v6996_v55 }
 0x5dc   : > { %4895 = vmatmul.mubr.msk.f32.gmra.mxu0 %vm6972_vm3, %v4879_v44 }
 0x5dd   : > { %4903 = vmatmul.mubr.msk.f32.gmra.mxu1 %vm6972_vm3, %v4879_v44  ;;  %2135 = vmatprep.mubr.f32.mxu0 %v6996_v55 }
 0x5de   : > { %2248 = vmatprep.mubr.f32.mxu1 %v6996_v55 }
 0x5e0   : > { %4896 = vmatmul.mubr.msk.f32.gmra.mxu0 %vm6972_vm3, %v4880_v16 }
 0x5e1   : > { %4904 = vmatmul.mubr.msk.f32.gmra.mxu1 %vm6972_vm3, %v4880_v16  ;;  %2141 = vmatprep.mubr.f32.mxu0 %v6996_v55 }
 0x5e2   : > { %2254 = vmatprep.mubr.f32.mxu1 %v6996_v55 }
 0x5e4   : > { %4897 = vmatmul.mubr.msk.f32.gmra.mxu0 %vm6972_vm3, %v4881_v17 }
 0x5e5   : > { %4905 = vmatmul.mubr.msk.f32.gmra.mxu1 %vm6972_vm3, %v4881_v17  ;;  %2147 = vmatprep.mubr.f32.mxu0 %v6996_v55 }
 0x5e6   : > { %2260 = vmatprep.mubr.f32.mxu1 %v6996_v55 }
 0x5e8   : > { %4898 = vmatmul.mubr.msk.f32.gmra.mxu0 %vm6972_vm3, %v4882_v20 }
 0x5e9   : > { %4906 = vmatmul.mubr.msk.f32.gmra.mxu1 %vm6972_vm3, %v4882_v20  ;;  %2153 = vmatprep.mubr.f32.mxu0 %v6996_v55 }
 0x5ea   : > { %2266 = vmatprep.mubr.f32.mxu1 %v6996_v55 }
 0x5ec   : > { %4899 = vmatmul.mubr.msk.f32.gmra.mxu0 %vm6972_vm3, %v4883_v3 }
 0x5ed   : > { %4907 = vmatmul.mubr.msk.f32.gmra.mxu1 %vm6972_vm3, %v4883_v3  ;;  %2159 = vmatprep.mubr.f32.mxu0 %v6996_v55 }
 0x5ee   : > { %2272 = vmatprep.mubr.f32.mxu1 %v6996_v55 }
 0x5f0   : > { %4900 = vmatmul.mubr.msk.f32.gmra.mxu0 %vm6972_vm3, %v4884_v8 }
 0x5f1   : > { %4908 = vmatmul.mubr.msk.f32.gmra.mxu1 %vm6972_vm3, %v4884_v8  ;;  %2165 = vmatprep.mubr.f32.mxu0 %v6996_v55 }
 0x5f2   : > { %2278 = vmatprep.mubr.f32.mxu1 %v6996_v55 }
 0x5f4   : > { %4901 = vmatmul.mubr.msk.f32.gmra.mxu0 %vm6972_vm3, %v4885_v9 }
 0x5f5   : > { %4909 = vmatmul.mubr.msk.f32.gmra.mxu1 %vm6972_vm3, %v4885_v9  ;;  %2450 = vmatprep.mubr.f32.mxu0 %v6996_v55 }
 0x5f6   : > { %2521 = vmatprep.mubr.f32.mxu1 %v6996_v55 }
 0x698   : > { %v2125_v15 = vpop.f32.mrf.mxu0 }
 0x699   : > { %v2238_v56 = vpop.f32.mrf.mxu1  ;;  %v5966_v13 = vadd.f32 %v2125_v15, %v1998_v30 }
 0x69a   : > { %v2127_v57 = vpop.f32.mrf.mxu0  ;;  %v5974_v25 = vadd.f32 %v2238_v56, %v1998_v30 }
 0x69b   : > { %v2240_v28 = vpop.f32.mrf.mxu1  ;;  %v5968_v40 = vadd.f32 %v2127_v57, %v1998_v30  ;;  %v5979_v6 = vmul.f32 0.01, %v5966_v13 }
 0x69c   : > { %v2131_v54 = vpop.f32.mrf.mxu0  ;;  %v5981_v0 = vadd.f32 %v2240_v28, %v1998_v30 }
 0x69d   : > { %v2244_v34 = vpop.f32.mrf.mxu1  ;;  %v5970_v52 = vadd.f32 %v2131_v54, %v2003_v5  ;;  %v5988_v7 = vmul.f32 0.01, %v5968_v40 }
 0x69e   : > { %v2133_v37 = vpop.f32.mrf.mxu0  ;;  %v5993_v2 = vadd.f32 %v2244_v34, %v2003_v5 }
 0x69f   : > { %v2246_v48 = vpop.f32.mrf.mxu1  ;;  %v5972_v24 = vadd.f32 %v2133_v37, %v2003_v5  ;;  %v5991_v35 = vmul.f32 0.01, %v5970_v52  ;;  %vm2289_vm6 = vcmp.ge.f32.partialorder %v5970_v52, 0.0 }
 0x6a0   : > { %v2137_v41 = vpop.f32.mrf.mxu0  ;;  %v6000_v23 = vadd.f32 %v2246_v48, %v2003_v5 }
 0x6a1   : > { %v2250_v42 = vpop.f32.mrf.mxu1  ;;  %v5976_v38 = vadd.f32 %v2137_v41, %v2008_v27  ;;  %v5998_v12 = vmul.f32 0.01, %v5972_v24  ;;  %vm2290_vm9 = vcmp.ge.f32.partialorder %v5972_v24, 0.0 }
 0x6a2   : > { %v2139_v43 = vpop.f32.mrf.mxu0  ;;  %v6009_v17 = vadd.f32 %v2250_v42, %v2008_v27 }
 0x6a3   : > { %v2252_v53 = vpop.f32.mrf.mxu1  ;;  %v5983_v63 = vadd.f32 %v2139_v43, %v2008_v27  ;;  %v6007_v16 = vmul.f32 0.01, %v5976_v38  ;;  %vm2293_vm1 = vcmp.ge.f32.partialorder %v5976_v38, 0.0 }
 0x6a4   : > { %v2143_v46 = vpop.f32.mrf.mxu0  ;;  %v6011_v20 = vadd.f32 %v2252_v53, %v2008_v27 }
 0x6a5   : > { %v2256_v47 = vpop.f32.mrf.mxu1  ;;  %v5985_v1 = vadd.f32 %v2143_v46, %v2013_v45  ;;  %v6017_v9 = vmul.f32 0.01, %v5983_v63  ;;  %vm2294_vm2 = vcmp.ge.f32.partialorder %v5983_v63, 0.0 }
 0x6a6   : > { %v2145_v50 = vpop.f32.mrf.mxu0  ;;  %v6022_v56 = vadd.f32 %v2256_v47, %v2013_v45 }
 0x6a7   : > { %v2258_v58 = vpop.f32.mrf.mxu1  ;;  %v5995_v10 = vadd.f32 %v2145_v50, %v2013_v45  ;;  %v6020_v15 = vmul.f32 0.01, %v5985_v1 }
 0x6a8   : > { %v2149_v32 = vpop.f32.mrf.mxu0  ;;  %v6030_v34 = vadd.f32 %v2258_v58, %v2013_v45 }
 0x6a9   : > { %v2262_v39 = vpop.f32.mrf.mxu1  ;;  %v6002_v29 = vadd.f32 %v2149_v32, %v2018_v33  ;;  %v6028_v54 = vmul.f32 0.01, %v5995_v10 }
 0x6aa   : > { %v2151_v14 = vpop.f32.mrf.mxu0  ;;  %v6032_v37 = vadd.f32 %v2262_v39, %v2018_v33 }
 0x6ab   : > { %v2264_v22 = vpop.f32.mrf.mxu1  ;;  %v6004_v31 = vadd.f32 %v2151_v14, %v2018_v33  ;;  %v6038_v42 = vmul.f32 0.01, %v6002_v29 }
 0x6ac   : > { %v2155_v21 = vpop.f32.mrf.mxu0  ;;  %v6043_v27 = vadd.f32 %v2264_v22, %v2018_v33 }
 0x6ad   : > { %v2268_v62 = vpop.f32.mrf.mxu1  ;;  %v6014_v3 = vadd.f32 %v2155_v21, %v5964_v36  ;;  %v6041_v43 = vmul.f32 0.01, %v6004_v31  ;;  %vm2302_vm5 = vcmp.ge.f32.partialorder %v6004_v31, 0.0 }
 0x6ae   : > { %v2157_v60 = vpop.f32.mrf.mxu0  ;;  %v6051_v47 = vadd.f32 %v2268_v62, %v5964_v36 }
 0x6af   : > { %v2270_v11 = vpop.f32.mrf.mxu1  ;;  %v6025_v57 = vadd.f32 %v2157_v60, %v5964_v36  ;;  %vm2305_vm4 = vcmp.ge.f32.partialorder %v6014_v3, 0.0  ;;  %v6048_v45 = vmul.f32 0.01, %v6014_v3 }
 0x6b0   : > { %v2161_v44 = vpop.f32.mrf.mxu0  ;;  %v6056_v30 = vadd.f32 %v2270_v11, %v5964_v36 }
 0x6b1   : > { %v2274_v8 = vpop.f32.mrf.mxu1  ;;  %v6035_v48 = vadd.f32 %v2161_v44, %v5960_v19  ;;  %v2338_v32 = vmul.f32 0.01, %v6025_v57  ;;  %vm2306_vm7 = vcmp.ge.f32.partialorder %v6025_v57, 0.0 }
 0x6b2   : > { %v2163_v28 = vpop.f32.mrf.mxu0  ;;  %v2275_v22 = vadd.f32 %v2274_v8, %v5960_v19 }
 0x6b3   : > { %v2276_v41 = vpop.f32.mrf.mxu1  ;;  %v2164_v53 = vadd.f32 %v2163_v28, %v5960_v19  ;;  %v2341_v14 = vmul.f32 0.01, %v6035_v48  ;;  %vm2309_vm0 = vcmp.ge.f32.partialorder %v6035_v48, 0.0 }
 0x6b4   : > { %v2167_v46 = vpop.f32.mrf.mxu0  ;;  %v2277_v33 = vadd.f32 %v2276_v41, %v5960_v19  ;;  %vm2311_vm10 = vcmp.ge.f32.partialorder %v2275_v22, 0.0 }
 0x6b5   : > { %v2168_v50 = vadd.f32 %v2167_v46, %v5962_v61  ;;  %v2280_v58 = vpop.f32.mrf.mxu1  ;;  %v2342_v36 = vmul.f32 0.01, %v2164_v53  ;;  %vm2310_vm8 = vcmp.ge.f32.partialorder %v2164_v53, 0.0  ;;  %v2340_v46 = vmul.f32 0.01, %v6056_v30 }
 0x6b6   : > { %v2281_v39 = vadd.f32 %v2280_v58, %v5962_v61  ;;  %v2169_v5 = vpop.f32.mrf.mxu0  ;;  %v2344_v41 = vmul.f32 0.01, %v2277_v33  ;;  %vm2312_vm12 = vcmp.ge.f32.partialorder %v2277_v33, 0.0 }
 0x6b7   : > { %v2170_v21 = vadd.f32 %v2169_v5, %v5962_v61  ;;  %v2282_v62 = vpop.f32.mrf.mxu1  ;;  %v2345_v60 = vmul.f32 0.01, %v2168_v50  ;;  %vm2313_vm11 = vcmp.ge.f32.partialorder %v2168_v50, 0.0 }
 0x6b8   : > { %v2283_v11 = vadd.f32 %v2282_v62, %v5962_v61  ;;  %v2347_v44 = vmul.f32 0.01, %v2281_v39  ;;  %vm2315_vm14 = vcmp.ge.f32.partialorder %v2281_v39, 0.0  ;;  %v2343_v61 = vmul.f32 0.01, %v2275_v22 }
 0x6b9   : > { %v2346_v28 = vmul.f32 0.01, %v2170_v21  ;;  %vm2314_vm13 = vcmp.ge.f32.partialorder %v2170_v21, 0.0  ;;  %v2377_v5 = vsel %vm2313_vm11, %v2168_v50, %v2345_v60  ;;  %v2339_v62 = vmul.f32 0.01, %v6051_v47 }
 0x6ba   : > { %v2348_v19 = vmul.f32 0.01, %v2283_v11  ;;  %vm2316_vm3 = vcmp.ge.f32.partialorder %v2283_v11, 0.0  ;;  %v2379_v26 = vsel %vm2315_vm14, %v2281_v39, %v2347_v44  ;;  %v2376_v50 = vsel %vm2312_vm12, %v2277_v33, %v2344_v41 }
 0x6bb   : > { %v2378_v8 = vsel %vm2314_vm13, %v2170_v21, %v2346_v28  ;;  %v2374_v21 = vsel %vm2310_vm8, %v2164_v53, %v2342_v36  ;;  %vm2308_vm13 = vcmp.ge.f32.partialorder %v6056_v30, 0.0  ;;  %v2336_v28 = vmul.f32 0.01, %v6043_v27 }
 0x6bc   : > { %2402 = vmatprep.subr.mxu0 %v2378_v8  ;;  %v2380_v58 = vsel %vm2316_vm3, %v2283_v11, %v2348_v19  ;;  %vm2307_vm3 = vcmp.ge.f32.partialorder %v6051_v47, 0.0  ;;  %v2373_v60 = vsel %vm2309_vm0, %v6035_v48, %v2341_v14  ;;  %vm2286_vm11 = vcmp.ge.f32.partialorder %v5968_v40, 0.0 }
 0x6bd   : > { %2473 = vmatprep.subr.mxu1 %v2380_v58  ;;  %2403 = vmatpush1.msra.mxu0 %v2377_v5  ;;  %vm2285_vm14 = vcmp.ge.f32.partialorder %v5966_v13, 0.0  ;;  %v2335_v53 = vmul.f32 0.01, %v6032_v37  ;;  %v2375_v39 = vsel %vm2311_vm10, %v2275_v22, %v2343_v61  ;;  %vm2304_vm12 = vcmp.ge.f32.partialorder %v6043_v27, 0.0 }
 0x6be   : > { %2474 = vmatpush1.msra.mxu1 %v2379_v26  ;;  %2404 = vmatprep.subr.mxu0 %v2374_v21  ;;  %v2370_v26 = vsel %vm2306_vm7, %v6025_v57, %v2338_v32  ;;  %v2332_v33 = vmul.f32 0.01, %v6030_v34  ;;  %vm2303_vm0 = vcmp.ge.f32.partialorder %v6032_v37, 0.0  ;;  %v2372_v48 = vsel %vm2308_vm13, %v6056_v30, %v2340_v46 }
 0x6bf   : > { %2475 = vmatprep.subr.mxu1 %v2376_v50  ;;  %2405 = vmatpush1.msra.mxu0 %v2373_v60  ;;  %v2369_v14 = vsel %vm2305_vm4, %v6014_v3, %v6048_v45  ;;  %v2331_v22 = vmul.f32 0.01, %v6022_v56  ;;  %v2371_v57 = vsel %vm2307_vm3, %v6051_v47, %v2339_v62  ;;  %v2366_v32 = vsel %vm2302_vm5, %v6004_v31, %v6041_v43 }
 0x6c0   : > { %2476 = vmatpush1.msra.mxu1 %v2375_v39  ;;  %2406 = vmatprep.subr.mxu0 %v2370_v26  ;;  %vm2300_vm7 = vcmp.ge.f32.partialorder %v6030_v34, 0.0  ;;  %v2328_v30 = vmul.f32 0.01, %v6011_v20  ;;  %vm2299_vm8 = vcmp.ge.f32.partialorder %v6022_v56, 0.0  ;;  %v2368_v3 = vsel %vm2304_vm12, %v6043_v27, %v2336_v28 }
 0x6c1   : > { %2477 = vmatprep.subr.mxu1 %v2372_v48  ;;  %2407 = vmatpush1.msra.mxu0 %v2369_v14  ;;  %vm7005_vm4 = vcmp.ge.f32.partialorder %v6002_v29, 0.0  ;;  %v2327_v47 = vmul.f32 0.01, %v6009_v17  ;;  %v2367_v31 = vsel %vm2303_vm0, %v6032_v37, %v2335_v53  ;;  %vm7006_vm5 = vcmp.ge.f32.partialorder %v5995_v10, 0.0 }
 0x6c2   : > { %2478 = vmatpush1.msra.mxu1 %v2371_v57  ;;  %2408 = vmatprep.subr.mxu0 %v2366_v32  ;;  %v2365_v45 = vsel %vm7005_vm4, %v6002_v29, %v6038_v42  ;;  %v2362_v43 = vsel %vm7006_vm5, %v5995_v10, %v6028_v54  ;;  %vm2296_vm10 = vcmp.ge.f32.partialorder %v6011_v20, 0.0  ;;  %v2324_v27 = vmul.f32 0.01, %v6000_v23 }
 0x6c3   : > { %2479 = vmatprep.subr.mxu1 %v2368_v3  ;;  %2409 = vmatpush1.msra.mxu0 %v2365_v45  ;;  %vm2295_vm13 = vcmp.ge.f32.partialorder %v6009_v17, 0.0  ;;  %v2364_v29 = vsel %vm2300_vm7, %v6030_v34, %v2332_v33  ;;  %vm7007_vm3 = vcmp.ge.f32.partialorder %v5985_v1, 0.0  ;;  %v2323_v42 = vmul.f32 0.01, %v5993_v2 }
 0x6c4   : > { %2480 = vmatpush1.msra.mxu1 %v2367_v31  ;;  %2410 = vmatprep.subr.mxu0 %v2362_v43  ;;  %v2361_v37 = vsel %vm7007_vm3, %v5985_v1, %v6020_v15  ;;  %v2363_v10 = vsel %vm2299_vm8, %v6022_v56, %v2331_v22  ;;  %v2358_v54 = vsel %vm2294_vm2, %v5983_v63, %v6017_v9  ;;  %vm2292_vm12 = vcmp.ge.f32.partialorder %v6000_v23, 0.0  ;;  %v2582_v43 = vpop.permute.xlu1 %2581 }
 0x6c5   : > { %2481 = vmatprep.subr.mxu1 %v2364_v29  ;;  %2411 = vmatpush1.msra.mxu0 %v2361_v37  ;;  %v2320_v34 = vmul.f32 0.01, %v5981_v0  ;;  %vm2291_vm0 = vcmp.ge.f32.partialorder %v5993_v2, 0.0  ;;  %v2360_v1 = vsel %vm2296_vm10, %v6011_v20, %v2328_v30  ;;  %v2357_v15 = vsel %vm2293_vm1, %v5976_v38, %v6007_v16 }
 0x6c6   : > { %2482 = vmatpush1.msra.mxu1 %v2363_v10  ;;  %2412 = vmatprep.subr.mxu0 %v2358_v54  ;;  %v2319_v56 = vmul.f32 0.01, %v5974_v25  ;;  %v2359_v63 = vsel %vm2295_vm13, %v6009_v17, %v2327_v47  ;;  %v2354_v9 = vsel %vm2290_vm9, %v5972_v24, %v5998_v12  ;;  %vm2288_vm2 = vcmp.ge.f32.partialorder %v5981_v0, 0.0 }
 0x6c7   : > { %2483 = vmatprep.subr.mxu1 %v2360_v1  ;;  %2413 = vmatpush1.msra.mxu0 %v2357_v15  ;;  %vm2287_vm7 = vcmp.ge.f32.partialorder %v5974_v25, 0.0  ;;  %v2356_v38 = vsel %vm2292_vm12, %v6000_v23, %v2324_v27  ;;  %v2353_v16 = vsel %vm2289_vm6, %v5970_v52, %v5991_v35  ;;  %v2355_v24 = vsel %vm2291_vm0, %v5993_v2, %v2323_v42  ;;  %v4910_v23 = vld [vmem:[%s6962_s7 + $0x8] sm:$0x3f]  ;;  %v2609_v42 = vpop.permute.xlu0 %2608 }
 0x6c8   : > { %2484 = vmatpush1.msra.mxu1 %v2359_v63  ;;  %2414 = vmatprep.subr.mxu0 %v2354_v9  ;;  %v2350_v12 = vsel %vm2286_vm11, %v5968_v40, %v5988_v7  ;;  %v2352_v17 = vsel %vm2288_vm2, %v5981_v0, %v2320_v34  ;;  %v2349_v52 = vsel %vm2285_vm14, %v5966_v13, %v5979_v6  ;;  %vm7008_vm1 = vcmask 523264  }
 0x6c9   : > { %2485 = vmatprep.subr.mxu1 %v2356_v38  ;;  %2415 = vmatpush1.msra.mxu0 %v2353_v16  ;;  %v2351_v35 = vsel %vm2287_vm7, %v5974_v25, %v2319_v56  ;;  %vm7009_vm6 = vmmov %vm7008_vm1  ;;  %v2616_v15 = vrot.slane %v2609_v42, %v7001_v4  ;;  %v7010_v56 = vld [vmem:[#allocation12_spill] sm:$0xff]  ;;  %vm7012_vm9 = vcmask 1042432   ;;  %vm7016_vm4 = vcmask 23552   ;;  %v4944_v42 = vld [vmem:[%s6961_s6 + $0x90] sm:$0xff] }
 0x6ca   : > { %2486 = vmatpush1.msra.mxu1 %v2355_v24  ;;  %2416 = vmatprep.subr.mxu0 %v2350_v12  ;;  %vm7013_vm11 = vmmov %vm7012_vm9  ;;  %v4923_v24 = vld [vmem:[%s6959_s4 + $0x48] sm:$0xff]  ;;  %v4924_v12 = vld [vmem:[%s6959_s4 + $0x50] sm:$0xff]  ;;  %vm7024_vm7 = vcmask 261120  }
 0x6cb   : > { %2487 = vmatprep.subr.mxu1 %v2352_v17  ;;  %2417 = vmatpush1.msra.mxu0 %v2349_v52  ;;  %vm7014_vm14 = vmmov %vm7012_vm9 }
 0x6cc   : > { %2488 = vmatpush1.msra.mxu1 %v2351_v35  ;;  %4911 = vmatmul.mubr.msk.f32.vlgmr.msra.gmra.mxu0 %vm7008_vm1, %v4910_v23  ;;  %vm7015_vm8 = vmmov %vm7012_vm9 }
 0x6cd   : > { %4912 = vmatmul.mubr.msk.f32.vlgmr.msra.gmra.mxu1 %vm7009_vm6, %v4910_v23  ;;  %2716 = vmatprep.mubr.f32.mxu0 %v6996_v55  ;;  %vm7017_vm5 = vmmov %vm7016_vm4  ;;  %v4925_v23 = vld [vmem:[%s6959_s4 + $0x58] sm:$0xff] }
 0x6ce   : > { %2805 = vmatprep.mubr.f32.mxu1 %v6996_v55  ;;  %vm7018_vm10 = vmmov %vm7016_vm4 }
 0x6cf   : > { %vm7019_vm13 = vmmov %vm7016_vm4 }
 0x6d0   : > { %vm7020_vm3 = vmmov %vm7016_vm4 }
 0x6d1   : > { %vm7021_vm12 = vmmov %vm7020_vm3 }
 0x6d2   : > { %vm7022_vm0 = vmmov %vm7020_vm3 }
 0x6d3   : > { %vm7023_vm2 = vmmov %vm7022_vm0 }
 0x6d4   : > { %vm7025_vm1 = vmmov %vm7024_vm7 }
 0x6d5   : > { %vm7026_vm6 = vmmov %vm7025_vm1 }
 0x78c   : > { %v2452_v40 = vpop.f32.mrf.mxu0 }
 0x78d   : > { %v4913_v0 = vclamps-f32 %v2452_v40, 10.0  ;;  %v2523_v7 = vpop.f32.mrf.mxu1 }
 0x78e   : > { %v4915_v2 = vclamps-f32 %v2523_v7, 10.0  ;;  %v2454_v13 = vpop.f32.mrf.mxu0 }
 0x78f   : > { %v2557_v6 = vsub.f32 0.0, %v4913_v0  ;;  %v4914_v20 = vclamps-f32 %v2454_v13, 10.0  ;;  %v2525_v36 = vpop.f32.mrf.mxu1  ;;  %v2541_v58 = vcombine.low %v2452_v40, %v2454_v13  ;;  %v2542_v5 = vcombine.high %v2452_v40, %v2454_v13 }
 0x790   : > { %v2559_v11 = vsub.f32 0.0, %v4915_v2  ;;  %v4916_v44 = vclamps-f32 %v2525_v36, 10.0  ;;  %v2543_v62 = vcombine.low %v2523_v7, %v2525_v36  ;;  %v2544_v21 = vcombine.high %v2523_v7, %v2525_v36 }
 0x791   : > { %v2561_v25 = vmul.f32 1.442695, %v2557_v6  ;;  %v2558_v41 = vsub.f32 0.0, %v4914_v20  ;;  %v4917_v28 = vrot.slane %v2541_v58, 11  ;;  %v2547_v50 = vrot.slane %v2542_v5, 7 }
 0x792   : > { %v2565_v19 = vmul.f32 1.442695, %v2559_v11  ;;  %v2560_v61 = vsub.f32 0.0, %v4916_v44  ;;  %v4918_v60 = vrot.slane %v2543_v62, 11  ;;  %v2551_v53 = vrot.slane %v2544_v21, 7 }
 0x793   : > { %5119 = vpow2.f32 %v2561_v25  ;;  %v2563_v8 = vmul.f32 1.442695, %v2558_v41  ;;  %v2548_v26 = vsel %vm5829_vm15, %v4917_v28, %v2547_v50 }
 0x794   : > { %5121 = vpow2.f32 %v2565_v19  ;;  %v2567_v46 = vmul.f32 1.442695, %v2560_v61  ;;  %v2552_v48 = vsel %vm5829_vm15, %v4918_v60, %v2551_v53  ;;  %v2555_v57 = vsub.f32 %v5841_v18, %v2548_v26 }
 0x795   : > { %5123 = vpow2.f32 %v2563_v8  ;;  %v2556_v30 = vsub.f32 %v5844_v59, %v2552_v48 }
 0x796   : > { %5125 = vpow2.f32 %v2567_v46 }
 0x7a0   : > { %v5120_v39 = vpop.eup %5119 }
 0x7a1   : > { %v5122_v33 = vpop.eup %5121 }
 0x7a2   : > { %v5124_v14 = vpop.eup %5123 }
 0x7a3   : > { %v5126_v22 = vpop.eup %5125  ;;  %v2573_v32 = vcombine.low %v5120_v39, %v5124_v14  ;;  %v4920_v14 = vld [vmem:[%s6960_s5 + $0x20] sm:$0xff] }
 0x7a4   : > { %v2574_v3 = vcombine.low %v5122_v33, %v5126_v22 }
 0x7a5   : > { %v2577_v45 = vmul.f32 %v2573_v32, %v2555_v57  ;;  %v4921_v57 = vld [vmem:[%s6960_s5 + $0x28] sm:$0xff] }
 0x7a6   : > { %v2578_v47 = vmul.f32 %v2574_v3, %v2556_v30 }
 0x7a7   : > { %v2586_v31 = vcombine.high %v2577_v45, %v2577_v45  ;;  %v2590_v29 = vmul.f32 %v2582_v43, %v2577_v45 }
 0x7a8   : > { %v2587_v27 = vcombine.high %v2578_v47, %v2578_v47  ;;  %v2592_v10 = vmul.f32 %v2582_v43, %v2578_v47 }
 0x7a9   : > { %v2591_v37 = vmul.f32 %v2586_v31, %v2582_v43 }
 0x7aa   : > { %v2593_v54 = vmul.f32 %v2587_v27, %v2582_v43 }
 0x7ab   : > { %v2598_v34 = vcombine.low %v2590_v29, %v2591_v37  ;;  %v4942_v29 = vld [vmem:[%s6961_s6 + $0x80] sm:$0xff]  ;;  %v4943_v37 = vld [vmem:[%s6961_s6 + $0x88] sm:$0xff] }
 0x7ac   : > { %v2599_v1 = vcombine.low %v2592_v10, %v2593_v54  ;;  %v4945_v10 = vld [vmem:[%s6961_s6 + $0x98] sm:$0xff]  ;;  %v4946_v54 = vld [vmem:[%s6961_s6 + $0xa0] sm:$0xff] }
 0x7ad   : > { %v6204_v18 = vadd.f32 %v2598_v34, %v5847_v49  ;;  %v4922_v49 = vld [vmem:[%s6959_s4 + $0x40] sm:$0xff]  ;;  %v4947_v34 = vld [vmem:[%s6961_s6 + $0xa8] sm:$0xff] }
 0x7ae   : > { %v6207_v59 = vadd.f32 %v2599_v1, %v7010_v56  ;;  %v4948_v1 = vld [vmem:[%s6961_s6 + $0xb0] sm:$0xff]  ;;  %v6323_v56 = vpop.permute.xlu0 %3056 }
 0x7af   : > { %v6210_v63 = vmul.f32 %v2616_v15, %v6204_v18 }
 0x7b0   : > { %v6213_v9 = vmul.f32 %v2616_v15, %v6207_v59  ;;  %v4949_v15 = vld [vmem:[%s6961_s6 + $0xb8] sm:$0xff] }
 0x7b1   : > { %v2630_v38 = vcombine.high %v6210_v63, %v6210_v63 }
 0x7b2   : > { %7011 = vst [vmem:[#allocation13_spill] sm:$0xff] %v6213_v9  ;;  %v2631_v16 = vcombine.high %v6213_v9, %v6213_v9 }
 0x7b3   : > { %4926 = vmatprep.subr.msk.mxu0 %vm7012_vm9, %v2630_v38  ;;  %vm7027_vm9 = vmmov %vm7025_vm1  ;;  %v6325_v38 = vpop.permute.xlu1 %3061 }
 0x7b4   : > { %4932 = vmatprep.subr.msk.mxu1 %vm7013_vm11, %v2631_v16  ;;  %4927 = vmatpush1.msk.msra.mxu0 %vm7014_vm14, %v6210_v63  ;;  %vm7028_vm11 = vcmask 130048  }
 0x7b5   : > { %4933 = vmatpush1.msk.msra.mxu1 %vm7015_vm8, %v6213_v9  ;;  %4928 = vmatmul.mubr.msk.f32.vlgmr.msra.gmra.mxu0 %vm7016_vm4, %v4922_v49  ;;  %vm7029_vm14 = vmmov %vm7028_vm11 }
 0x7b6   : > { %4934 = vmatmul.mubr.msk.f32.vlgmr.msra.gmra.mxu1 %vm7017_vm5, %v4922_v49  ;;  %2722 = vmatprep.mubr.f32.mxu0 %v6996_v55  ;;  %vm7030_vm8 = vmmov %vm7028_vm11 }
 0x7b7   : > { %2811 = vmatprep.mubr.f32.mxu1 %v6996_v55  ;;  %vm7031_vm4 = vmmov %vm7030_vm8 }
 0x7b8   : > { %vm7032_vm5 = vmmov %vm7031_vm4 }
 0x7b9   : > { %4929 = vmatmul.mubr.msk.f32.gmra.mxu0 %vm7018_vm10, %v4923_v24  ;;  %vm7033_vm10 = vmmov %vm7031_vm4 }
 0x7ba   : > { %4935 = vmatmul.mubr.msk.f32.gmra.mxu1 %vm7019_vm13, %v4923_v24  ;;  %2728 = vmatprep.mubr.f32.mxu0 %v6996_v55  ;;  %vm7034_vm13 = vmmov %vm7031_vm4 }
 0x7bb   : > { %2817 = vmatprep.mubr.f32.mxu1 %v6996_v55 }
 0x7bd   : > { %4930 = vmatmul.mubr.msk.f32.gmra.mxu0 %vm7020_vm3, %v4924_v12  ;;  %vm7035_vm3 = vmmov %vm7031_vm4 }
 0x7be   : > { %4936 = vmatmul.mubr.msk.f32.gmra.mxu1 %vm7021_vm12, %v4924_v12  ;;  %2734 = vmatprep.mubr.f32.mxu0 %v6996_v55  ;;  %vm7036_vm12 = vmmov %vm7035_vm3 }
 0x7bf   : > { %2823 = vmatprep.mubr.f32.mxu1 %v6996_v55 }
 0x7c1   : > { %4931 = vmatmul.mubr.msk.f32.gmra.mxu0 %vm7022_vm0, %v4925_v23  ;;  %vm7037_vm0 = vmmov %vm7035_vm3 }
 0x7c2   : > { %4937 = vmatmul.mubr.msk.f32.gmra.mxu1 %vm7023_vm2, %v4925_v23  ;;  %2916 = vmatprep.mubr.f32.mxu0 %v6996_v55  ;;  %vm7038_vm2 = vmmov %vm7037_vm0 }
 0x7c3   : > { %2993 = vmatprep.mubr.f32.mxu1 %v6996_v55 }
 0x875   : > { %v2718_v17 = vpop.f32.mrf.mxu0 }
 0x876   : > { %v2807_v52 = vpop.f32.mrf.mxu1  ;;  %v2830_v33 = vmax.f32 %v2718_v17, 0.0  ;;  %v3047_v17 = vpop.permute.xlu0 %3046 }
 0x877   : > { %v2720_v35 = vpop.f32.mrf.mxu0  ;;  %v2832_v22 = vmax.f32 %v2807_v52, 0.0 }
 0x878   : > { %v2809_v40 = vpop.f32.mrf.mxu1  ;;  %v2831_v39 = vmax.f32 %v2720_v35, 0.0  ;;  %v6327_v35 = vpop.permute.xlu1 %3051 }
 0x879   : > { %v2724_v0 = vpop.f32.mrf.mxu0  ;;  %v2833_v48 = vmax.f32 %v2809_v40, 0.0 }
 0x87a   : > { %v2813_v7 = vpop.f32.mrf.mxu1  ;;  %v2834_v60 = vmax.f32 %v2724_v0, 0.0 }
 0x87b   : > { %v2726_v2 = vpop.f32.mrf.mxu0  ;;  %v2836_v26 = vmax.f32 %v2813_v7, 0.0 }
 0x87c   : > { %v2815_v13 = vpop.f32.mrf.mxu1  ;;  %v2835_v28 = vmax.f32 %v2726_v2, 0.0 }
 0x87d   : > { %v2730_v6 = vpop.f32.mrf.mxu0  ;;  %v2837_v53 = vmax.f32 %v2815_v13, 0.0 }
 0x87e   : > { %v2819_v20 = vpop.f32.mrf.mxu1  ;;  %v2838_v62 = vmax.f32 %v2730_v6, 0.0  ;;  %v3037_v6 = vpop.permute.xlu0 %3036 }
 0x87f   : > { %v2732_v36 = vpop.f32.mrf.mxu0  ;;  %v2840_v50 = vmax.f32 %v2819_v20, 0.0 }
 0x880   : > { %v2821_v11 = vpop.f32.mrf.mxu1  ;;  %v2839_v58 = vmax.f32 %v2732_v36, 0.0  ;;  %v3042_v36 = vpop.permute.xlu1 %3041 }
 0x881   : > { %v2736_v44 = vpop.f32.mrf.mxu0  ;;  %v2841_v21 = vmax.f32 %v2821_v11, 0.0 }
 0x882   : > { %v2825_v25 = vpop.f32.mrf.mxu1  ;;  %v2842_v8 = vmax.f32 %v2736_v44, 0.0 }
 0x883   : > { %v2738_v41 = vpop.f32.mrf.mxu0  ;;  %v2844_v5 = vmax.f32 %v2825_v25, 0.0 }
 0x884   : > { %v2843_v19 = vmax.f32 %v2738_v41, 0.0  ;;  %v2827_v61 = vpop.f32.mrf.mxu1 }
 0x885   : > { %v2845_v46 = vmax.f32 %v2827_v61, 0.0  ;;  %v3027_v61 = vpop.permute.xlu0 %3026 }
 0x886   : > { %2876 = vmatprep.subr.mxu0 %v2843_v19 }
 0x887   : > { %2953 = vmatprep.subr.mxu1 %v2845_v46  ;;  %2877 = vmatpush1.msra.mxu0 %v2842_v8  ;;  %v3032_v46 = vpop.permute.xlu1 %3031 }
 0x888   : > { %2954 = vmatpush1.msra.mxu1 %v2844_v5  ;;  %2878 = vmatprep.subr.mxu0 %v2839_v58 }
 0x889   : > { %2955 = vmatprep.subr.mxu1 %v2841_v21  ;;  %2879 = vmatpush1.msra.mxu0 %v2838_v62 }
 0x88a   : > { %2956 = vmatpush1.msra.mxu1 %v2840_v50  ;;  %2880 = vmatprep.subr.mxu0 %v2835_v28 }
 0x88b   : > { %2957 = vmatprep.subr.mxu1 %v2837_v53  ;;  %2881 = vmatpush1.msra.mxu0 %v2834_v60 }
 0x88c   : > { %2958 = vmatpush1.msra.mxu1 %v2836_v26  ;;  %2882 = vmatprep.subr.mxu0 %v2831_v39 }
 0x88d   : > { %2959 = vmatprep.subr.mxu1 %v2833_v48  ;;  %2883 = vmatpush1.msra.mxu0 %v2830_v33 }
 0x88e   : > { %2960 = vmatpush1.msra.mxu1 %v2832_v22  ;;  %4938 = vmatmul.mubr.msk.f32.vlgmr.msra.gmra.mxu0 %vm7024_vm7, %v4920_v14  ;;  %vm7039_vm7 = vmmov %vm7037_vm0 }
 0x88f   : > { %4940 = vmatmul.mubr.msk.f32.vlgmr.msra.gmra.mxu1 %vm7025_vm1, %v4920_v14  ;;  %2922 = vmatprep.mubr.f32.mxu0 %v6996_v55  ;;  %vm7040_vm1 = vmmov %vm7037_vm0 }
 0x890   : > { %2999 = vmatprep.mubr.f32.mxu1 %v6996_v55 }
 0x892   : > { %4939 = vmatmul.mubr.msk.f32.gmra.mxu0 %vm7026_vm6, %v4921_v57  ;;  %vm7041_vm6 = vmmov %vm7037_vm0 }
 0x893   : > { %4941 = vmatmul.mubr.msk.f32.gmra.mxu1 %vm7027_vm9, %v4921_v57  ;;  %3152 = vmatprep.mubr.f32.mxu0 %v6996_v55  ;;  %vm7042_vm9 = vmmov %vm7037_vm0 }
 0x894   : > { %3265 = vmatprep.mubr.f32.mxu1 %v6996_v55 }
 0x94e   : > { %v2918_v32 = vpop.f32.mrf.mxu0 }
 0x94f   : > { %v2995_v30 = vpop.f32.mrf.mxu1 }
 0x950   : > { %v2920_v3 = vpop.f32.mrf.mxu0 }
 0x951   : > { %v2997_v45 = vpop.f32.mrf.mxu1 }
 0x952   : > { %v2924_v47 = vpop.f32.mrf.mxu0 }
 0x953   : > { %v3001_v31 = vpop.f32.mrf.mxu1 }
 0x954   : > { %v2926_v43 = vpop.f32.mrf.mxu0 }
 0x955   : > { %v3003_v27 = vpop.f32.mrf.mxu1  ;;  %3116 = vmatprep.subr.mxu0 %v2926_v43 }
 0x956   : > { %3229 = vmatprep.subr.mxu1 %v3003_v27  ;;  %3117 = vmatpush1.msra.mxu0 %v2924_v47 }
 0x957   : > { %3230 = vmatpush1.msra.mxu1 %v3001_v31  ;;  %3118 = vmatprep.subr.mxu0 %v2920_v3 }
 0x958   : > { %3231 = vmatprep.subr.mxu1 %v2997_v45  ;;  %3119 = vmatpush1.msra.mxu0 %v2918_v32 }
 0x959   : > { %3232 = vmatpush1.msra.mxu1 %v2995_v30  ;;  %4958 = vmatmul.mubr.msk.f32.vlgmr.msra.gmra.mxu0 %vm7028_vm11, %v4942_v29  ;;  %vm7043_vm11 = vmmov %vm7037_vm0 }
 0x95a   : > { %4966 = vmatmul.mubr.msk.f32.vlgmr.msra.gmra.mxu1 %vm7029_vm14, %v4942_v29  ;;  %3158 = vmatprep.mubr.f32.mxu0 %v6996_v55 }
 0x95b   : > { %3271 = vmatprep.mubr.f32.mxu1 %v6996_v55 }
 0x95d   : > { %4959 = vmatmul.mubr.msk.f32.gmra.mxu0 %vm7030_vm8, %v4943_v37 }
 0x95e   : > { %4967 = vmatmul.mubr.msk.f32.gmra.mxu1 %vm7031_vm4, %v4943_v37  ;;  %3164 = vmatprep.mubr.f32.mxu0 %v6996_v55 }
 0x95f   : > { %3277 = vmatprep.mubr.f32.mxu1 %v6996_v55 }
 0x961   : > { %4960 = vmatmul.mubr.msk.f32.gmra.mxu0 %vm7032_vm5, %v4944_v42 }
 0x962   : > { %4968 = vmatmul.mubr.msk.f32.gmra.mxu1 %vm7033_vm10, %v4944_v42  ;;  %3170 = vmatprep.mubr.f32.mxu0 %v6996_v55 }
 0x963   : > { %3283 = vmatprep.mubr.f32.mxu1 %v6996_v55 }
 0x965   : > { %4961 = vmatmul.mubr.msk.f32.gmra.mxu0 %vm7034_vm13, %v4945_v10 }
 0x966   : > { %4969 = vmatmul.mubr.msk.f32.gmra.mxu1 %vm7035_vm3, %v4945_v10  ;;  %3176 = vmatprep.mubr.f32.mxu0 %v6996_v55 }
 0x967   : > { %3289 = vmatprep.mubr.f32.mxu1 %v6996_v55 }
 0x969   : > { %4962 = vmatmul.mubr.msk.f32.gmra.mxu0 %vm7036_vm12, %v4946_v54 }
 0x96a   : > { %4970 = vmatmul.mubr.msk.f32.gmra.mxu1 %vm7037_vm0, %v4946_v54  ;;  %3182 = vmatprep.mubr.f32.mxu0 %v6996_v55 }
 0x96b   : > { %3295 = vmatprep.mubr.f32.mxu1 %v6996_v55 }
 0x96d   : > { %4963 = vmatmul.mubr.msk.f32.gmra.mxu0 %vm7038_vm2, %v4947_v34 }
 0x96e   : > { %4971 = vmatmul.mubr.msk.f32.gmra.mxu1 %vm7039_vm7, %v4947_v34  ;;  %3188 = vmatprep.mubr.f32.mxu0 %v6996_v55 }
 0x96f   : > { %3301 = vmatprep.mubr.f32.mxu1 %v6996_v55 }
 0x971   : > { %4964 = vmatmul.mubr.msk.f32.gmra.mxu0 %vm7040_vm1, %v4948_v1 }
 0x972   : > { %4972 = vmatmul.mubr.msk.f32.gmra.mxu1 %vm7041_vm6, %v4948_v1  ;;  %3194 = vmatprep.mubr.f32.mxu0 %v6996_v55 }
 0x973   : > { %3307 = vmatprep.mubr.f32.mxu1 %v6996_v55 }
 0x975   : > { %4965 = vmatmul.mubr.msk.f32.gmra.mxu0 %vm7042_vm9, %v4949_v15 }
 0x976   : > { %4973 = vmatmul.mubr.msk.f32.gmra.mxu1 %vm7043_vm11, %v4949_v15  ;;  %3479 = vmatprep.mubr.f32.mxu0 %v6996_v55 }
 0x977   : > { %3550 = vmatprep.mubr.f32.mxu1 %v6996_v55 }
 0xa19   : > { %v3154_v16 = vpop.f32.mrf.mxu0 }
 0xa1a   : > { %v3267_v49 = vpop.f32.mrf.mxu1  ;;  %v6329_v58 = vadd.f32 %v3154_v16, %v3027_v61 }
 0xa1b   : > { %v3156_v24 = vpop.f32.mrf.mxu0  ;;  %v6337_v53 = vadd.f32 %v3267_v49, %v3027_v61 }
 0xa1c   : > { %v3269_v12 = vpop.f32.mrf.mxu1  ;;  %v6331_v62 = vadd.f32 %v3156_v24, %v3027_v61  ;;  %v6342_v33 = vmul.f32 0.01, %v6329_v58 }
 0xa1d   : > { %v3160_v23 = vpop.f32.mrf.mxu0  ;;  %v6344_v48 = vadd.f32 %v3269_v12, %v3027_v61 }
 0xa1e   : > { %v3273_v52 = vpop.f32.mrf.mxu1  ;;  %v6333_v21 = vadd.f32 %v3160_v23, %v3032_v46  ;;  %v6351_v32 = vmul.f32 0.01, %v6331_v62 }
 0xa1f   : > { %v3162_v40 = vpop.f32.mrf.mxu0  ;;  %v6356_v3 = vadd.f32 %v3273_v52, %v3032_v46 }
 0xa20   : > { %v3275_v0 = vpop.f32.mrf.mxu1  ;;  %v6335_v50 = vadd.f32 %v3162_v40, %v3032_v46  ;;  %v6354_v30 = vmul.f32 0.01, %v6333_v21  ;;  %vm3318_vm4 = vcmp.ge.f32.partialorder %v6333_v21, 0.0 }
 0xa21   : > { %v3166_v7 = vpop.f32.mrf.mxu0  ;;  %v6363_v43 = vadd.f32 %v3275_v0, %v3032_v46 }
 0xa22   : > { %v3279_v2 = vpop.f32.mrf.mxu1  ;;  %v6339_v39 = vadd.f32 %v3166_v7, %v3037_v6  ;;  %v6361_v31 = vmul.f32 0.01, %v6335_v50  ;;  %vm3319_vm13 = vcmp.ge.f32.partialorder %v6335_v50, 0.0 }
 0xa23   : > { %v3168_v13 = vpop.f32.mrf.mxu0  ;;  %v6372_v10 = vadd.f32 %v3279_v2, %v3037_v6 }
 0xa24   : > { %v3281_v20 = vpop.f32.mrf.mxu1  ;;  %v6346_v14 = vadd.f32 %v3168_v13, %v3037_v6  ;;  %v6370_v42 = vmul.f32 0.01, %v6339_v39  ;;  %vm3322_vm6 = vcmp.ge.f32.partialorder %v6339_v39, 0.0 }
 0xa25   : > { %v3172_v11 = vpop.f32.mrf.mxu0  ;;  %v6374_v54 = vadd.f32 %v3281_v20, %v3037_v6 }
 0xa26   : > { %v3285_v44 = vpop.f32.mrf.mxu1  ;;  %v6348_v22 = vadd.f32 %v3172_v11, %v3042_v36  ;;  %v6380_v15 = vmul.f32 0.01, %v6346_v14  ;;  %vm3323_vm1 = vcmp.ge.f32.partialorder %v6346_v14, 0.0 }
 0xa27   : > { %v3174_v25 = vpop.f32.mrf.mxu0  ;;  %v6385_v49 = vadd.f32 %v3285_v44, %v3042_v36 }
 0xa28   : > { %v3287_v41 = vpop.f32.mrf.mxu1  ;;  %v6358_v45 = vadd.f32 %v3174_v25, %v3042_v36  ;;  %v6383_v16 = vmul.f32 0.01, %v6348_v22 }
 0xa29   : > { %v3178_v19 = vpop.f32.mrf.mxu0  ;;  %v6393_v52 = vadd.f32 %v3287_v41, %v3042_v36 }
 0xa2a   : > { %v3291_v8 = vpop.f32.mrf.mxu1  ;;  %v6365_v27 = vadd.f32 %v3178_v19, %v3047_v17  ;;  %v6391_v23 = vmul.f32 0.01, %v6358_v45 }
 0xa2b   : > { %v3180_v5 = vpop.f32.mrf.mxu0  ;;  %v6395_v40 = vadd.f32 %v3291_v8, %v3047_v17 }
 0xa2c   : > { %v3293_v28 = vpop.f32.mrf.mxu1  ;;  %v6367_v29 = vadd.f32 %v3180_v5, %v3047_v17  ;;  %v6401_v2 = vmul.f32 0.01, %v6365_v27 }
 0xa2d   : > { %v3184_v60 = vpop.f32.mrf.mxu0  ;;  %v6406_v6 = vadd.f32 %v3293_v28, %v3047_v17 }
 0xa2e   : > { %v3297_v26 = vpop.f32.mrf.mxu1  ;;  %v6377_v34 = vadd.f32 %v3184_v60, %v6327_v35  ;;  %v6404_v13 = vmul.f32 0.01, %v6367_v29  ;;  %vm3331_vm8 = vcmp.ge.f32.partialorder %v6367_v29, 0.0 }
 0xa2f   : > { %v3186_v57 = vpop.f32.mrf.mxu0  ;;  %v6414_v44 = vadd.f32 %v3297_v26, %v6327_v35 }
 0xa30   : > { %v3299_v47 = vpop.f32.mrf.mxu1  ;;  %v6388_v24 = vadd.f32 %v3186_v57, %v6327_v35  ;;  %vm3334_vm14 = vcmp.ge.f32.partialorder %v6377_v34, 0.0  ;;  %v6411_v36 = vmul.f32 0.01, %v6377_v34 }
 0xa31   : > { %v3190_v37 = vpop.f32.mrf.mxu0  ;;  %v6419_v61 = vadd.f32 %v3299_v47, %v6327_v35 }
 0xa32   : > { %v3303_v1 = vpop.f32.mrf.mxu1  ;;  %v6398_v0 = vadd.f32 %v3190_v37, %v6323_v56  ;;  %v3367_v19 = vmul.f32 0.01, %v6388_v24  ;;  %vm3335_vm5 = vcmp.ge.f32.partialorder %v6388_v24, 0.0 }
 0xa33   : > { %v3192_v12 = vpop.f32.mrf.mxu0  ;;  %v3304_v28 = vadd.f32 %v3303_v1, %v6323_v56 }
 0xa34   : > { %v3305_v7 = vpop.f32.mrf.mxu1  ;;  %v3193_v20 = vadd.f32 %v3192_v12, %v6323_v56  ;;  %v3370_v5 = vmul.f32 0.01, %v6398_v0  ;;  %vm3338_vm9 = vcmp.ge.f32.partialorder %v6398_v0, 0.0 }
 0xa35   : > { %v3196_v11 = vpop.f32.mrf.mxu0  ;;  %v3306_v17 = vadd.f32 %v3305_v7, %v6323_v56  ;;  %vm3340_vm3 = vcmp.ge.f32.partialorder %v3304_v28, 0.0 }
 0xa36   : > { %v3197_v25 = vadd.f32 %v3196_v11, %v6325_v38  ;;  %v3309_v41 = vpop.f32.mrf.mxu1  ;;  %v3371_v35 = vmul.f32 0.01, %v3193_v20  ;;  %vm3339_vm10 = vcmp.ge.f32.partialorder %v3193_v20, 0.0  ;;  %v3369_v11 = vmul.f32 0.01, %v6419_v61 }
 0xa37   : > { %v3310_v8 = vadd.f32 %v3309_v41, %v6325_v38  ;;  %v3198_v46 = vpop.f32.mrf.mxu0  ;;  %v3373_v7 = vmul.f32 0.01, %v3306_v17  ;;  %vm3341_vm11 = vcmp.ge.f32.partialorder %v3306_v17, 0.0 }
 0xa38   : > { %v3199_v60 = vadd.f32 %v3198_v46, %v6325_v38  ;;  %v3311_v26 = vpop.f32.mrf.mxu1  ;;  %v3374_v57 = vmul.f32 0.01, %v3197_v25  ;;  %vm3342_vm12 = vcmp.ge.f32.partialorder %v3197_v25, 0.0 }
 0xa39   : > { %v3312_v47 = vadd.f32 %v3311_v26, %v6325_v38  ;;  %v3376_v37 = vmul.f32 0.01, %v3310_v8  ;;  %vm3344_vm2 = vcmp.ge.f32.partialorder %v3310_v8, 0.0  ;;  %v3372_v38 = vmul.f32 0.01, %v3304_v28 }
 0xa3a   : > { %v3375_v12 = vmul.f32 0.01, %v3199_v60  ;;  %vm3343_vm0 = vcmp.ge.f32.partialorder %v3199_v60, 0.0  ;;  %v3406_v46 = vsel %vm3342_vm12, %v3197_v25, %v3374_v57  ;;  %v3368_v26 = vmul.f32 0.01, %v6414_v44 }
 0xa3b   : > { %v3377_v56 = vmul.f32 0.01, %v3312_v47  ;;  %vm3345_vm7 = vcmp.ge.f32.partialorder %v3312_v47, 0.0  ;;  %v3408_v9 = vsel %vm3344_vm2, %v3310_v8, %v3376_v37  ;;  %v3405_v25 = vsel %vm3341_vm11, %v3306_v17, %v3373_v7 }
 0xa3c   : > { %v3407_v1 = vsel %vm3343_vm0, %v3199_v60, %v3375_v12  ;;  %v3403_v60 = vsel %vm3339_vm10, %v3193_v20, %v3371_v35  ;;  %vm3337_vm0 = vcmp.ge.f32.partialorder %v6419_v61, 0.0  ;;  %v3365_v12 = vmul.f32 0.01, %v6406_v6 }
 0xa3d   : > { %3431 = vmatprep.subr.mxu0 %v3407_v1  ;;  %v3409_v41 = vsel %vm3345_vm7, %v3312_v47, %v3377_v56  ;;  %vm3336_vm7 = vcmp.ge.f32.partialorder %v6414_v44, 0.0  ;;  %v3402_v57 = vsel %vm3338_vm9, %v6398_v0, %v3370_v5  ;;  %vm3315_vm12 = vcmp.ge.f32.partialorder %v6331_v62, 0.0 }
 0xa3e   : > { %3502 = vmatprep.subr.mxu1 %v3409_v41  ;;  %3432 = vmatpush1.msra.mxu0 %v3406_v46  ;;  %vm3314_vm2 = vcmp.ge.f32.partialorder %v6329_v58, 0.0  ;;  %v3364_v20 = vmul.f32 0.01, %v6395_v40  ;;  %v3404_v8 = vsel %vm3340_vm3, %v3304_v28, %v3372_v38  ;;  %vm3333_vm10 = vcmp.ge.f32.partialorder %v6406_v6, 0.0 }
 0xa3f   : > { %3503 = vmatpush1.msra.mxu1 %v3408_v9  ;;  %3433 = vmatprep.subr.mxu0 %v3403_v60  ;;  %v3399_v9 = vsel %vm3335_vm5, %v6388_v24, %v3367_v19  ;;  %v3361_v17 = vmul.f32 0.01, %v6393_v52  ;;  %vm3332_vm9 = vcmp.ge.f32.partialorder %v6395_v40, 0.0  ;;  %v3401_v0 = vsel %vm3337_vm0, %v6419_v61, %v3369_v11 }
 0xa40   : > { %3504 = vmatprep.subr.mxu1 %v3405_v25  ;;  %3434 = vmatpush1.msra.mxu0 %v3402_v57  ;;  %v3398_v5 = vsel %vm3334_vm14, %v6377_v34, %v6411_v36  ;;  %v3360_v28 = vmul.f32 0.01, %v6385_v49  ;;  %v3400_v24 = vsel %vm3336_vm7, %v6414_v44, %v3368_v26  ;;  %v3395_v19 = vsel %vm3331_vm8, %v6367_v29, %v6404_v13 }
 0xa41   : > { %3505 = vmatpush1.msra.mxu1 %v3404_v8  ;;  %3435 = vmatprep.subr.mxu0 %v3399_v9  ;;  %vm3329_vm5 = vcmp.ge.f32.partialorder %v6393_v52, 0.0  ;;  %v3357_v61 = vmul.f32 0.01, %v6374_v54  ;;  %vm3328_vm3 = vcmp.ge.f32.partialorder %v6385_v49, 0.0  ;;  %v3397_v34 = vsel %vm3333_vm10, %v6406_v6, %v3365_v12 }
 0xa42   : > { %3506 = vmatprep.subr.mxu1 %v3401_v0  ;;  %3436 = vmatpush1.msra.mxu0 %v3398_v5  ;;  %vm7044_vm14 = vcmp.ge.f32.partialorder %v6365_v27, 0.0  ;;  %v3356_v44 = vmul.f32 0.01, %v6372_v10  ;;  %v3396_v29 = vsel %vm3332_vm9, %v6395_v40, %v3364_v20  ;;  %vm7045_vm8 = vcmp.ge.f32.partialorder %v6358_v45, 0.0 }
 0xa43   : > { %3507 = vmatpush1.msra.mxu1 %v3400_v24  ;;  %3437 = vmatprep.subr.mxu0 %v3395_v19  ;;  %v3394_v36 = vsel %vm7044_vm14, %v6365_v27, %v6401_v2  ;;  %v3391_v13 = vsel %vm7045_vm8, %v6358_v45, %v6391_v23  ;;  %vm3325_vm11 = vcmp.ge.f32.partialorder %v6374_v54, 0.0  ;;  %v3353_v6 = vmul.f32 0.01, %v6363_v43 }
 0xa44   : > { %3508 = vmatprep.subr.mxu1 %v3397_v34  ;;  %3438 = vmatpush1.msra.mxu0 %v3394_v36  ;;  %vm3324_vm0 = vcmp.ge.f32.partialorder %v6372_v10, 0.0  ;;  %v3393_v27 = vsel %vm3329_vm5, %v6393_v52, %v3361_v17  ;;  %vm7046_vm7 = vcmp.ge.f32.partialorder %v6348_v22, 0.0  ;;  %v3352_v2 = vmul.f32 0.01, %v6356_v3 }
 0xa45   : > { %3509 = vmatpush1.msra.mxu1 %v3396_v29  ;;  %3439 = vmatprep.subr.mxu0 %v3391_v13  ;;  %v3390_v40 = vsel %vm7046_vm7, %v6348_v22, %v6383_v16  ;;  %v3392_v45 = vsel %vm3328_vm3, %v6385_v49, %v3360_v28  ;;  %v3387_v23 = vsel %vm3323_vm1, %v6346_v14, %v6380_v15  ;;  %vm3321_vm10 = vcmp.ge.f32.partialorder %v6363_v43, 0.0  ;;  %v3611_v13 = vpop.permute.xlu1 %3610 }
 0xa46   : > { %3510 = vmatprep.subr.mxu1 %v3393_v27  ;;  %3440 = vmatpush1.msra.mxu0 %v3390_v40  ;;  %v3349_v52 = vmul.f32 0.01, %v6344_v48  ;;  %vm3320_vm9 = vcmp.ge.f32.partialorder %v6356_v3, 0.0  ;;  %v3389_v22 = vsel %vm3325_vm11, %v6374_v54, %v3357_v61  ;;  %v3386_v16 = vsel %vm3322_vm6, %v6339_v39, %v6370_v42 }
 0xa47   : > { %3511 = vmatpush1.msra.mxu1 %v3392_v45  ;;  %3441 = vmatprep.subr.mxu0 %v3387_v23  ;;  %v3348_v49 = vmul.f32 0.01, %v6337_v53  ;;  %v3388_v14 = vsel %vm3324_vm0, %v6372_v10, %v3356_v44  ;;  %v3383_v15 = vsel %vm3319_vm13, %v6335_v50, %v6361_v31  ;;  %vm3317_vm1 = vcmp.ge.f32.partialorder %v6344_v48, 0.0 }
 0xa48   : > { %3512 = vmatprep.subr.mxu1 %v3389_v22  ;;  %3442 = vmatpush1.msra.mxu0 %v3386_v16  ;;  %vm3316_vm5 = vcmp.ge.f32.partialorder %v6337_v53, 0.0  ;;  %v3385_v39 = vsel %vm3321_vm10, %v6363_v43, %v3353_v6  ;;  %v3382_v42 = vsel %vm3318_vm4, %v6333_v21, %v6354_v30  ;;  %v3384_v50 = vsel %vm3320_vm9, %v6356_v3, %v3352_v2  ;;  %v4974_v43 = vld [vmem:[%s6962_s7 + $0x10] sm:$0x3f]  ;;  %v3638_v2 = vpop.permute.xlu0 %3637 }
 0xa49   : > { %3513 = vmatpush1.msra.mxu1 %v3388_v14  ;;  %3443 = vmatprep.subr.mxu0 %v3383_v15  ;;  %v3379_v31 = vsel %vm3315_vm12, %v6331_v62, %v6351_v32  ;;  %v3381_v10 = vsel %vm3317_vm1, %v6344_v48, %v3349_v52  ;;  %v3378_v21 = vsel %vm3314_vm2, %v6329_v58, %v6342_v33  ;;  %vm7047_vm4 = vcmask 523264  }
 0xa4a   : > { %3514 = vmatprep.subr.mxu1 %v3385_v39  ;;  %3444 = vmatpush1.msra.mxu0 %v3382_v42  ;;  %v3380_v30 = vsel %vm3316_vm5, %v6337_v53, %v3348_v49  ;;  %vm7048_vm13 = vmmov %vm7047_vm4  ;;  %v3645_v16 = vrot.slane %v3638_v2, %v7001_v4  ;;  %v7049_v49 = vld [vmem:[#allocation13_spill] sm:$0xff]  ;;  %vm7050_vm6 = vcmask 1042432   ;;  %vm7054_vm14 = vcmask 23552  }
 0xa4b   : > { %3515 = vmatpush1.msra.mxu1 %v3384_v50  ;;  %3445 = vmatprep.subr.mxu0 %v3379_v31  ;;  %vm7051_vm12 = vmmov %vm7050_vm6  ;;  %v4987_v50 = vld [vmem:[%s6959_s4 + $0x68] sm:$0xff]  ;;  %v4988_v31 = vld [vmem:[%s6959_s4 + $0x70] sm:$0xff]  ;;  %vm7062_vm5 = vcmask 261120  }
 0xa4c   : > { %3516 = vmatprep.subr.mxu1 %v3381_v10  ;;  %3446 = vmatpush1.msra.mxu0 %v3378_v21  ;;  %vm7052_vm2 = vmmov %vm7050_vm6  ;;  %v5008_v2 = vld [vmem:[%s6961_s6 + $0xd0] sm:$0xff] }
 0xa4d   : > { %3517 = vmatpush1.msra.mxu1 %v3380_v30  ;;  %4975 = vmatmul.mubr.msk.f32.vlgmr.msra.gmra.mxu0 %vm7047_vm4, %v4974_v43  ;;  %vm7053_vm3 = vmmov %vm7052_vm2 }
 0xa4e   : > { %4976 = vmatmul.mubr.msk.f32.vlgmr.msra.gmra.mxu1 %vm7048_vm13, %v4974_v43  ;;  %3745 = vmatprep.mubr.f32.mxu0 %v6996_v55  ;;  %vm7055_vm8 = vmmov %vm7054_vm14  ;;  %v4989_v43 = vld [vmem:[%s6959_s4 + $0x78] sm:$0xff] }
 0xa4f   : > { %3834 = vmatprep.mubr.f32.mxu1 %v6996_v55  ;;  %vm7056_vm11 = vmmov %vm7055_vm8 }
 0xa50   : > { %vm7057_vm0 = vmmov %vm7055_vm8 }
 0xa51   : > { %vm7058_vm7 = vmmov %vm7057_vm0 }
 0xa52   : > { %vm7059_vm10 = vmmov %vm7057_vm0 }
 0xa53   : > { %vm7060_vm9 = vmmov %vm7057_vm0 }
 0xa54   : > { %vm7061_vm1 = vmmov %vm7057_vm0 }
 0xa55   : > { %vm7063_vm4 = vmmov %vm7062_vm5 }
 0xa56   : > { %vm7064_vm13 = vmmov %vm7063_vm4 }
 0xb0d   : > { %v3481_v62 = vpop.f32.mrf.mxu0 }
 0xb0e   : > { %v4977_v48 = vclamps-f32 %v3481_v62, 10.0  ;;  %v3552_v32 = vpop.f32.mrf.mxu1 }
 0xb0f   : > { %v4979_v3 = vclamps-f32 %v3552_v32, 10.0  ;;  %v3483_v58 = vpop.f32.mrf.mxu0 }
 0xb10   : > { %v3586_v33 = vsub.f32 0.0, %v4977_v48  ;;  %v4978_v54 = vclamps-f32 %v3483_v58, 10.0  ;;  %v3554_v35 = vpop.f32.mrf.mxu1  ;;  %v3570_v41 = vcombine.low %v3481_v62, %v3483_v58  ;;  %v3571_v46 = vcombine.high %v3481_v62, %v3483_v58 }
 0xb11   : > { %v3588_v47 = vsub.f32 0.0, %v4979_v3  ;;  %v4980_v37 = vclamps-f32 %v3554_v35, 10.0  ;;  %v3572_v26 = vcombine.low %v3552_v32, %v3554_v35  ;;  %v3573_v60 = vcombine.high %v3552_v32, %v3554_v35 }
 0xb12   : > { %v3590_v53 = vmul.f32 1.442695, %v3586_v33  ;;  %v3587_v7 = vsub.f32 0.0, %v4978_v54  ;;  %v4981_v12 = vrot.slane %v3570_v41, 11  ;;  %v3576_v25 = vrot.slane %v3571_v46, 7 }
 0xb13   : > { %v3594_v56 = vmul.f32 1.442695, %v3588_v47  ;;  %v3589_v38 = vsub.f32 0.0, %v4980_v37  ;;  %v4982_v57 = vrot.slane %v3572_v26, 11  ;;  %v3580_v20 = vrot.slane %v3573_v60, 7 }
 0xb14   : > { %5127 = vpow2.f32 %v3590_v53  ;;  %v3592_v1 = vmul.f32 1.442695, %v3587_v7  ;;  %v3577_v9 = vsel %vm5829_vm15, %v4981_v12, %v3576_v25 }
 0xb15   : > { %5129 = vpow2.f32 %v3594_v56  ;;  %v3596_v11 = vmul.f32 1.442695, %v3589_v38  ;;  %v3581_v0 = vsel %vm5829_vm15, %v4982_v57, %v3580_v20  ;;  %v3584_v24 = vsub.f32 %v6204_v18, %v3577_v9 }
 0xb16   : > { %5131 = vpow2.f32 %v3592_v1  ;;  %v3585_v61 = vsub.f32 %v6207_v59, %v3581_v0 }
 0xb17   : > { %5133 = vpow2.f32 %v3596_v11 }
 0xb21   : > { %v5128_v8 = vpop.eup %5127 }
 0xb22   : > { %v5130_v17 = vpop.eup %5129 }
 0xb23   : > { %v5132_v5 = vpop.eup %5131 }
 0xb24   : > { %v5134_v28 = vpop.eup %5133  ;;  %v3602_v19 = vcombine.low %v5128_v8, %v5132_v5  ;;  %v4984_v5 = vld [vmem:[%s6960_s5 + $0x30] sm:$0xff] }
 0xb25   : > { %v3603_v34 = vcombine.low %v5130_v17, %v5134_v28 }
 0xb26   : > { %v3606_v36 = vmul.f32 %v3602_v19, %v3584_v24  ;;  %v4985_v24 = vld [vmem:[%s6960_s5 + $0x38] sm:$0xff] }
 0xb27   : > { %v3607_v44 = vmul.f32 %v3603_v34, %v3585_v61 }
 0xb28   : > { %v3615_v29 = vcombine.high %v3606_v36, %v3606_v36  ;;  %v3619_v27 = vmul.f32 %v3611_v13, %v3606_v36 }
 0xb29   : > { %v3616_v6 = vcombine.high %v3607_v44, %v3607_v44  ;;  %v3621_v45 = vmul.f32 %v3611_v13, %v3607_v44 }
 0xb2a   : > { %v3620_v40 = vmul.f32 %v3615_v29, %v3611_v13 }
 0xb2b   : > { %v3622_v23 = vmul.f32 %v3616_v6, %v3611_v13 }
 0xb2c   : > { %v3627_v52 = vcombine.low %v3619_v27, %v3620_v40  ;;  %v5006_v27 = vld [vmem:[%s6961_s6 + $0xc0] sm:$0xff]  ;;  %v5007_v40 = vld [vmem:[%s6961_s6 + $0xc8] sm:$0xff] }
 0xb2d   : > { %v3628_v22 = vcombine.low %v3621_v45, %v3622_v23  ;;  %v5009_v45 = vld [vmem:[%s6961_s6 + $0xd8] sm:$0xff]  ;;  %v5010_v23 = vld [vmem:[%s6961_s6 + $0xe0] sm:$0xff] }
 0xb2e   : > { %v6567_v18 = vadd.f32 %v3627_v52, %v6210_v63  ;;  %v4986_v63 = vld [vmem:[%s6959_s4 + $0x60] sm:$0xff]  ;;  %v5011_v52 = vld [vmem:[%s6961_s6 + $0xe8] sm:$0xff] }
 0xb2f   : > { %v6570_v59 = vadd.f32 %v3628_v22, %v7049_v49  ;;  %v5012_v22 = vld [vmem:[%s6961_s6 + $0xf0] sm:$0xff]  ;;  %v6686_v49 = vpop.permute.xlu0 %4085 }
 0xb30   : > { %v6573_v14 = vmul.f32 %v3645_v16, %v6567_v18 }
 0xb31   : > { %v6576_v15 = vmul.f32 %v3645_v16, %v6570_v59  ;;  %v5013_v16 = vld [vmem:[%s6961_s6 + $0xf8] sm:$0xff] }
 0xb32   : > { %v3659_v39 = vcombine.high %v6573_v14, %v6573_v14 }
 0xb33   : > { %v3660_v42 = vcombine.high %v6576_v15, %v6576_v15 }
 0xb34   : > { %4990 = vmatprep.subr.msk.mxu0 %vm7050_vm6, %v3659_v39  ;;  %vm7065_vm6 = vmmov %vm7063_vm4  ;;  %v6688_v39 = vpop.permute.xlu1 %4090 }
 0xb35   : > { %4996 = vmatprep.subr.msk.mxu1 %vm7051_vm12, %v3660_v42  ;;  %4991 = vmatpush1.msk.msra.mxu0 %vm7052_vm2, %v6573_v14  ;;  %vm7066_vm12 = vcmask 130048  }
 0xb36   : > { %4997 = vmatpush1.msk.msra.mxu1 %vm7053_vm3, %v6576_v15  ;;  %4992 = vmatmul.mubr.msk.f32.vlgmr.msra.gmra.mxu0 %vm7054_vm14, %v4986_v63  ;;  %vm7067_vm2 = vmmov %vm7066_vm12 }
 0xb37   : > { %4998 = vmatmul.mubr.msk.f32.vlgmr.msra.gmra.mxu1 %vm7055_vm8, %v4986_v63  ;;  %3751 = vmatprep.mubr.f32.mxu0 %v6996_v55  ;;  %vm7068_vm3 = vmmov %vm7067_vm2 }
 0xb38   : > { %3840 = vmatprep.mubr.f32.mxu1 %v6996_v55  ;;  %vm7069_vm14 = vmmov %vm7067_vm2 }
 0xb39   : > { %vm7070_vm8 = vmmov %vm7067_vm2 }
 0xb3a   : > { %4993 = vmatmul.mubr.msk.f32.gmra.mxu0 %vm7056_vm11, %v4987_v50  ;;  %vm7071_vm11 = vmmov %vm7067_vm2 }
 0xb3b   : > { %4999 = vmatmul.mubr.msk.f32.gmra.mxu1 %vm7057_vm0, %v4987_v50  ;;  %3757 = vmatprep.mubr.f32.mxu0 %v6996_v55  ;;  %vm7072_vm0 = vmmov %vm7067_vm2 }
 0xb3c   : > { %3846 = vmatprep.mubr.f32.mxu1 %v6996_v55 }
 0xb3e   : > { %4994 = vmatmul.mubr.msk.f32.gmra.mxu0 %vm7058_vm7, %v4988_v31  ;;  %vm7073_vm7 = vmmov %vm7072_vm0 }
 0xb3f   : > { %5000 = vmatmul.mubr.msk.f32.gmra.mxu1 %vm7059_vm10, %v4988_v31  ;;  %3763 = vmatprep.mubr.f32.mxu0 %v6996_v55  ;;  %vm7074_vm10 = vmmov %vm7072_vm0 }
 0xb40   : > { %3852 = vmatprep.mubr.f32.mxu1 %v6996_v55 }
 0xb42   : > { %4995 = vmatmul.mubr.msk.f32.gmra.mxu0 %vm7060_vm9, %v4989_v43  ;;  %vm7075_vm9 = vmmov %vm7072_vm0 }
 0xb43   : > { %5001 = vmatmul.mubr.msk.f32.gmra.mxu1 %vm7061_vm1, %v4989_v43  ;;  %3945 = vmatprep.mubr.f32.mxu0 %v6996_v55  ;;  %vm7076_vm1 = vmmov %vm7072_vm0 }
 0xb44   : > { %4022 = vmatprep.mubr.f32.mxu1 %v6996_v55 }
 0xbf6   : > { %v3747_v10 = vpop.f32.mrf.mxu0 }
 0xbf7   : > { %v3836_v21 = vpop.f32.mrf.mxu1  ;;  %v3859_v17 = vmax.f32 %v3747_v10, 0.0  ;;  %v4076_v10 = vpop.permute.xlu0 %4075 }
 0xbf8   : > { %v3749_v30 = vpop.f32.mrf.mxu0  ;;  %v3861_v28 = vmax.f32 %v3836_v21, 0.0 }
 0xbf9   : > { %v3838_v62 = vpop.f32.mrf.mxu1  ;;  %v3860_v8 = vmax.f32 %v3749_v30, 0.0  ;;  %v6690_v30 = vpop.permute.xlu1 %4080 }
 0xbfa   : > { %v3753_v48 = vpop.f32.mrf.mxu0  ;;  %v3862_v0 = vmax.f32 %v3838_v62, 0.0 }
 0xbfb   : > { %v3842_v32 = vpop.f32.mrf.mxu1  ;;  %v3863_v57 = vmax.f32 %v3753_v48, 0.0 }
 0xbfc   : > { %v3755_v3 = vpop.f32.mrf.mxu0  ;;  %v3865_v9 = vmax.f32 %v3842_v32, 0.0 }
 0xbfd   : > { %v3844_v58 = vpop.f32.mrf.mxu1  ;;  %v3864_v12 = vmax.f32 %v3755_v3, 0.0 }
 0xbfe   : > { %v3759_v33 = vpop.f32.mrf.mxu0  ;;  %v3866_v20 = vmax.f32 %v3844_v58, 0.0 }
 0xbff   : > { %v3848_v54 = vpop.f32.mrf.mxu1  ;;  %v3867_v26 = vmax.f32 %v3759_v33, 0.0  ;;  %v4066_v33 = vpop.permute.xlu0 %4065 }
 0xc00   : > { %v3761_v35 = vpop.f32.mrf.mxu0  ;;  %v3869_v25 = vmax.f32 %v3848_v54, 0.0  ;;  %v4071_v54 = vpop.permute.xlu1 %4070 }
 0xc01   : > { %v3850_v47 = vpop.f32.mrf.mxu1  ;;  %v3868_v41 = vmax.f32 %v3761_v35, 0.0 }
 0xc02   : > { %v3765_v37 = vpop.f32.mrf.mxu0  ;;  %v3870_v60 = vmax.f32 %v3850_v47, 0.0 }
 0xc03   : > { %v3854_v53 = vpop.f32.mrf.mxu1  ;;  %v3871_v1 = vmax.f32 %v3765_v37, 0.0 }
 0xc04   : > { %v3767_v7 = vpop.f32.mrf.mxu0  ;;  %v3873_v46 = vmax.f32 %v3854_v53, 0.0 }
 0xc05   : > { %v3872_v56 = vmax.f32 %v3767_v7, 0.0  ;;  %v3856_v38 = vpop.f32.mrf.mxu1 }
 0xc06   : > { %v3874_v11 = vmax.f32 %v3856_v38, 0.0 }
 0xc07   : > { %3905 = vmatprep.subr.mxu0 %v3872_v56  ;;  %v4056_v56 = vpop.permute.xlu0 %4055 }
 0xc08   : > { %3982 = vmatprep.subr.mxu1 %v3874_v11  ;;  %3906 = vmatpush1.msra.mxu0 %v3871_v1  ;;  %v4061_v1 = vpop.permute.xlu1 %4060 }
 0xc09   : > { %3983 = vmatpush1.msra.mxu1 %v3873_v46  ;;  %3907 = vmatprep.subr.mxu0 %v3868_v41 }
 0xc0a   : > { %3984 = vmatprep.subr.mxu1 %v3870_v60  ;;  %3908 = vmatpush1.msra.mxu0 %v3867_v26 }
 0xc0b   : > { %3985 = vmatpush1.msra.mxu1 %v3869_v25  ;;  %3909 = vmatprep.subr.mxu0 %v3864_v12 }
 0xc0c   : > { %3986 = vmatprep.subr.mxu1 %v3866_v20  ;;  %3910 = vmatpush1.msra.mxu0 %v3863_v57 }
 0xc0d   : > { %3987 = vmatpush1.msra.mxu1 %v3865_v9  ;;  %3911 = vmatprep.subr.mxu0 %v3860_v8 }
 0xc0e   : > { %3988 = vmatprep.subr.mxu1 %v3862_v0  ;;  %3912 = vmatpush1.msra.mxu0 %v3859_v17 }
 0xc0f   : > { %3989 = vmatpush1.msra.mxu1 %v3861_v28  ;;  %5002 = vmatmul.mubr.msk.f32.vlgmr.msra.gmra.mxu0 %vm7062_vm5, %v4984_v5  ;;  %vm7077_vm5 = vmmov %vm7072_vm0 }
 0xc10   : > { %5004 = vmatmul.mubr.msk.f32.vlgmr.msra.gmra.mxu1 %vm7063_vm4, %v4984_v5  ;;  %3951 = vmatprep.mubr.f32.mxu0 %v6996_v55  ;;  %vm7078_vm4 = vmmov %vm7072_vm0 }
 0xc11   : > { %4028 = vmatprep.mubr.f32.mxu1 %v6996_v55 }
 0xc13   : > { %5003 = vmatmul.mubr.msk.f32.gmra.mxu0 %vm7064_vm13, %v4985_v24  ;;  %vm7079_vm13 = vmmov %vm7072_vm0 }
 0xc14   : > { %5005 = vmatmul.mubr.msk.f32.gmra.mxu1 %vm7065_vm6, %v4985_v24  ;;  %4181 = vmatprep.mubr.f32.mxu0 %v6996_v55  ;;  %vm7080_vm6 = vmmov %vm7072_vm0 }
 0xc15   : > { %4294 = vmatprep.mubr.f32.mxu1 %v6996_v55 }
 0xccf   : > { %v3947_v19 = vpop.f32.mrf.mxu0 }
 0xcd0   : > { %v4024_v61 = vpop.f32.mrf.mxu1 }
 0xcd1   : > { %v3949_v34 = vpop.f32.mrf.mxu0 }
 0xcd2   : > { %v4026_v36 = vpop.f32.mrf.mxu1 }
 0xcd3   : > { %v3953_v44 = vpop.f32.mrf.mxu0 }
 0xcd4   : > { %v4030_v29 = vpop.f32.mrf.mxu1 }
 0xcd5   : > { %v3955_v13 = vpop.f32.mrf.mxu0 }
 0xcd6   : > { %v4032_v6 = vpop.f32.mrf.mxu1  ;;  %4145 = vmatprep.subr.mxu0 %v3955_v13 }
 0xcd7   : > { %4258 = vmatprep.subr.mxu1 %v4032_v6  ;;  %4146 = vmatpush1.msra.mxu0 %v3953_v44 }
 0xcd8   : > { %4259 = vmatpush1.msra.mxu1 %v4030_v29  ;;  %4147 = vmatprep.subr.mxu0 %v3949_v34 }
 0xcd9   : > { %4260 = vmatprep.subr.mxu1 %v4026_v36  ;;  %4148 = vmatpush1.msra.mxu0 %v3947_v19 }
 0xcda   : > { %4261 = vmatpush1.msra.mxu1 %v4024_v61  ;;  %5022 = vmatmul.mubr.msk.f32.vlgmr.msra.gmra.mxu0 %vm7066_vm12, %v5006_v27  ;;  %vm7081_vm12 = vmmov %vm7072_vm0 }
 0xcdb   : > { %5030 = vmatmul.mubr.msk.f32.vlgmr.msra.gmra.mxu1 %vm7067_vm2, %v5006_v27  ;;  %4187 = vmatprep.mubr.f32.mxu0 %v6996_v55 }
 0xcdc   : > { %4300 = vmatprep.mubr.f32.mxu1 %v6996_v55 }
 0xcde   : > { %5023 = vmatmul.mubr.msk.f32.gmra.mxu0 %vm7068_vm3, %v5007_v40 }
 0xcdf   : > { %5031 = vmatmul.mubr.msk.f32.gmra.mxu1 %vm7069_vm14, %v5007_v40  ;;  %4193 = vmatprep.mubr.f32.mxu0 %v6996_v55 }
 0xce0   : > { %4306 = vmatprep.mubr.f32.mxu1 %v6996_v55 }
 0xce2   : > { %5024 = vmatmul.mubr.msk.f32.gmra.mxu0 %vm7070_vm8, %v5008_v2 }
 0xce3   : > { %5032 = vmatmul.mubr.msk.f32.gmra.mxu1 %vm7071_vm11, %v5008_v2  ;;  %4199 = vmatprep.mubr.f32.mxu0 %v6996_v55 }
 0xce4   : > { %4312 = vmatprep.mubr.f32.mxu1 %v6996_v55 }
 0xce6   : > { %5025 = vmatmul.mubr.msk.f32.gmra.mxu0 %vm7072_vm0, %v5009_v45 }
 0xce7   : > { %5033 = vmatmul.mubr.msk.f32.gmra.mxu1 %vm7073_vm7, %v5009_v45  ;;  %4205 = vmatprep.mubr.f32.mxu0 %v6996_v55 }
 0xce8   : > { %4318 = vmatprep.mubr.f32.mxu1 %v6996_v55 }
 0xcea   : > { %5026 = vmatmul.mubr.msk.f32.gmra.mxu0 %vm7074_vm10, %v5010_v23 }
 0xceb   : > { %5034 = vmatmul.mubr.msk.f32.gmra.mxu1 %vm7075_vm9, %v5010_v23  ;;  %4211 = vmatprep.mubr.f32.mxu0 %v6996_v55 }
 0xcec   : > { %4324 = vmatprep.mubr.f32.mxu1 %v6996_v55 }
 0xcee   : > { %5027 = vmatmul.mubr.msk.f32.gmra.mxu0 %vm7076_vm1, %v5011_v52 }
 0xcef   : > { %5035 = vmatmul.mubr.msk.f32.gmra.mxu1 %vm7077_vm5, %v5011_v52  ;;  %4217 = vmatprep.mubr.f32.mxu0 %v6996_v55 }
 0xcf0   : > { %4330 = vmatprep.mubr.f32.mxu1 %v6996_v55 }
 0xcf2   : > { %5028 = vmatmul.mubr.msk.f32.gmra.mxu0 %vm7078_vm4, %v5012_v22 }
 0xcf3   : > { %5036 = vmatmul.mubr.msk.f32.gmra.mxu1 %vm7079_vm13, %v5012_v22  ;;  %4223 = vmatprep.mubr.f32.mxu0 %v6996_v55 }
 0xcf4   : > { %4336 = vmatprep.mubr.f32.mxu1 %v6996_v55 }
 0xcf6   : > { %5029 = vmatmul.mubr.msk.f32.gmra.mxu0 %vm7080_vm6, %v5013_v16 }
 0xcf7   : > { %5037 = vmatmul.mubr.msk.f32.gmra.mxu1 %vm7081_vm12, %v5013_v16  ;;  %4508 = vmatprep.mubr.f32.mxu0 %v6996_v55 }
 0xcf8   : > { %4579 = vmatprep.mubr.f32.mxu1 %v6996_v55 }
 0xd9a   : > { %v4183_v42 = vpop.f32.mrf.mxu0 }
 0xd9b   : > { %v4296_v63 = vpop.f32.mrf.mxu1  ;;  %v6692_v11 = vadd.f32 %v4183_v42, %v4056_v56 }
 0xd9c   : > { %v4185_v50 = vpop.f32.mrf.mxu0  ;;  %v6700_v57 = vadd.f32 %v4296_v63, %v4056_v56 }
 0xd9d   : > { %v4298_v31 = vpop.f32.mrf.mxu1  ;;  %v6694_v46 = vadd.f32 %v4185_v50, %v4056_v56  ;;  %v6705_v9 = vmul.f32 0.01, %v6692_v11 }
 0xd9e   : > { %v4189_v43 = vpop.f32.mrf.mxu0  ;;  %v6707_v17 = vadd.f32 %v4298_v31, %v4056_v56 }
 0xd9f   : > { %v4302_v21 = vpop.f32.mrf.mxu1  ;;  %v6696_v26 = vadd.f32 %v4189_v43, %v4061_v1  ;;  %v6714_v24 = vmul.f32 0.01, %v6694_v46 }
 0xda0   : > { %v4191_v62 = vpop.f32.mrf.mxu0  ;;  %v6719_v61 = vadd.f32 %v4302_v21, %v4061_v1 }
 0xda1   : > { %v4304_v48 = vpop.f32.mrf.mxu1  ;;  %v6698_v12 = vadd.f32 %v4191_v62, %v4061_v1  ;;  %v6717_v19 = vmul.f32 0.01, %v6696_v26  ;;  %vm4347_vm14 = vcmp.ge.f32.partialorder %v6696_v26, 0.0 }
 0xda2   : > { %v4195_v32 = vpop.f32.mrf.mxu0  ;;  %v6726_v29 = vadd.f32 %v4304_v48, %v4061_v1 }
 0xda3   : > { %v4308_v3 = vpop.f32.mrf.mxu1  ;;  %v6702_v20 = vadd.f32 %v4195_v32, %v4066_v33  ;;  %v6724_v44 = vmul.f32 0.01, %v6698_v12  ;;  %vm4348_vm0 = vcmp.ge.f32.partialorder %v6698_v12, 0.0 }
 0xda4   : > { %v4197_v58 = vpop.f32.mrf.mxu0  ;;  %v6735_v2 = vadd.f32 %v4308_v3, %v4066_v33 }
 0xda5   : > { %v4310_v55 = vpop.f32.mrf.mxu1  ;;  %v6709_v0 = vadd.f32 %v4197_v58, %v4066_v33  ;;  %v6733_v40 = vmul.f32 0.01, %v6702_v20  ;;  %vm4351_vm13 = vcmp.ge.f32.partialorder %v6702_v20, 0.0 }
 0xda6   : > { %v4201_v35 = vpop.f32.mrf.mxu0  ;;  %v6737_v45 = vadd.f32 %v4310_v55, %v4066_v33 }
 0xda7   : > { %v4314_v47 = vpop.f32.mrf.mxu1  ;;  %v6711_v5 = vadd.f32 %v4201_v35, %v4071_v54  ;;  %v6743_v22 = vmul.f32 0.01, %v6709_v0  ;;  %vm4352_vm4 = vcmp.ge.f32.partialorder %v6709_v0, 0.0 }
 0xda8   : > { %v4203_v37 = vpop.f32.mrf.mxu0  ;;  %v6748_v42 = vadd.f32 %v4314_v47, %v4071_v54 }
 0xda9   : > { %v4316_v53 = vpop.f32.mrf.mxu1  ;;  %v6721_v34 = vadd.f32 %v4203_v37, %v4071_v54  ;;  %v6746_v16 = vmul.f32 0.01, %v6711_v5 }
 0xdaa   : > { %v4207_v7 = vpop.f32.mrf.mxu0  ;;  %v6756_v43 = vadd.f32 %v4316_v53, %v4071_v54 }
 0xdab   : > { %v4320_v38 = vpop.f32.mrf.mxu1  ;;  %v6728_v13 = vadd.f32 %v4207_v7, %v4076_v10  ;;  %v6754_v31 = vmul.f32 0.01, %v6721_v34 }
 0xdac   : > { %v4209_v41 = vpop.f32.mrf.mxu0  ;;  %v6758_v21 = vadd.f32 %v4320_v38, %v4076_v10 }
 0xdad   : > { %v4322_v60 = vpop.f32.mrf.mxu1  ;;  %v6730_v6 = vadd.f32 %v4209_v41, %v4076_v10  ;;  %v6764_v32 = vmul.f32 0.01, %v6728_v13 }
 0xdae   : > { %v4213_v25 = vpop.f32.mrf.mxu0  ;;  %v6769_v58 = vadd.f32 %v4322_v60, %v4076_v10 }
 0xdaf   : > { %v4326_v8 = vpop.f32.mrf.mxu1  ;;  %v6740_v23 = vadd.f32 %v4213_v25, %v6690_v30  ;;  %v6767_v3 = vmul.f32 0.01, %v6730_v6  ;;  %vm4360_vm3 = vcmp.ge.f32.partialorder %v6730_v6, 0.0 }
 0xdb0   : > { %v4215_v28 = vpop.f32.mrf.mxu0  ;;  %v6777_v35 = vadd.f32 %v4326_v8, %v6690_v30 }
 0xdb1   : > { %v4328_v36 = vpop.f32.mrf.mxu1  ;;  %v6751_v63 = vadd.f32 %v4215_v28, %v6690_v30  ;;  %vm4363_vm2 = vcmp.ge.f32.partialorder %v6740_v23, 0.0  ;;  %v6774_v54 = vmul.f32 0.01, %v6740_v23 }
 0xdb2   : > { %v4219_v27 = vpop.f32.mrf.mxu0  ;;  %v6782_v7 = vadd.f32 %v4328_v36, %v6690_v30 }
 0xdb3   : > { %v4332_v52 = vpop.f32.mrf.mxu1  ;;  %v6761_v62 = vadd.f32 %v4219_v27, %v6686_v49  ;;  %v4396_v53 = vmul.f32 0.01, %v6751_v63  ;;  %vm4364_vm8 = vcmp.ge.f32.partialorder %v6751_v63, 0.0 }
 0xdb4   : > { %v4221_v50 = vpop.f32.mrf.mxu0  ;;  %v4333_v41 = vadd.f32 %v4332_v52, %v6686_v49 }
 0xdb5   : > { %v4334_v48 = vpop.f32.mrf.mxu1  ;;  %v4222_v33 = vadd.f32 %v4221_v50, %v6686_v49  ;;  %v4399_v1 = vmul.f32 0.01, %v6761_v62  ;;  %vm4367_vm6 = vcmp.ge.f32.partialorder %v6761_v62, 0.0 }
 0xdb6   : > { %v4225_v55 = vpop.f32.mrf.mxu0  ;;  %v4335_v10 = vadd.f32 %v4334_v48, %v6686_v49  ;;  %v4398_v48 = vmul.f32 0.01, %v6782_v7  ;;  %vm4369_vm7 = vcmp.ge.f32.partialorder %v4333_v41, 0.0 }
 0xdb7   : > { %v4226_v47 = vadd.f32 %v4225_v55, %v6688_v39  ;;  %v4338_v37 = vpop.f32.mrf.mxu1  ;;  %v4400_v30 = vmul.f32 0.01, %v4222_v33  ;;  %vm4368_vm11 = vcmp.ge.f32.partialorder %v4222_v33, 0.0 }
 0xdb8   : > { %v4339_v56 = vadd.f32 %v4338_v37, %v6688_v39  ;;  %v4227_v38 = vpop.f32.mrf.mxu0  ;;  %v4402_v50 = vmul.f32 0.01, %v4335_v10  ;;  %vm4370_vm12 = vcmp.ge.f32.partialorder %v4335_v10, 0.0 }
 0xdb9   : > { %v4228_v60 = vadd.f32 %v4227_v38, %v6688_v39  ;;  %v4340_v25 = vpop.f32.mrf.mxu1  ;;  %v4403_v8 = vmul.f32 0.01, %v4226_v47  ;;  %vm4371_vm10 = vcmp.ge.f32.partialorder %v4226_v47, 0.0  ;;  %v4397_v38 = vmul.f32 0.01, %v6777_v35 }
 0xdba   : > { %v4341_v28 = vadd.f32 %v4340_v25, %v6688_v39  ;;  %v4405_v36 = vmul.f32 0.01, %v4339_v56  ;;  %vm4373_vm1 = vcmp.ge.f32.partialorder %v4339_v56, 0.0  ;;  %v4401_v39 = vmul.f32 0.01, %v4333_v41 }
 0xdbb   : > { %v4404_v27 = vmul.f32 0.01, %v4228_v60  ;;  %vm4372_vm9 = vcmp.ge.f32.partialorder %v4228_v60, 0.0  ;;  %v4435_v37 = vsel %vm4371_vm10, %v4226_v47, %v4403_v8  ;;  %v4434_v47 = vsel %vm4370_vm12, %v4335_v10, %v4402_v50 }
 0xdbc   : > { %v4406_v49 = vmul.f32 0.01, %v4341_v28  ;;  %vm4374_vm5 = vcmp.ge.f32.partialorder %v4341_v28, 0.0  ;;  %v4437_v25 = vsel %vm4373_vm1, %v4339_v56, %v4405_v36  ;;  %v4431_v8 = vsel %vm4367_vm6, %v6761_v62, %v4399_v1 }
 0xdbd   : > { %v4436_v52 = vsel %vm4372_vm9, %v4228_v60, %v4404_v27  ;;  %v4432_v60 = vsel %vm4368_vm11, %v4222_v33, %v4400_v30  ;;  %vm4366_vm9 = vcmp.ge.f32.partialorder %v6782_v7, 0.0  ;;  %v4394_v27 = vmul.f32 0.01, %v6769_v58 }
 0xdbe   : > { %4460 = vmatprep.subr.mxu0 %v4436_v52  ;;  %v4438_v55 = vsel %vm4374_vm5, %v4341_v28, %v4406_v49  ;;  %vm4365_vm5 = vcmp.ge.f32.partialorder %v6777_v35, 0.0  ;;  %vm4344_vm10 = vcmp.ge.f32.partialorder %v6694_v46, 0.0  ;;  %vm4343_vm1 = vcmp.ge.f32.partialorder %v6692_v11, 0.0 }
 0xdbf   : > { %4531 = vmatprep.subr.mxu1 %v4438_v55  ;;  %4461 = vmatpush1.msra.mxu0 %v4435_v37  ;;  %v4393_v33 = vmul.f32 0.01, %v6758_v21  ;;  %v4433_v56 = vsel %vm4369_vm7, %v4333_v41, %v4401_v39  ;;  %v4428_v30 = vsel %vm4364_vm8, %v6751_v63, %v4396_v53  ;;  %vm4362_vm11 = vcmp.ge.f32.partialorder %v6769_v58, 0.0 }
 0xdc0   : > { %4532 = vmatpush1.msra.mxu1 %v4437_v25  ;;  %4462 = vmatprep.subr.mxu0 %v4432_v60  ;;  %v4390_v10 = vmul.f32 0.01, %v6756_v43  ;;  %vm4361_vm6 = vcmp.ge.f32.partialorder %v6758_v21, 0.0  ;;  %v4430_v62 = vsel %vm4366_vm9, %v6782_v7, %v4398_v48  ;;  %v4427_v1 = vsel %vm4363_vm2, %v6740_v23, %v6774_v54 }
 0xdc1   : > { %4533 = vmatprep.subr.mxu1 %v4434_v47  ;;  %4463 = vmatpush1.msra.mxu0 %v4431_v8  ;;  %v4389_v41 = vmul.f32 0.01, %v6748_v42  ;;  %v4429_v63 = vsel %vm4365_vm5, %v6777_v35, %v4397_v38  ;;  %v4424_v53 = vsel %vm4360_vm3, %v6730_v6, %v6767_v3  ;;  %vm4358_vm8 = vcmp.ge.f32.partialorder %v6756_v43, 0.0 }
 0xdc2   : > { %4534 = vmatpush1.msra.mxu1 %v4433_v56  ;;  %4464 = vmatprep.subr.mxu0 %v4428_v30  ;;  %v4386_v7 = vmul.f32 0.01, %v6737_v45  ;;  %vm4357_vm7 = vcmp.ge.f32.partialorder %v6748_v42, 0.0  ;;  %v4426_v23 = vsel %vm4362_vm11, %v6769_v58, %v4394_v27  ;;  %vm7082_vm2 = vcmp.ge.f32.partialorder %v6728_v13, 0.0 }
 0xdc3   : > { %4535 = vmatprep.subr.mxu1 %v4430_v62  ;;  %4465 = vmatpush1.msra.mxu0 %v4427_v1  ;;  %v4423_v54 = vsel %vm7082_vm2, %v6728_v13, %v6764_v32  ;;  %v4385_v35 = vmul.f32 0.01, %v6735_v2  ;;  %v4425_v6 = vsel %vm4361_vm6, %v6758_v21, %v4393_v33  ;;  %vm7083_vm3 = vcmp.ge.f32.partialorder %v6721_v34, 0.0 }
 0xdc4   : > { %4536 = vmatpush1.msra.mxu1 %v4429_v63  ;;  %4466 = vmatprep.subr.mxu0 %v4424_v53  ;;  %v4420_v3 = vsel %vm7083_vm3, %v6721_v34, %v6754_v31  ;;  %vm4354_vm12 = vcmp.ge.f32.partialorder %v6737_v45, 0.0  ;;  %v4382_v58 = vmul.f32 0.01, %v6726_v29  ;;  %vm4353_vm9 = vcmp.ge.f32.partialorder %v6735_v2, 0.0 }
 0xdc5   : > { %4537 = vmatprep.subr.mxu1 %v4426_v23  ;;  %4467 = vmatpush1.msra.mxu0 %v4423_v54  ;;  %v4422_v13 = vsel %vm4358_vm8, %v6756_v43, %v4390_v10  ;;  %vm7084_vm5 = vcmp.ge.f32.partialorder %v6711_v5, 0.0  ;;  %v4381_v32 = vmul.f32 0.01, %v6719_v61  ;;  %v4421_v34 = vsel %vm4357_vm7, %v6748_v42, %v4389_v41 }
 0xdc6   : > { %4538 = vmatpush1.msra.mxu1 %v4425_v6  ;;  %4468 = vmatprep.subr.mxu0 %v4420_v3  ;;  %v4419_v21 = vsel %vm7084_vm5, %v6711_v5, %v6746_v16  ;;  %v4416_v31 = vsel %vm4352_vm4, %v6709_v0, %v6743_v22  ;;  %vm4350_vm11 = vcmp.ge.f32.partialorder %v6726_v29, 0.0  ;;  %v4378_v43 = vmul.f32 0.01, %v6707_v17  ;;  %v4640_v3 = vpop.permute.xlu1 %4639 }
 0xdc7   : > { %4539 = vmatprep.subr.mxu1 %v4422_v13  ;;  %4469 = vmatpush1.msra.mxu0 %v4419_v21  ;;  %vm4349_vm6 = vcmp.ge.f32.partialorder %v6719_v61, 0.0  ;;  %v4418_v5 = vsel %vm4354_vm12, %v6737_v45, %v4386_v7  ;;  %v4415_v16 = vsel %vm4351_vm13, %v6702_v20, %v6733_v40  ;;  %v4377_v42 = vmul.f32 0.01, %v6700_v57 }
 0xdc8   : > { %4540 = vmatpush1.msra.mxu1 %v4421_v34  ;;  %4470 = vmatprep.subr.mxu0 %v4416_v31  ;;  %v4417_v0 = vsel %vm4353_vm9, %v6735_v2, %v4385_v35  ;;  %v4412_v22 = vsel %vm4348_vm0, %v6698_v12, %v6724_v44  ;;  %vm4346_vm4 = vcmp.ge.f32.partialorder %v6707_v17, 0.0  ;;  %vm4345_vm8 = vcmp.ge.f32.partialorder %v6700_v57, 0.0 }
 0xdc9   : > { %4541 = vmatprep.subr.mxu1 %v4418_v5  ;;  %4471 = vmatpush1.msra.mxu0 %v4415_v16  ;;  %v4414_v20 = vsel %vm4350_vm11, %v6726_v29, %v4382_v58  ;;  %v4411_v40 = vsel %vm4347_vm14, %v6696_v26, %v6717_v19  ;;  %v4413_v12 = vsel %vm4349_vm6, %v6719_v61, %v4381_v32  ;;  %v5038_v29 = vld [vmem:[%s6962_s7 + $0x18] sm:$0x3f]  ;;  %vm7085_vm14 = vcmask 523264   ;;  %v4666_v32 = vpop.permute.xlu0 %4665 }
 0xdca   : > { %4542 = vmatpush1.msra.mxu1 %v4417_v0  ;;  %4472 = vmatprep.subr.mxu0 %v4412_v22  ;;  %v4408_v44 = vsel %vm4344_vm10, %v6694_v46, %v6714_v24  ;;  %v4410_v2 = vsel %vm4346_vm4, %v6707_v17, %v4378_v43  ;;  %v4407_v26 = vsel %vm4343_vm1, %v6692_v11, %v6705_v9  ;;  %vm7086_vm0 = vmmov %vm7085_vm14 }
 0xdcb   : > { %4543 = vmatprep.subr.mxu1 %v4414_v20  ;;  %4473 = vmatpush1.msra.mxu0 %v4411_v40  ;;  %v4409_v19 = vsel %vm4345_vm8, %v6700_v57, %v4377_v42  ;;  %v4673_v5 = vrot.slane %v4666_v32, %v7001_v4 }
 0xdcc   : > { %4544 = vmatpush1.msra.mxu1 %v4413_v12  ;;  %4474 = vmatprep.subr.mxu0 %v4408_v44 }
 0xdcd   : > { %4545 = vmatprep.subr.mxu1 %v4410_v2  ;;  %4475 = vmatpush1.msra.mxu0 %v4407_v26 }
 0xdce   : > { %4546 = vmatpush1.msra.mxu1 %v4409_v19  ;;  %5039 = vmatmul.mubr.msk.f32.vlgmr.msra.gmra.mxu0 %vm7085_vm14, %v5038_v29 }
 0xdcf   : > { %5040 = vmatmul.mubr.msk.f32.vlgmr.msra.gmra.mxu1 %vm7086_vm0, %v5038_v29 }
 0xe8e   : > { %v4510_v46 = vpop.f32.mrf.mxu0 }
 0xe8f   : > { %v5041_v24 = vclamps-f32 %v4510_v46, 10.0  ;;  %v4581_v61 = vpop.f32.mrf.mxu1 }
 0xe90   : > { %v5043_v17 = vclamps-f32 %v4581_v61, 10.0  ;;  %v4512_v45 = vpop.f32.mrf.mxu0 }
 0xe91   : > { %v4615_v28 = vsub.f32 0.0, %v5041_v24  ;;  %v5042_v36 = vclamps-f32 %v4512_v45, 10.0  ;;  %v4583_v50 = vpop.f32.mrf.mxu1  ;;  %v4599_v37 = vcombine.low %v4510_v46, %v4512_v45  ;;  %v4600_v38 = vcombine.high %v4510_v46, %v4512_v45 }
 0xe92   : > { %v4617_v11 = vsub.f32 0.0, %v5043_v17  ;;  %v5044_v9 = vclamps-f32 %v4583_v50, 10.0  ;;  %v4601_v25 = vcombine.low %v4581_v61, %v4583_v50  ;;  %v4602_v60 = vcombine.high %v4581_v61, %v4583_v50 }
 0xe93   : > { %v4619_v49 = vmul.f32 1.442695, %v4615_v28  ;;  %v4616_v39 = vsub.f32 0.0, %v5042_v36  ;;  %v5045_v27 = vrot.slane %v4599_v37, 11  ;;  %v4605_v47 = vrot.slane %v4600_v38, 7 }
 0xe94   : > { %v4623_v52 = vmul.f32 1.442695, %v4617_v11  ;;  %v4618_v48 = vsub.f32 0.0, %v5044_v9  ;;  %v5046_v8 = vrot.slane %v4601_v25, 11  ;;  %v4609_v33 = vrot.slane %v4602_v60, 7 }
 0xe95   : > { %5135 = vpow2.f32 %v4619_v49  ;;  %v4621_v57 = vmul.f32 1.442695, %v4616_v39  ;;  %v4606_v30 = vsel %vm5829_vm15, %v5045_v27, %v4605_v47 }
 0xe96   : > { %5137 = vpow2.f32 %v4623_v52  ;;  %v4625_v55 = vmul.f32 1.442695, %v4618_v48  ;;  %v4610_v62 = vsel %vm5829_vm15, %v5046_v8, %v4609_v33  ;;  %v4613_v63 = vsub.f32 %v6567_v18, %v4606_v30 }
 0xe97   : > { %5139 = vpow2.f32 %v4621_v57  ;;  %v4614_v7 = vsub.f32 %v6570_v59, %v4610_v62 }
 0xe98   : > { %5141 = vpow2.f32 %v4625_v55 }
 0xea2   : > { %v5136_v56 = vpop.eup %5135 }
 0xea3   : > { %v5138_v10 = vpop.eup %5137 }
 0xea4   : > { %v5140_v1 = vpop.eup %5139 }
 0xea5   : > { %v5142_v41 = vpop.eup %5141  ;;  %v4631_v53 = vcombine.low %v5136_v56, %v5140_v1 }
 0xea6   : > { %v4632_v23 = vcombine.low %v5138_v10, %v5142_v41 }
 0xea7   : > { %v4635_v54 = vmul.f32 %v4631_v53, %v4613_v63 }
 0xea8   : > { %v4636_v35 = vmul.f32 %v4632_v23, %v4614_v7 }
 0xea9   : > { %v4644_v6 = vcombine.high %v4635_v54, %v4635_v54  ;;  %v4648_v13 = vmul.f32 %v4640_v3, %v4635_v54 }
 0xeaa   : > { %v4645_v58 = vcombine.high %v4636_v35, %v4636_v35  ;;  %v4650_v34 = vmul.f32 %v4640_v3, %v4636_v35 }
 0xeab   : > { %v4649_v21 = vmul.f32 %v4644_v6, %v4640_v3 }
 0xeac   : > { %v4651_v51 = vmul.f32 %v4645_v58, %v4640_v3 }
 0xead   : > { %v4656_v31 = vcombine.low %v4648_v13, %v4649_v21 }
 0xeae   : > { %v4657_v43 = vcombine.low %v4650_v34, %v4651_v51 }
 0xeaf   : > { %v4660_v18 = vadd.f32 %v4656_v31, %v6573_v14 }
 0xeb0   : > { %v4661_v59 = vadd.f32 %v4657_v43, %v6576_v15 }
 0xeb1   : > { %v4675_v16 = vmul.f32 %v4673_v5, %v4660_v18 }
 0xeb2   : > { %v4676_v42 = vmul.f32 %v4673_v5, %v4661_v59 }
 0xeb3   : > { %4677 = vst [vmem:[%s540_s24] sm:$0x77] %v4675_v16 }
 0xeb4   : > { %4678 = vst [vmem:[%s540_s24 + $0x8] sm:$0x77] %v4676_v42 }
 0xeb5 PF: > { %s18_s11 = sadd.s32 1, %s5197_s11   ;;  %s7087_s27 = smov %s5177_s28 }
 0xeb6   : > { %p15_p12 = scmp.ge.s32.totalorder %s18_s11, 18   ;;  %s7088_s28 = smov %s5296_s16 }
 0xeb7   : > { %s7089_s29 = smov %s5189_s9  ;;  %s7090_s30 = smov %s5193_s10 }
 0xeb8   : > { %s7091_s9 = smov %s7094_s12  ;;  %s7092_s10 = smov %s7098_s13 }
 0xeb9   :  { %17 = sbr.rel (!%p15_p12) target bundleno = 4 (0x4), region = 149 }

</bundles_post_ra>
